<compile_context>
chip_gen: v7x
topology: tpu7x:2x2x1
jax: 0.10.0
libtpu: 0.0.40
codegen_flags: <defaults>
</compile_context>

<pallas_src>
import jax
import jax.numpy as jnp
from jax import lax
from jax.experimental import pallas as pl
from jax.experimental.pallas import tpu as pltpu


# Every intermediate keeps the flattened-32x32 indexing (row stride 32) and is truncated
# to the largest flat index that any later stage actually reads:
_N_A1 = 892   # conv1 out : a1[p] reads x[p + 132]   -> needed up to p = 891
_N_M1 = 859   # pool1 out : m1[p] reads a1[p + 33]   -> needed up to p = 858
_N_A2 = 595   # conv2 out : a2[p] reads m1[p + 264]  -> needed up to p = 594
_N_M2 = 529   # pool2 out : m2[p] reads a2[p + 66]   -> needed up to p = 528


# ----------------------------------------------------------------------------
# Fused forward-pass kernel (one batch element per grid step)
# ----------------------------------------------------------------------------
def _net_kernel(x_ref, w1_ref, b1_ref, w2_ref, b2_ref, g_ref,
                wfc1_ref, bfc1_ref, wfc2_ref, bfc2_ref, wfc3_ref, bfc3_ref,
                o_ref):
    f32 = jnp.float32
    x = x_ref[0]                                            # (3, 1024) bf16

    # conv1 + bias + ReLU: 25 shifted-slice matmuls (bf16 MXU, f32 accumulate);
    # accumulator starts at the broadcast bias so no separate bias add is needed.
    acc1 = jnp.broadcast_to(b1_ref[...], (6, _N_A1)).astype(f32)
    for kh in range(5):
        for kw in range(5):
            d = kh * 32 + kw
            acc1 = acc1 + jnp.dot(w1_ref[kh * 5 + kw], x[:, d:d + _N_A1],
                                  preferred_element_type=f32)
    a1 = jnp.maximum(acc1, 0.0)                             # (6, 892)

    # maxpool1 2x2/2: pooled values live at even (row, col) -> stride-2 grid
    m1 = jnp.maximum(jnp.maximum(a1[:, 0:_N_M1], a1[:, 1:_N_M1 + 1]),
                     jnp.maximum(a1[:, 32:_N_M1 + 32], a1[:, 33:_N_M1 + 33]))
    m1 = m1.astype(jnp.bfloat16)                            # (6, 859)

    # conv2 + bias + ReLU on the stride-2 pooled grid (shifts of 2*(kh*32+kw))
    acc2 = jnp.broadcast_to(b2_ref[...], (16, _N_A2)).astype(f32)
    for kh in range(5):
        for kw in range(5):
            d = 2 * (kh * 32 + kw)
            acc2 = acc2 + jnp.dot(w2_ref[kh * 5 + kw], m1[:, d:d + _N_A2],
                                  preferred_element_type=f32)
    a2 = jnp.maximum(acc2, 0.0)                             # (16, 595)

    # maxpool2 2x2/2: conv2 outputs sit at stride 2 -> window offsets {0, 2, 64, 66}
    m2 = jnp.maximum(jnp.maximum(a2[:, 0:_N_M2], a2[:, 2:_N_M2 + 2]),
                     jnp.maximum(a2[:, 64:_N_M2 + 64], a2[:, 66:_N_M2 + 66]))

    # gather the 5x5 valid pooled outputs (stride-4 grid) with a constant 0/1 matmul
    p2 = jnp.dot(m2, g_ref[...], preferred_element_type=f32)        # (16, 25)

    # fc1 (+ReLU): contract over (channel, spatial) without reshaping (16, 25)
    h = bfc1_ref[...].astype(f32)                                    # (1, 120)
    for c in range(16):
        h = h + jnp.dot(p2[c:c + 1, :], wfc1_ref[c], preferred_element_type=f32)
    h = jnp.maximum(h, 0.0)

    # fc2 (+ReLU) and fc3 (logits lane-padded to 128 -> one dense 128-wide store)
    h = jnp.maximum(jnp.dot(h, wfc2_ref[...], preferred_element_type=f32)
                    + bfc2_ref[...], 0.0)
    o_ref[0] = (jnp.dot(h, wfc3_ref[...], preferred_element_type=f32)
                + bfc3_ref[...])


# ----------------------------------------------------------------------------
# Wrapper: one-time weight repacking + single pallas_call
# ----------------------------------------------------------------------------
def net_forward(params, x):
    B = x.shape[0]
    xf = x.reshape(B, 3, 32 * 32).astype(jnp.bfloat16)

    # conv weights repacked so the kernel indexes one (OC, IC) slab per (kh, kw)
    w1r = jnp.transpose(params["conv1_w"], (2, 3, 0, 1)).reshape(25, 6, 3)
    w1r = w1r.astype(jnp.bfloat16)
    w2r = jnp.transpose(params["conv2_w"], (2, 3, 0, 1)).reshape(25, 16, 6)
    w2r = w2r.astype(jnp.bfloat16)
    b1 = params["conv1_b"].reshape(6, 1).astype(jnp.float32)
    b2 = params["conv2_b"].reshape(16, 1).astype(jnp.float32)

    # pool2 gather: grid position 128*i + 4*j  ->  output slot i*5 + j
    pos = jnp.arange(_N_M2)[:, None]
    slot = jnp.arange(25)[None, :]
    gmat = (pos == 128 * (slot // 5) + 4 * (slot % 5)).astype(jnp.float32)

    # fc1 weight as (channel, spatial, out) to match the un-reshaped (16, 25) features
    wfc1r = params["fc1_w"].reshape(120, 16, 25).transpose(1, 2, 0)
    wfc1r = wfc1r.astype(jnp.float32)
    bfc1 = params["fc1_b"].reshape(1, 120).astype(jnp.float32)
    wfc2 = params["fc2_w"].T.astype(jnp.float32)                       # (120, 84)
    bfc2 = params["fc2_b"].reshape(1, 84).astype(jnp.float32)
    wfc3 = jnp.zeros((84, 128), jnp.float32).at[:, :10].set(params["fc3_w"].T)
    bfc3 = jnp.zeros((1, 128), jnp.float32).at[:, :10].set(params["fc3_b"])

    out_pad = pl.pallas_call(
        _net_kernel,
        out_shape=jax.ShapeDtypeStruct((B, 1, 128), jnp.float32),
        grid=(B,),
        in_specs=[
            pl.BlockSpec((1, 3, 1024), lambda b: (b, 0, 0)),      # image (bf16)
            pl.BlockSpec((25, 6, 3), lambda b: (0, 0, 0)),        # conv1 w
            pl.BlockSpec((6, 1), lambda b: (0, 0)),               # conv1 b
            pl.BlockSpec((25, 16, 6), lambda b: (0, 0, 0)),       # conv2 w
            pl.BlockSpec((16, 1), lambda b: (0, 0)),              # conv2 b
            pl.BlockSpec((_N_M2, 25), lambda b: (0, 0)),          # pool2 gather
            pl.BlockSpec((16, 25, 120), lambda b: (0, 0, 0)),     # fc1 w
            pl.BlockSpec((1, 120), lambda b: (0, 0)),             # fc1 b
            pl.BlockSpec((120, 84), lambda b: (0, 0)),            # fc2 w
            pl.BlockSpec((1, 84), lambda b: (0, 0)),              # fc2 b
            pl.BlockSpec((84, 128), lambda b: (0, 0)),            # fc3 w (lane-padded)
            pl.BlockSpec((1, 128), lambda b: (0, 0)),             # fc3 b (lane-padded)
        ],
        out_specs=pl.BlockSpec((1, 1, 128), lambda b: (b, 0, 0)),
        compiler_params=pltpu.CompilerParams(
            dimension_semantics=("parallel",)),
    )(xf, w1r, b1, w2r, b2, gmat, wfc1r, bfc1, wfc2, bfc2, wfc3, bfc3)
    return out_pad[:, 0, :10]


# ----------------------------------------------------------------------------
# Pure-JAX reference (PyTorch semantics) for correctness cross-check
# ----------------------------------------------------------------------------
def net_forward_ref(params, x):
    def conv(x, w, b):
        y = lax.conv_general_dilated(
            x, w, window_strides=(1, 1), padding="VALID",
            dimension_numbers=("NCHW", "OIHW", "NCHW"))
        return jax.nn.relu(y + b.reshape(1, -1, 1, 1))

    def pool(x):
        return lax.reduce_window(x, -jnp.inf, lax.max,
                                 (1, 1, 2, 2), (1, 1, 2, 2), "VALID")

    x = pool(conv(x, params["conv1_w"], params["conv1_b"]))
    x = pool(conv(x, params["conv2_w"], params["conv2_b"]))
    x = x.reshape(x.shape[0], -1)
    x = jax.nn.relu(x @ params["fc1_w"].T + params["fc1_b"])
    x = jax.nn.relu(x @ params["fc2_w"].T + params["fc2_b"])
    return x @ params["fc3_w"].T + params["fc3_b"]


# ----------------------------------------------------------------------------
# Deterministic parameter init (shapes from Net.__init__)
# ----------------------------------------------------------------------------
def init_params(key):
    ks = jax.random.split(key, 10)
    s = 0.1
    return {
        "conv1_w": s * jax.random.normal(ks[0], (6, 3, 5, 5), jnp.float32),
        "conv1_b": s * jax.random.normal(ks[1], (6,), jnp.float32),
        "conv2_w": s * jax.random.normal(ks[2], (16, 6, 5, 5), jnp.float32),
        "conv2_b": s * jax.random.normal(ks[3], (16,), jnp.float32),
        "fc1_w": s * jax.random.normal(ks[4], (120, 16 * 5 * 5), jnp.float32),
        "fc1_b": s * jax.random.normal(ks[5], (120,), jnp.float32),
        "fc2_w": s * jax.random.normal(ks[6], (84, 120), jnp.float32),
        "fc2_b": s * jax.random.normal(ks[7], (84,), jnp.float32),
        "fc3_w": s * jax.random.normal(ks[8], (10, 84), jnp.float32),
        "fc3_b": s * jax.random.normal(ks[9], (10,), jnp.float32),
    }


if __name__ == "__main__":
    key = jax.random.PRNGKey(0)
    kp, kx = jax.random.split(key)
    params = init_params(kp)
    # Net's fc1 implies a 3x32x32 input (32 -conv5-> 28 -pool-> 14 -conv5-> 10
    # -pool-> 5; 16*5*5 = 400).
    x = jax.random.normal(kx, (2, 3, 32, 32), dtype=jnp.float32)

    fwd = jax.jit(net_forward)
    out = jax.block_until_ready(fwd(params, x))
    ref = jax.block_until_ready(net_forward_ref(params, x))

    assert out.shape == (2, 10), out.shape
    # conv matmuls use bf16 MXU operands (f32 accumulate) -> ~1% relative error
    # vs the all-f32 reference, hence the loosened tolerance.
    assert jnp.allclose(out, ref, atol=5e-2, rtol=5e-2), (
        float(jnp.max(jnp.abs(out - ref))))
    print("KERNEL_OK")
</pallas_src>

<mosaic_0001>
module attributes {stable_mosaic.version = 11 : i64} {
  func.func @_net_kernel(%arg0: i32, %arg1: memref<1x3x1024xbf16, #tpu.memory_space<vmem>>, %arg2: memref<25x6x3xbf16, #tpu.memory_space<vmem>>, %arg3: memref<6x1xf32, #tpu.memory_space<vmem>>, %arg4: memref<25x16x6xbf16, #tpu.memory_space<vmem>>, %arg5: memref<16x1xf32, #tpu.memory_space<vmem>>, %arg6: memref<529x25xf32, #tpu.memory_space<vmem>>, %arg7: memref<16x25x120xf32, #tpu.memory_space<vmem>>, %arg8: memref<1x120xf32, #tpu.memory_space<vmem>>, %arg9: memref<120x84xf32, #tpu.memory_space<vmem>>, %arg10: memref<1x84xf32, #tpu.memory_space<vmem>>, %arg11: memref<84x128xf32, #tpu.memory_space<vmem>>, %arg12: memref<1x128xf32, #tpu.memory_space<vmem>>, %arg13: memref<1x1x128xf32, #tpu.memory_space<vmem>>) attributes {dimension_semantics = [#tpu.dimension_semantics<parallel>], iteration_bounds = array<i64: 2>, scalar_prefetch = 0 : i64, scratch_operands = 0 : i64, tpu.core_type = #tpu.core_type<tc>, window_params = [{transform_indices = @transform_0, window_bounds = array<i64: 1, 3, 1024>}, {pipeline_mode = #tpu.pipeline_mode<synchronous>, transform_indices = @transform_1, window_bounds = array<i64: 25, 6, 3>}, {pipeline_mode = #tpu.pipeline_mode<synchronous>, transform_indices = @transform_2, window_bounds = array<i64: 6, 1>}, {pipeline_mode = #tpu.pipeline_mode<synchronous>, transform_indices = @transform_3, window_bounds = array<i64: 25, 16, 6>}, {pipeline_mode = #tpu.pipeline_mode<synchronous>, transform_indices = @transform_4, window_bounds = array<i64: 16, 1>}, {pipeline_mode = #tpu.pipeline_mode<synchronous>, transform_indices = @transform_5, window_bounds = array<i64: 529, 25>}, {pipeline_mode = #tpu.pipeline_mode<synchronous>, transform_indices = @transform_6, window_bounds = array<i64: 16, 25, 120>}, {pipeline_mode = #tpu.pipeline_mode<synchronous>, transform_indices = @transform_7, window_bounds = array<i64: 1, 120>}, {pipeline_mode = #tpu.pipeline_mode<synchronous>, transform_indices = @transform_8, window_bounds = array<i64: 120, 84>}, {pipeline_mode = #tpu.pipeline_mode<synchronous>, transform_indices = @transform_9, window_bounds = array<i64: 1, 84>}, {pipeline_mode = #tpu.pipeline_mode<synchronous>, transform_indices = @transform_10, window_bounds = array<i64: 84, 128>}, {pipeline_mode = #tpu.pipeline_mode<synchronous>, transform_indices = @transform_11, window_bounds = array<i64: 1, 128>}, {transform_indices = @transform_12, window_bounds = array<i64: 1, 1, 128>}]} {
    %c0 = arith.constant 0 : index
    %c0_0 = arith.constant 0 : index
    %c0_1 = arith.constant 0 : index
    %0 = vector.load %arg1[%c0, %c0_0, %c0_1] : memref<1x3x1024xbf16, #tpu.memory_space<vmem>>, vector<1x3x1024xbf16>
    %1 = vector.shape_cast %0 : vector<1x3x1024xbf16> to vector<3x1024xbf16>
    %c0_2 = arith.constant 0 : index
    %c0_3 = arith.constant 0 : index
    %2 = vector.load %arg3[%c0_2, %c0_3] : memref<6x1xf32, #tpu.memory_space<vmem>>, vector<6x1xf32>
    %3 = vector.shape_cast %2 : vector<6x1xf32> to vector<6x1xf32>
    %4 = vector.broadcast %3 : vector<6x1xf32> to vector<6x892xf32>
    %c0_4 = arith.constant 0 : index
    %c0_5 = arith.constant 0 : index
    %c0_6 = arith.constant 0 : index
    %5 = vector.load %arg2[%c0_4, %c0_5, %c0_6] : memref<25x6x3xbf16, #tpu.memory_space<vmem>>, vector<1x6x3xbf16>
    %6 = vector.shape_cast %5 : vector<1x6x3xbf16> to vector<6x3xbf16>
    %7 = vector.extract_strided_slice %1 {offsets = [0, 0], sizes = [3, 892], strides = [1, 1]} : vector<3x1024xbf16> to vector<3x892xbf16>
    %cst = arith.constant dense<0.000000e+00> : vector<6x892xf32>
    %8 = tpu.matmul %6, %7, %cst {dimension_numbers = #tpu.dot_dimension_numbers<[1], [0], [0], [1], [0, 0, 1, 1], [], []>} : vector<6x3xbf16>, vector<3x892xbf16>, vector<6x892xf32> -> vector<6x892xf32>
    %9 = arith.addf %4, %8 : vector<6x892xf32>
    %c1 = arith.constant 1 : index
    %c0_7 = arith.constant 0 : index
    %c0_8 = arith.constant 0 : index
    %10 = vector.load %arg2[%c1, %c0_7, %c0_8] : memref<25x6x3xbf16, #tpu.memory_space<vmem>>, vector<1x6x3xbf16>
    %11 = vector.shape_cast %10 : vector<1x6x3xbf16> to vector<6x3xbf16>
    %12 = vector.extract_strided_slice %1 {offsets = [0, 1], sizes = [3, 892], strides = [1, 1]} : vector<3x1024xbf16> to vector<3x892xbf16>
    %cst_9 = arith.constant dense<0.000000e+00> : vector<6x892xf32>
    %13 = tpu.matmul %11, %12, %cst_9 {dimension_numbers = #tpu.dot_dimension_numbers<[1], [0], [0], [1], [0, 0, 1, 1], [], []>} : vector<6x3xbf16>, vector<3x892xbf16>, vector<6x892xf32> -> vector<6x892xf32>
    %14 = arith.addf %9, %13 : vector<6x892xf32>
    %c2 = arith.constant 2 : index
    %c0_10 = arith.constant 0 : index
    %c0_11 = arith.constant 0 : index
    %15 = vector.load %arg2[%c2, %c0_10, %c0_11] : memref<25x6x3xbf16, #tpu.memory_space<vmem>>, vector<1x6x3xbf16>
    %16 = vector.shape_cast %15 : vector<1x6x3xbf16> to vector<6x3xbf16>
    %17 = vector.extract_strided_slice %1 {offsets = [0, 2], sizes = [3, 892], strides = [1, 1]} : vector<3x1024xbf16> to vector<3x892xbf16>
    %cst_12 = arith.constant dense<0.000000e+00> : vector<6x892xf32>
    %18 = tpu.matmul %16, %17, %cst_12 {dimension_numbers = #tpu.dot_dimension_numbers<[1], [0], [0], [1], [0, 0, 1, 1], [], []>} : vector<6x3xbf16>, vector<3x892xbf16>, vector<6x892xf32> -> vector<6x892xf32>
    %19 = arith.addf %14, %18 : vector<6x892xf32>
    %c3 = arith.constant 3 : index
    %c0_13 = arith.constant 0 : index
    %c0_14 = arith.constant 0 : index
    %20 = vector.load %arg2[%c3, %c0_13, %c0_14] : memref<25x6x3xbf16, #tpu.memory_space<vmem>>, vector<1x6x3xbf16>
    %21 = vector.shape_cast %20 : vector<1x6x3xbf16> to vector<6x3xbf16>
    %22 = vector.extract_strided_slice %1 {offsets = [0, 3], sizes = [3, 892], strides = [1, 1]} : vector<3x1024xbf16> to vector<3x892xbf16>
    %cst_15 = arith.constant dense<0.000000e+00> : vector<6x892xf32>
    %23 = tpu.matmul %21, %22, %cst_15 {dimension_numbers = #tpu.dot_dimension_numbers<[1], [0], [0], [1], [0, 0, 1, 1], [], []>} : vector<6x3xbf16>, vector<3x892xbf16>, vector<6x892xf32> -> vector<6x892xf32>
    %24 = arith.addf %19, %23 : vector<6x892xf32>
    %c4 = arith.constant 4 : index
    %c0_16 = arith.constant 0 : index
    %c0_17 = arith.constant 0 : index
    %25 = vector.load %arg2[%c4, %c0_16, %c0_17] : memref<25x6x3xbf16, #tpu.memory_space<vmem>>, vector<1x6x3xbf16>
    %26 = vector.shape_cast %25 : vector<1x6x3xbf16> to vector<6x3xbf16>
    %27 = vector.extract_strided_slice %1 {offsets = [0, 4], sizes = [3, 892], strides = [1, 1]} : vector<3x1024xbf16> to vector<3x892xbf16>
    %cst_18 = arith.constant dense<0.000000e+00> : vector<6x892xf32>
    %28 = tpu.matmul %26, %27, %cst_18 {dimension_numbers = #tpu.dot_dimension_numbers<[1], [0], [0], [1], [0, 0, 1, 1], [], []>} : vector<6x3xbf16>, vector<3x892xbf16>, vector<6x892xf32> -> vector<6x892xf32>
    %29 = arith.addf %24, %28 : vector<6x892xf32>
    %c5 = arith.constant 5 : index
    %c0_19 = arith.constant 0 : index
    %c0_20 = arith.constant 0 : index
    %30 = vector.load %arg2[%c5, %c0_19, %c0_20] : memref<25x6x3xbf16, #tpu.memory_space<vmem>>, vector<1x6x3xbf16>
    %31 = vector.shape_cast %30 : vector<1x6x3xbf16> to vector<6x3xbf16>
    %32 = vector.extract_strided_slice %1 {offsets = [0, 32], sizes = [3, 892], strides = [1, 1]} : vector<3x1024xbf16> to vector<3x892xbf16>
    %cst_21 = arith.constant dense<0.000000e+00> : vector<6x892xf32>
    %33 = tpu.matmul %31, %32, %cst_21 {dimension_numbers = #tpu.dot_dimension_numbers<[1], [0], [0], [1], [0, 0, 1, 1], [], []>} : vector<6x3xbf16>, vector<3x892xbf16>, vector<6x892xf32> -> vector<6x892xf32>
    %34 = arith.addf %29, %33 : vector<6x892xf32>
    %c6 = arith.constant 6 : index
    %c0_22 = arith.constant 0 : index
    %c0_23 = arith.constant 0 : index
    %35 = vector.load %arg2[%c6, %c0_22, %c0_23] : memref<25x6x3xbf16, #tpu.memory_space<vmem>>, vector<1x6x3xbf16>
    %36 = vector.shape_cast %35 : vector<1x6x3xbf16> to vector<6x3xbf16>
    %37 = vector.extract_strided_slice %1 {offsets = [0, 33], sizes = [3, 892], strides = [1, 1]} : vector<3x1024xbf16> to vector<3x892xbf16>
    %cst_24 = arith.constant dense<0.000000e+00> : vector<6x892xf32>
    %38 = tpu.matmul %36, %37, %cst_24 {dimension_numbers = #tpu.dot_dimension_numbers<[1], [0], [0], [1], [0, 0, 1, 1], [], []>} : vector<6x3xbf16>, vector<3x892xbf16>, vector<6x892xf32> -> vector<6x892xf32>
    %39 = arith.addf %34, %38 : vector<6x892xf32>
    %c7 = arith.constant 7 : index
    %c0_25 = arith.constant 0 : index
    %c0_26 = arith.constant 0 : index
    %40 = vector.load %arg2[%c7, %c0_25, %c0_26] : memref<25x6x3xbf16, #tpu.memory_space<vmem>>, vector<1x6x3xbf16>
    %41 = vector.shape_cast %40 : vector<1x6x3xbf16> to vector<6x3xbf16>
    %42 = vector.extract_strided_slice %1 {offsets = [0, 34], sizes = [3, 892], strides = [1, 1]} : vector<3x1024xbf16> to vector<3x892xbf16>
    %cst_27 = arith.constant dense<0.000000e+00> : vector<6x892xf32>
    %43 = tpu.matmul %41, %42, %cst_27 {dimension_numbers = #tpu.dot_dimension_numbers<[1], [0], [0], [1], [0, 0, 1, 1], [], []>} : vector<6x3xbf16>, vector<3x892xbf16>, vector<6x892xf32> -> vector<6x892xf32>
    %44 = arith.addf %39, %43 : vector<6x892xf32>
    %c8 = arith.constant 8 : index
    %c0_28 = arith.constant 0 : index
    %c0_29 = arith.constant 0 : index
    %45 = vector.load %arg2[%c8, %c0_28, %c0_29] : memref<25x6x3xbf16, #tpu.memory_space<vmem>>, vector<1x6x3xbf16>
    %46 = vector.shape_cast %45 : vector<1x6x3xbf16> to vector<6x3xbf16>
    %47 = vector.extract_strided_slice %1 {offsets = [0, 35], sizes = [3, 892], strides = [1, 1]} : vector<3x1024xbf16> to vector<3x892xbf16>
    %cst_30 = arith.constant dense<0.000000e+00> : vector<6x892xf32>
    %48 = tpu.matmul %46, %47, %cst_30 {dimension_numbers = #tpu.dot_dimension_numbers<[1], [0], [0], [1], [0, 0, 1, 1], [], []>} : vector<6x3xbf16>, vector<3x892xbf16>, vector<6x892xf32> -> vector<6x892xf32>
    %49 = arith.addf %44, %48 : vector<6x892xf32>
    %c9 = arith.constant 9 : index
    %c0_31 = arith.constant 0 : index
    %c0_32 = arith.constant 0 : index
    %50 = vector.load %arg2[%c9, %c0_31, %c0_32] : memref<25x6x3xbf16, #tpu.memory_space<vmem>>, vector<1x6x3xbf16>
    %51 = vector.shape_cast %50 : vector<1x6x3xbf16> to vector<6x3xbf16>
    %52 = vector.extract_strided_slice %1 {offsets = [0, 36], sizes = [3, 892], strides = [1, 1]} : vector<3x1024xbf16> to vector<3x892xbf16>
    %cst_33 = arith.constant dense<0.000000e+00> : vector<6x892xf32>
    %53 = tpu.matmul %51, %52, %cst_33 {dimension_numbers = #tpu.dot_dimension_numbers<[1], [0], [0], [1], [0, 0, 1, 1], [], []>} : vector<6x3xbf16>, vector<3x892xbf16>, vector<6x892xf32> -> vector<6x892xf32>
    %54 = arith.addf %49, %53 : vector<6x892xf32>
    %c10 = arith.constant 10 : index
    %c0_34 = arith.constant 0 : index
    %c0_35 = arith.constant 0 : index
    %55 = vector.load %arg2[%c10, %c0_34, %c0_35] : memref<25x6x3xbf16, #tpu.memory_space<vmem>>, vector<1x6x3xbf16>
    %56 = vector.shape_cast %55 : vector<1x6x3xbf16> to vector<6x3xbf16>
    %57 = vector.extract_strided_slice %1 {offsets = [0, 64], sizes = [3, 892], strides = [1, 1]} : vector<3x1024xbf16> to vector<3x892xbf16>
    %cst_36 = arith.constant dense<0.000000e+00> : vector<6x892xf32>
    %58 = tpu.matmul %56, %57, %cst_36 {dimension_numbers = #tpu.dot_dimension_numbers<[1], [0], [0], [1], [0, 0, 1, 1], [], []>} : vector<6x3xbf16>, vector<3x892xbf16>, vector<6x892xf32> -> vector<6x892xf32>
    %59 = arith.addf %54, %58 : vector<6x892xf32>
    %c11 = arith.constant 11 : index
    %c0_37 = arith.constant 0 : index
    %c0_38 = arith.constant 0 : index
    %60 = vector.load %arg2[%c11, %c0_37, %c0_38] : memref<25x6x3xbf16, #tpu.memory_space<vmem>>, vector<1x6x3xbf16>
    %61 = vector.shape_cast %60 : vector<1x6x3xbf16> to vector<6x3xbf16>
    %62 = vector.extract_strided_slice %1 {offsets = [0, 65], sizes = [3, 892], strides = [1, 1]} : vector<3x1024xbf16> to vector<3x892xbf16>
    %cst_39 = arith.constant dense<0.000000e+00> : vector<6x892xf32>
    %63 = tpu.matmul %61, %62, %cst_39 {dimension_numbers = #tpu.dot_dimension_numbers<[1], [0], [0], [1], [0, 0, 1, 1], [], []>} : vector<6x3xbf16>, vector<3x892xbf16>, vector<6x892xf32> -> vector<6x892xf32>
    %64 = arith.addf %59, %63 : vector<6x892xf32>
    %c12 = arith.constant 12 : index
    %c0_40 = arith.constant 0 : index
    %c0_41 = arith.constant 0 : index
    %65 = vector.load %arg2[%c12, %c0_40, %c0_41] : memref<25x6x3xbf16, #tpu.memory_space<vmem>>, vector<1x6x3xbf16>
    %66 = vector.shape_cast %65 : vector<1x6x3xbf16> to vector<6x3xbf16>
    %67 = vector.extract_strided_slice %1 {offsets = [0, 66], sizes = [3, 892], strides = [1, 1]} : vector<3x1024xbf16> to vector<3x892xbf16>
    %cst_42 = arith.constant dense<0.000000e+00> : vector<6x892xf32>
    %68 = tpu.matmul %66, %67, %cst_42 {dimension_numbers = #tpu.dot_dimension_numbers<[1], [0], [0], [1], [0, 0, 1, 1], [], []>} : vector<6x3xbf16>, vector<3x892xbf16>, vector<6x892xf32> -> vector<6x892xf32>
    %69 = arith.addf %64, %68 : vector<6x892xf32>
    %c13 = arith.constant 13 : index
    %c0_43 = arith.constant 0 : index
    %c0_44 = arith.constant 0 : index
    %70 = vector.load %arg2[%c13, %c0_43, %c0_44] : memref<25x6x3xbf16, #tpu.memory_space<vmem>>, vector<1x6x3xbf16>
    %71 = vector.shape_cast %70 : vector<1x6x3xbf16> to vector<6x3xbf16>
    %72 = vector.extract_strided_slice %1 {offsets = [0, 67], sizes = [3, 892], strides = [1, 1]} : vector<3x1024xbf16> to vector<3x892xbf16>
    %cst_45 = arith.constant dense<0.000000e+00> : vector<6x892xf32>
    %73 = tpu.matmul %71, %72, %cst_45 {dimension_numbers = #tpu.dot_dimension_numbers<[1], [0], [0], [1], [0, 0, 1, 1], [], []>} : vector<6x3xbf16>, vector<3x892xbf16>, vector<6x892xf32> -> vector<6x892xf32>
    %74 = arith.addf %69, %73 : vector<6x892xf32>
    %c14 = arith.constant 14 : index
    %c0_46 = arith.constant 0 : index
    %c0_47 = arith.constant 0 : index
    %75 = vector.load %arg2[%c14, %c0_46, %c0_47] : memref<25x6x3xbf16, #tpu.memory_space<vmem>>, vector<1x6x3xbf16>
    %76 = vector.shape_cast %75 : vector<1x6x3xbf16> to vector<6x3xbf16>
    %77 = vector.extract_strided_slice %1 {offsets = [0, 68], sizes = [3, 892], strides = [1, 1]} : vector<3x1024xbf16> to vector<3x892xbf16>
    %cst_48 = arith.constant dense<0.000000e+00> : vector<6x892xf32>
    %78 = tpu.matmul %76, %77, %cst_48 {dimension_numbers = #tpu.dot_dimension_numbers<[1], [0], [0], [1], [0, 0, 1, 1], [], []>} : vector<6x3xbf16>, vector<3x892xbf16>, vector<6x892xf32> -> vector<6x892xf32>
    %79 = arith.addf %74, %78 : vector<6x892xf32>
    %c15 = arith.constant 15 : index
    %c0_49 = arith.constant 0 : index
    %c0_50 = arith.constant 0 : index
    %80 = vector.load %arg2[%c15, %c0_49, %c0_50] : memref<25x6x3xbf16, #tpu.memory_space<vmem>>, vector<1x6x3xbf16>
    %81 = vector.shape_cast %80 : vector<1x6x3xbf16> to vector<6x3xbf16>
    %82 = vector.extract_strided_slice %1 {offsets = [0, 96], sizes = [3, 892], strides = [1, 1]} : vector<3x1024xbf16> to vector<3x892xbf16>
    %cst_51 = arith.constant dense<0.000000e+00> : vector<6x892xf32>
    %83 = tpu.matmul %81, %82, %cst_51 {dimension_numbers = #tpu.dot_dimension_numbers<[1], [0], [0], [1], [0, 0, 1, 1], [], []>} : vector<6x3xbf16>, vector<3x892xbf16>, vector<6x892xf32> -> vector<6x892xf32>
    %84 = arith.addf %79, %83 : vector<6x892xf32>
    %c16 = arith.constant 16 : index
    %c0_52 = arith.constant 0 : index
    %c0_53 = arith.constant 0 : index
    %85 = vector.load %arg2[%c16, %c0_52, %c0_53] : memref<25x6x3xbf16, #tpu.memory_space<vmem>>, vector<1x6x3xbf16>
    %86 = vector.shape_cast %85 : vector<1x6x3xbf16> to vector<6x3xbf16>
    %87 = vector.extract_strided_slice %1 {offsets = [0, 97], sizes = [3, 892], strides = [1, 1]} : vector<3x1024xbf16> to vector<3x892xbf16>
    %cst_54 = arith.constant dense<0.000000e+00> : vector<6x892xf32>
    %88 = tpu.matmul %86, %87, %cst_54 {dimension_numbers = #tpu.dot_dimension_numbers<[1], [0], [0], [1], [0, 0, 1, 1], [], []>} : vector<6x3xbf16>, vector<3x892xbf16>, vector<6x892xf32> -> vector<6x892xf32>
    %89 = arith.addf %84, %88 : vector<6x892xf32>
    %c17 = arith.constant 17 : index
    %c0_55 = arith.constant 0 : index
    %c0_56 = arith.constant 0 : index
    %90 = vector.load %arg2[%c17, %c0_55, %c0_56] : memref<25x6x3xbf16, #tpu.memory_space<vmem>>, vector<1x6x3xbf16>
    %91 = vector.shape_cast %90 : vector<1x6x3xbf16> to vector<6x3xbf16>
    %92 = vector.extract_strided_slice %1 {offsets = [0, 98], sizes = [3, 892], strides = [1, 1]} : vector<3x1024xbf16> to vector<3x892xbf16>
    %cst_57 = arith.constant dense<0.000000e+00> : vector<6x892xf32>
    %93 = tpu.matmul %91, %92, %cst_57 {dimension_numbers = #tpu.dot_dimension_numbers<[1], [0], [0], [1], [0, 0, 1, 1], [], []>} : vector<6x3xbf16>, vector<3x892xbf16>, vector<6x892xf32> -> vector<6x892xf32>
    %94 = arith.addf %89, %93 : vector<6x892xf32>
    %c18 = arith.constant 18 : index
    %c0_58 = arith.constant 0 : index
    %c0_59 = arith.constant 0 : index
    %95 = vector.load %arg2[%c18, %c0_58, %c0_59] : memref<25x6x3xbf16, #tpu.memory_space<vmem>>, vector<1x6x3xbf16>
    %96 = vector.shape_cast %95 : vector<1x6x3xbf16> to vector<6x3xbf16>
    %97 = vector.extract_strided_slice %1 {offsets = [0, 99], sizes = [3, 892], strides = [1, 1]} : vector<3x1024xbf16> to vector<3x892xbf16>
    %cst_60 = arith.constant dense<0.000000e+00> : vector<6x892xf32>
    %98 = tpu.matmul %96, %97, %cst_60 {dimension_numbers = #tpu.dot_dimension_numbers<[1], [0], [0], [1], [0, 0, 1, 1], [], []>} : vector<6x3xbf16>, vector<3x892xbf16>, vector<6x892xf32> -> vector<6x892xf32>
    %99 = arith.addf %94, %98 : vector<6x892xf32>
    %c19 = arith.constant 19 : index
    %c0_61 = arith.constant 0 : index
    %c0_62 = arith.constant 0 : index
    %100 = vector.load %arg2[%c19, %c0_61, %c0_62] : memref<25x6x3xbf16, #tpu.memory_space<vmem>>, vector<1x6x3xbf16>
    %101 = vector.shape_cast %100 : vector<1x6x3xbf16> to vector<6x3xbf16>
    %102 = vector.extract_strided_slice %1 {offsets = [0, 100], sizes = [3, 892], strides = [1, 1]} : vector<3x1024xbf16> to vector<3x892xbf16>
    %cst_63 = arith.constant dense<0.000000e+00> : vector<6x892xf32>
    %103 = tpu.matmul %101, %102, %cst_63 {dimension_numbers = #tpu.dot_dimension_numbers<[1], [0], [0], [1], [0, 0, 1, 1], [], []>} : vector<6x3xbf16>, vector<3x892xbf16>, vector<6x892xf32> -> vector<6x892xf32>
    %104 = arith.addf %99, %103 : vector<6x892xf32>
    %c20 = arith.constant 20 : index
    %c0_64 = arith.constant 0 : index
    %c0_65 = arith.constant 0 : index
    %105 = vector.load %arg2[%c20, %c0_64, %c0_65] : memref<25x6x3xbf16, #tpu.memory_space<vmem>>, vector<1x6x3xbf16>
    %106 = vector.shape_cast %105 : vector<1x6x3xbf16> to vector<6x3xbf16>
    %107 = vector.extract_strided_slice %1 {offsets = [0, 128], sizes = [3, 892], strides = [1, 1]} : vector<3x1024xbf16> to vector<3x892xbf16>
    %cst_66 = arith.constant dense<0.000000e+00> : vector<6x892xf32>
    %108 = tpu.matmul %106, %107, %cst_66 {dimension_numbers = #tpu.dot_dimension_numbers<[1], [0], [0], [1], [0, 0, 1, 1], [], []>} : vector<6x3xbf16>, vector<3x892xbf16>, vector<6x892xf32> -> vector<6x892xf32>
    %109 = arith.addf %104, %108 : vector<6x892xf32>
    %c21 = arith.constant 21 : index
    %c0_67 = arith.constant 0 : index
    %c0_68 = arith.constant 0 : index
    %110 = vector.load %arg2[%c21, %c0_67, %c0_68] : memref<25x6x3xbf16, #tpu.memory_space<vmem>>, vector<1x6x3xbf16>
    %111 = vector.shape_cast %110 : vector<1x6x3xbf16> to vector<6x3xbf16>
    %112 = vector.extract_strided_slice %1 {offsets = [0, 129], sizes = [3, 892], strides = [1, 1]} : vector<3x1024xbf16> to vector<3x892xbf16>
    %cst_69 = arith.constant dense<0.000000e+00> : vector<6x892xf32>
    %113 = tpu.matmul %111, %112, %cst_69 {dimension_numbers = #tpu.dot_dimension_numbers<[1], [0], [0], [1], [0, 0, 1, 1], [], []>} : vector<6x3xbf16>, vector<3x892xbf16>, vector<6x892xf32> -> vector<6x892xf32>
    %114 = arith.addf %109, %113 : vector<6x892xf32>
    %c22 = arith.constant 22 : index
    %c0_70 = arith.constant 0 : index
    %c0_71 = arith.constant 0 : index
    %115 = vector.load %arg2[%c22, %c0_70, %c0_71] : memref<25x6x3xbf16, #tpu.memory_space<vmem>>, vector<1x6x3xbf16>
    %116 = vector.shape_cast %115 : vector<1x6x3xbf16> to vector<6x3xbf16>
    %117 = vector.extract_strided_slice %1 {offsets = [0, 130], sizes = [3, 892], strides = [1, 1]} : vector<3x1024xbf16> to vector<3x892xbf16>
    %cst_72 = arith.constant dense<0.000000e+00> : vector<6x892xf32>
    %118 = tpu.matmul %116, %117, %cst_72 {dimension_numbers = #tpu.dot_dimension_numbers<[1], [0], [0], [1], [0, 0, 1, 1], [], []>} : vector<6x3xbf16>, vector<3x892xbf16>, vector<6x892xf32> -> vector<6x892xf32>
    %119 = arith.addf %114, %118 : vector<6x892xf32>
    %c23 = arith.constant 23 : index
    %c0_73 = arith.constant 0 : index
    %c0_74 = arith.constant 0 : index
    %120 = vector.load %arg2[%c23, %c0_73, %c0_74] : memref<25x6x3xbf16, #tpu.memory_space<vmem>>, vector<1x6x3xbf16>
    %121 = vector.shape_cast %120 : vector<1x6x3xbf16> to vector<6x3xbf16>
    %122 = vector.extract_strided_slice %1 {offsets = [0, 131], sizes = [3, 892], strides = [1, 1]} : vector<3x1024xbf16> to vector<3x892xbf16>
    %cst_75 = arith.constant dense<0.000000e+00> : vector<6x892xf32>
    %123 = tpu.matmul %121, %122, %cst_75 {dimension_numbers = #tpu.dot_dimension_numbers<[1], [0], [0], [1], [0, 0, 1, 1], [], []>} : vector<6x3xbf16>, vector<3x892xbf16>, vector<6x892xf32> -> vector<6x892xf32>
    %124 = arith.addf %119, %123 : vector<6x892xf32>
    %c24 = arith.constant 24 : index
    %c0_76 = arith.constant 0 : index
    %c0_77 = arith.constant 0 : index
    %125 = vector.load %arg2[%c24, %c0_76, %c0_77] : memref<25x6x3xbf16, #tpu.memory_space<vmem>>, vector<1x6x3xbf16>
    %126 = vector.shape_cast %125 : vector<1x6x3xbf16> to vector<6x3xbf16>
    %127 = vector.extract_strided_slice %1 {offsets = [0, 132], sizes = [3, 892], strides = [1, 1]} : vector<3x1024xbf16> to vector<3x892xbf16>
    %cst_78 = arith.constant dense<0.000000e+00> : vector<6x892xf32>
    %128 = tpu.matmul %126, %127, %cst_78 {dimension_numbers = #tpu.dot_dimension_numbers<[1], [0], [0], [1], [0, 0, 1, 1], [], []>} : vector<6x3xbf16>, vector<3x892xbf16>, vector<6x892xf32> -> vector<6x892xf32>
    %129 = arith.addf %124, %128 : vector<6x892xf32>
    %cst_79 = arith.constant 0.000000e+00 : f32
    %130 = vector.broadcast %cst_79 : f32 to vector<6x892xf32>
    %131 = arith.maximumf %129, %130 : vector<6x892xf32>
    %132 = vector.extract_strided_slice %131 {offsets = [0, 0], sizes = [6, 859], strides = [1, 1]} : vector<6x892xf32> to vector<6x859xf32>
    %133 = vector.extract_strided_slice %131 {offsets = [0, 1], sizes = [6, 859], strides = [1, 1]} : vector<6x892xf32> to vector<6x859xf32>
    %134 = arith.maximumf %132, %133 : vector<6x859xf32>
    %135 = vector.extract_strided_slice %131 {offsets = [0, 32], sizes = [6, 859], strides = [1, 1]} : vector<6x892xf32> to vector<6x859xf32>
    %136 = vector.extract_strided_slice %131 {offsets = [0, 33], sizes = [6, 859], strides = [1, 1]} : vector<6x892xf32> to vector<6x859xf32>
    %137 = arith.maximumf %135, %136 : vector<6x859xf32>
    %138 = arith.maximumf %134, %137 : vector<6x859xf32>
    %139 = arith.truncf %138 : vector<6x859xf32> to vector<6x859xbf16>
    %c0_80 = arith.constant 0 : index
    %c0_81 = arith.constant 0 : index
    %140 = vector.load %arg5[%c0_80, %c0_81] : memref<16x1xf32, #tpu.memory_space<vmem>>, vector<16x1xf32>
    %141 = vector.shape_cast %140 : vector<16x1xf32> to vector<16x1xf32>
    %142 = vector.broadcast %141 : vector<16x1xf32> to vector<16x595xf32>
    %c0_82 = arith.constant 0 : index
    %c0_83 = arith.constant 0 : index
    %c0_84 = arith.constant 0 : index
    %143 = vector.load %arg4[%c0_82, %c0_83, %c0_84] : memref<25x16x6xbf16, #tpu.memory_space<vmem>>, vector<1x16x6xbf16>
    %144 = vector.shape_cast %143 : vector<1x16x6xbf16> to vector<16x6xbf16>
    %145 = vector.extract_strided_slice %139 {offsets = [0, 0], sizes = [6, 595], strides = [1, 1]} : vector<6x859xbf16> to vector<6x595xbf16>
    %cst_85 = arith.constant dense<0.000000e+00> : vector<16x595xf32>
    %146 = tpu.matmul %144, %145, %cst_85 {dimension_numbers = #tpu.dot_dimension_numbers<[1], [0], [0], [1], [0, 0, 1, 1], [], []>} : vector<16x6xbf16>, vector<6x595xbf16>, vector<16x595xf32> -> vector<16x595xf32>
    %147 = arith.addf %142, %146 : vector<16x595xf32>
    %c1_86 = arith.constant 1 : index
    %c0_87 = arith.constant 0 : index
    %c0_88 = arith.constant 0 : index
    %148 = vector.load %arg4[%c1_86, %c0_87, %c0_88] : memref<25x16x6xbf16, #tpu.memory_space<vmem>>, vector<1x16x6xbf16>
    %149 = vector.shape_cast %148 : vector<1x16x6xbf16> to vector<16x6xbf16>
    %150 = vector.extract_strided_slice %139 {offsets = [0, 2], sizes = [6, 595], strides = [1, 1]} : vector<6x859xbf16> to vector<6x595xbf16>
    %cst_89 = arith.constant dense<0.000000e+00> : vector<16x595xf32>
    %151 = tpu.matmul %149, %150, %cst_89 {dimension_numbers = #tpu.dot_dimension_numbers<[1], [0], [0], [1], [0, 0, 1, 1], [], []>} : vector<16x6xbf16>, vector<6x595xbf16>, vector<16x595xf32> -> vector<16x595xf32>
    %152 = arith.addf %147, %151 : vector<16x595xf32>
    %c2_90 = arith.constant 2 : index
    %c0_91 = arith.constant 0 : index
    %c0_92 = arith.constant 0 : index
    %153 = vector.load %arg4[%c2_90, %c0_91, %c0_92] : memref<25x16x6xbf16, #tpu.memory_space<vmem>>, vector<1x16x6xbf16>
    %154 = vector.shape_cast %153 : vector<1x16x6xbf16> to vector<16x6xbf16>
    %155 = vector.extract_strided_slice %139 {offsets = [0, 4], sizes = [6, 595], strides = [1, 1]} : vector<6x859xbf16> to vector<6x595xbf16>
    %cst_93 = arith.constant dense<0.000000e+00> : vector<16x595xf32>
    %156 = tpu.matmul %154, %155, %cst_93 {dimension_numbers = #tpu.dot_dimension_numbers<[1], [0], [0], [1], [0, 0, 1, 1], [], []>} : vector<16x6xbf16>, vector<6x595xbf16>, vector<16x595xf32> -> vector<16x595xf32>
    %157 = arith.addf %152, %156 : vector<16x595xf32>
    %c3_94 = arith.constant 3 : index
    %c0_95 = arith.constant 0 : index
    %c0_96 = arith.constant 0 : index
    %158 = vector.load %arg4[%c3_94, %c0_95, %c0_96] : memref<25x16x6xbf16, #tpu.memory_space<vmem>>, vector<1x16x6xbf16>
    %159 = vector.shape_cast %158 : vector<1x16x6xbf16> to vector<16x6xbf16>
    %160 = vector.extract_strided_slice %139 {offsets = [0, 6], sizes = [6, 595], strides = [1, 1]} : vector<6x859xbf16> to vector<6x595xbf16>
    %cst_97 = arith.constant dense<0.000000e+00> : vector<16x595xf32>
    %161 = tpu.matmul %159, %160, %cst_97 {dimension_numbers = #tpu.dot_dimension_numbers<[1], [0], [0], [1], [0, 0, 1, 1], [], []>} : vector<16x6xbf16>, vector<6x595xbf16>, vector<16x595xf32> -> vector<16x595xf32>
    %162 = arith.addf %157, %161 : vector<16x595xf32>
    %c4_98 = arith.constant 4 : index
    %c0_99 = arith.constant 0 : index
    %c0_100 = arith.constant 0 : index
    %163 = vector.load %arg4[%c4_98, %c0_99, %c0_100] : memref<25x16x6xbf16, #tpu.memory_space<vmem>>, vector<1x16x6xbf16>
    %164 = vector.shape_cast %163 : vector<1x16x6xbf16> to vector<16x6xbf16>
    %165 = vector.extract_strided_slice %139 {offsets = [0, 8], sizes = [6, 595], strides = [1, 1]} : vector<6x859xbf16> to vector<6x595xbf16>
    %cst_101 = arith.constant dense<0.000000e+00> : vector<16x595xf32>
    %166 = tpu.matmul %164, %165, %cst_101 {dimension_numbers = #tpu.dot_dimension_numbers<[1], [0], [0], [1], [0, 0, 1, 1], [], []>} : vector<16x6xbf16>, vector<6x595xbf16>, vector<16x595xf32> -> vector<16x595xf32>
    %167 = arith.addf %162, %166 : vector<16x595xf32>
    %c5_102 = arith.constant 5 : index
    %c0_103 = arith.constant 0 : index
    %c0_104 = arith.constant 0 : index
    %168 = vector.load %arg4[%c5_102, %c0_103, %c0_104] : memref<25x16x6xbf16, #tpu.memory_space<vmem>>, vector<1x16x6xbf16>
    %169 = vector.shape_cast %168 : vector<1x16x6xbf16> to vector<16x6xbf16>
    %170 = vector.extract_strided_slice %139 {offsets = [0, 64], sizes = [6, 595], strides = [1, 1]} : vector<6x859xbf16> to vector<6x595xbf16>
    %cst_105 = arith.constant dense<0.000000e+00> : vector<16x595xf32>
    %171 = tpu.matmul %169, %170, %cst_105 {dimension_numbers = #tpu.dot_dimension_numbers<[1], [0], [0], [1], [0, 0, 1, 1], [], []>} : vector<16x6xbf16>, vector<6x595xbf16>, vector<16x595xf32> -> vector<16x595xf32>
    %172 = arith.addf %167, %171 : vector<16x595xf32>
    %c6_106 = arith.constant 6 : index
    %c0_107 = arith.constant 0 : index
    %c0_108 = arith.constant 0 : index
    %173 = vector.load %arg4[%c6_106, %c0_107, %c0_108] : memref<25x16x6xbf16, #tpu.memory_space<vmem>>, vector<1x16x6xbf16>
    %174 = vector.shape_cast %173 : vector<1x16x6xbf16> to vector<16x6xbf16>
    %175 = vector.extract_strided_slice %139 {offsets = [0, 66], sizes = [6, 595], strides = [1, 1]} : vector<6x859xbf16> to vector<6x595xbf16>
    %cst_109 = arith.constant dense<0.000000e+00> : vector<16x595xf32>
    %176 = tpu.matmul %174, %175, %cst_109 {dimension_numbers = #tpu.dot_dimension_numbers<[1], [0], [0], [1], [0, 0, 1, 1], [], []>} : vector<16x6xbf16>, vector<6x595xbf16>, vector<16x595xf32> -> vector<16x595xf32>
    %177 = arith.addf %172, %176 : vector<16x595xf32>
    %c7_110 = arith.constant 7 : index
    %c0_111 = arith.constant 0 : index
    %c0_112 = arith.constant 0 : index
    %178 = vector.load %arg4[%c7_110, %c0_111, %c0_112] : memref<25x16x6xbf16, #tpu.memory_space<vmem>>, vector<1x16x6xbf16>
    %179 = vector.shape_cast %178 : vector<1x16x6xbf16> to vector<16x6xbf16>
    %180 = vector.extract_strided_slice %139 {offsets = [0, 68], sizes = [6, 595], strides = [1, 1]} : vector<6x859xbf16> to vector<6x595xbf16>
    %cst_113 = arith.constant dense<0.000000e+00> : vector<16x595xf32>
    %181 = tpu.matmul %179, %180, %cst_113 {dimension_numbers = #tpu.dot_dimension_numbers<[1], [0], [0], [1], [0, 0, 1, 1], [], []>} : vector<16x6xbf16>, vector<6x595xbf16>, vector<16x595xf32> -> vector<16x595xf32>
    %182 = arith.addf %177, %181 : vector<16x595xf32>
    %c8_114 = arith.constant 8 : index
    %c0_115 = arith.constant 0 : index
    %c0_116 = arith.constant 0 : index
    %183 = vector.load %arg4[%c8_114, %c0_115, %c0_116] : memref<25x16x6xbf16, #tpu.memory_space<vmem>>, vector<1x16x6xbf16>
    %184 = vector.shape_cast %183 : vector<1x16x6xbf16> to vector<16x6xbf16>
    %185 = vector.extract_strided_slice %139 {offsets = [0, 70], sizes = [6, 595], strides = [1, 1]} : vector<6x859xbf16> to vector<6x595xbf16>
    %cst_117 = arith.constant dense<0.000000e+00> : vector<16x595xf32>
    %186 = tpu.matmul %184, %185, %cst_117 {dimension_numbers = #tpu.dot_dimension_numbers<[1], [0], [0], [1], [0, 0, 1, 1], [], []>} : vector<16x6xbf16>, vector<6x595xbf16>, vector<16x595xf32> -> vector<16x595xf32>
    %187 = arith.addf %182, %186 : vector<16x595xf32>
    %c9_118 = arith.constant 9 : index
    %c0_119 = arith.constant 0 : index
    %c0_120 = arith.constant 0 : index
    %188 = vector.load %arg4[%c9_118, %c0_119, %c0_120] : memref<25x16x6xbf16, #tpu.memory_space<vmem>>, vector<1x16x6xbf16>
    %189 = vector.shape_cast %188 : vector<1x16x6xbf16> to vector<16x6xbf16>
    %190 = vector.extract_strided_slice %139 {offsets = [0, 72], sizes = [6, 595], strides = [1, 1]} : vector<6x859xbf16> to vector<6x595xbf16>
    %cst_121 = arith.constant dense<0.000000e+00> : vector<16x595xf32>
    %191 = tpu.matmul %189, %190, %cst_121 {dimension_numbers = #tpu.dot_dimension_numbers<[1], [0], [0], [1], [0, 0, 1, 1], [], []>} : vector<16x6xbf16>, vector<6x595xbf16>, vector<16x595xf32> -> vector<16x595xf32>
    %192 = arith.addf %187, %191 : vector<16x595xf32>
    %c10_122 = arith.constant 10 : index
    %c0_123 = arith.constant 0 : index
    %c0_124 = arith.constant 0 : index
    %193 = vector.load %arg4[%c10_122, %c0_123, %c0_124] : memref<25x16x6xbf16, #tpu.memory_space<vmem>>, vector<1x16x6xbf16>
    %194 = vector.shape_cast %193 : vector<1x16x6xbf16> to vector<16x6xbf16>
    %195 = vector.extract_strided_slice %139 {offsets = [0, 128], sizes = [6, 595], strides = [1, 1]} : vector<6x859xbf16> to vector<6x595xbf16>
    %cst_125 = arith.constant dense<0.000000e+00> : vector<16x595xf32>
    %196 = tpu.matmul %194, %195, %cst_125 {dimension_numbers = #tpu.dot_dimension_numbers<[1], [0], [0], [1], [0, 0, 1, 1], [], []>} : vector<16x6xbf16>, vector<6x595xbf16>, vector<16x595xf32> -> vector<16x595xf32>
    %197 = arith.addf %192, %196 : vector<16x595xf32>
    %c11_126 = arith.constant 11 : index
    %c0_127 = arith.constant 0 : index
    %c0_128 = arith.constant 0 : index
    %198 = vector.load %arg4[%c11_126, %c0_127, %c0_128] : memref<25x16x6xbf16, #tpu.memory_space<vmem>>, vector<1x16x6xbf16>
    %199 = vector.shape_cast %198 : vector<1x16x6xbf16> to vector<16x6xbf16>
    %200 = vector.extract_strided_slice %139 {offsets = [0, 130], sizes = [6, 595], strides = [1, 1]} : vector<6x859xbf16> to vector<6x595xbf16>
    %cst_129 = arith.constant dense<0.000000e+00> : vector<16x595xf32>
    %201 = tpu.matmul %199, %200, %cst_129 {dimension_numbers = #tpu.dot_dimension_numbers<[1], [0], [0], [1], [0, 0, 1, 1], [], []>} : vector<16x6xbf16>, vector<6x595xbf16>, vector<16x595xf32> -> vector<16x595xf32>
    %202 = arith.addf %197, %201 : vector<16x595xf32>
    %c12_130 = arith.constant 12 : index
    %c0_131 = arith.constant 0 : index
    %c0_132 = arith.constant 0 : index
    %203 = vector.load %arg4[%c12_130, %c0_131, %c0_132] : memref<25x16x6xbf16, #tpu.memory_space<vmem>>, vector<1x16x6xbf16>
    %204 = vector.shape_cast %203 : vector<1x16x6xbf16> to vector<16x6xbf16>
    %205 = vector.extract_strided_slice %139 {offsets = [0, 132], sizes = [6, 595], strides = [1, 1]} : vector<6x859xbf16> to vector<6x595xbf16>
    %cst_133 = arith.constant dense<0.000000e+00> : vector<16x595xf32>
    %206 = tpu.matmul %204, %205, %cst_133 {dimension_numbers = #tpu.dot_dimension_numbers<[1], [0], [0], [1], [0, 0, 1, 1], [], []>} : vector<16x6xbf16>, vector<6x595xbf16>, vector<16x595xf32> -> vector<16x595xf32>
    %207 = arith.addf %202, %206 : vector<16x595xf32>
    %c13_134 = arith.constant 13 : index
    %c0_135 = arith.constant 0 : index
    %c0_136 = arith.constant 0 : index
    %208 = vector.load %arg4[%c13_134, %c0_135, %c0_136] : memref<25x16x6xbf16, #tpu.memory_space<vmem>>, vector<1x16x6xbf16>
    %209 = vector.shape_cast %208 : vector<1x16x6xbf16> to vector<16x6xbf16>
    %210 = vector.extract_strided_slice %139 {offsets = [0, 134], sizes = [6, 595], strides = [1, 1]} : vector<6x859xbf16> to vector<6x595xbf16>
    %cst_137 = arith.constant dense<0.000000e+00> : vector<16x595xf32>
    %211 = tpu.matmul %209, %210, %cst_137 {dimension_numbers = #tpu.dot_dimension_numbers<[1], [0], [0], [1], [0, 0, 1, 1], [], []>} : vector<16x6xbf16>, vector<6x595xbf16>, vector<16x595xf32> -> vector<16x595xf32>
    %212 = arith.addf %207, %211 : vector<16x595xf32>
    %c14_138 = arith.constant 14 : index
    %c0_139 = arith.constant 0 : index
    %c0_140 = arith.constant 0 : index
    %213 = vector.load %arg4[%c14_138, %c0_139, %c0_140] : memref<25x16x6xbf16, #tpu.memory_space<vmem>>, vector<1x16x6xbf16>
    %214 = vector.shape_cast %213 : vector<1x16x6xbf16> to vector<16x6xbf16>
    %215 = vector.extract_strided_slice %139 {offsets = [0, 136], sizes = [6, 595], strides = [1, 1]} : vector<6x859xbf16> to vector<6x595xbf16>
    %cst_141 = arith.constant dense<0.000000e+00> : vector<16x595xf32>
    %216 = tpu.matmul %214, %215, %cst_141 {dimension_numbers = #tpu.dot_dimension_numbers<[1], [0], [0], [1], [0, 0, 1, 1], [], []>} : vector<16x6xbf16>, vector<6x595xbf16>, vector<16x595xf32> -> vector<16x595xf32>
    %217 = arith.addf %212, %216 : vector<16x595xf32>
    %c15_142 = arith.constant 15 : index
    %c0_143 = arith.constant 0 : index
    %c0_144 = arith.constant 0 : index
    %218 = vector.load %arg4[%c15_142, %c0_143, %c0_144] : memref<25x16x6xbf16, #tpu.memory_space<vmem>>, vector<1x16x6xbf16>
    %219 = vector.shape_cast %218 : vector<1x16x6xbf16> to vector<16x6xbf16>
    %220 = vector.extract_strided_slice %139 {offsets = [0, 192], sizes = [6, 595], strides = [1, 1]} : vector<6x859xbf16> to vector<6x595xbf16>
    %cst_145 = arith.constant dense<0.000000e+00> : vector<16x595xf32>
    %221 = tpu.matmul %219, %220, %cst_145 {dimension_numbers = #tpu.dot_dimension_numbers<[1], [0], [0], [1], [0, 0, 1, 1], [], []>} : vector<16x6xbf16>, vector<6x595xbf16>, vector<16x595xf32> -> vector<16x595xf32>
    %222 = arith.addf %217, %221 : vector<16x595xf32>
    %c16_146 = arith.constant 16 : index
    %c0_147 = arith.constant 0 : index
    %c0_148 = arith.constant 0 : index
    %223 = vector.load %arg4[%c16_146, %c0_147, %c0_148] : memref<25x16x6xbf16, #tpu.memory_space<vmem>>, vector<1x16x6xbf16>
    %224 = vector.shape_cast %223 : vector<1x16x6xbf16> to vector<16x6xbf16>
    %225 = vector.extract_strided_slice %139 {offsets = [0, 194], sizes = [6, 595], strides = [1, 1]} : vector<6x859xbf16> to vector<6x595xbf16>
    %cst_149 = arith.constant dense<0.000000e+00> : vector<16x595xf32>
    %226 = tpu.matmul %224, %225, %cst_149 {dimension_numbers = #tpu.dot_dimension_numbers<[1], [0], [0], [1], [0, 0, 1, 1], [], []>} : vector<16x6xbf16>, vector<6x595xbf16>, vector<16x595xf32> -> vector<16x595xf32>
    %227 = arith.addf %222, %226 : vector<16x595xf32>
    %c17_150 = arith.constant 17 : index
    %c0_151 = arith.constant 0 : index
    %c0_152 = arith.constant 0 : index
    %228 = vector.load %arg4[%c17_150, %c0_151, %c0_152] : memref<25x16x6xbf16, #tpu.memory_space<vmem>>, vector<1x16x6xbf16>
    %229 = vector.shape_cast %228 : vector<1x16x6xbf16> to vector<16x6xbf16>
    %230 = vector.extract_strided_slice %139 {offsets = [0, 196], sizes = [6, 595], strides = [1, 1]} : vector<6x859xbf16> to vector<6x595xbf16>
    %cst_153 = arith.constant dense<0.000000e+00> : vector<16x595xf32>
    %231 = tpu.matmul %229, %230, %cst_153 {dimension_numbers = #tpu.dot_dimension_numbers<[1], [0], [0], [1], [0, 0, 1, 1], [], []>} : vector<16x6xbf16>, vector<6x595xbf16>, vector<16x595xf32> -> vector<16x595xf32>
    %232 = arith.addf %227, %231 : vector<16x595xf32>
    %c18_154 = arith.constant 18 : index
    %c0_155 = arith.constant 0 : index
    %c0_156 = arith.constant 0 : index
    %233 = vector.load %arg4[%c18_154, %c0_155, %c0_156] : memref<25x16x6xbf16, #tpu.memory_space<vmem>>, vector<1x16x6xbf16>
    %234 = vector.shape_cast %233 : vector<1x16x6xbf16> to vector<16x6xbf16>
    %235 = vector.extract_strided_slice %139 {offsets = [0, 198], sizes = [6, 595], strides = [1, 1]} : vector<6x859xbf16> to vector<6x595xbf16>
    %cst_157 = arith.constant dense<0.000000e+00> : vector<16x595xf32>
    %236 = tpu.matmul %234, %235, %cst_157 {dimension_numbers = #tpu.dot_dimension_numbers<[1], [0], [0], [1], [0, 0, 1, 1], [], []>} : vector<16x6xbf16>, vector<6x595xbf16>, vector<16x595xf32> -> vector<16x595xf32>
    %237 = arith.addf %232, %236 : vector<16x595xf32>
    %c19_158 = arith.constant 19 : index
    %c0_159 = arith.constant 0 : index
    %c0_160 = arith.constant 0 : index
    %238 = vector.load %arg4[%c19_158, %c0_159, %c0_160] : memref<25x16x6xbf16, #tpu.memory_space<vmem>>, vector<1x16x6xbf16>
    %239 = vector.shape_cast %238 : vector<1x16x6xbf16> to vector<16x6xbf16>
    %240 = vector.extract_strided_slice %139 {offsets = [0, 200], sizes = [6, 595], strides = [1, 1]} : vector<6x859xbf16> to vector<6x595xbf16>
    %cst_161 = arith.constant dense<0.000000e+00> : vector<16x595xf32>
    %241 = tpu.matmul %239, %240, %cst_161 {dimension_numbers = #tpu.dot_dimension_numbers<[1], [0], [0], [1], [0, 0, 1, 1], [], []>} : vector<16x6xbf16>, vector<6x595xbf16>, vector<16x595xf32> -> vector<16x595xf32>
    %242 = arith.addf %237, %241 : vector<16x595xf32>
    %c20_162 = arith.constant 20 : index
    %c0_163 = arith.constant 0 : index
    %c0_164 = arith.constant 0 : index
    %243 = vector.load %arg4[%c20_162, %c0_163, %c0_164] : memref<25x16x6xbf16, #tpu.memory_space<vmem>>, vector<1x16x6xbf16>
    %244 = vector.shape_cast %243 : vector<1x16x6xbf16> to vector<16x6xbf16>
    %245 = vector.extract_strided_slice %139 {offsets = [0, 256], sizes = [6, 595], strides = [1, 1]} : vector<6x859xbf16> to vector<6x595xbf16>
    %cst_165 = arith.constant dense<0.000000e+00> : vector<16x595xf32>
    %246 = tpu.matmul %244, %245, %cst_165 {dimension_numbers = #tpu.dot_dimension_numbers<[1], [0], [0], [1], [0, 0, 1, 1], [], []>} : vector<16x6xbf16>, vector<6x595xbf16>, vector<16x595xf32> -> vector<16x595xf32>
    %247 = arith.addf %242, %246 : vector<16x595xf32>
    %c21_166 = arith.constant 21 : index
    %c0_167 = arith.constant 0 : index
    %c0_168 = arith.constant 0 : index
    %248 = vector.load %arg4[%c21_166, %c0_167, %c0_168] : memref<25x16x6xbf16, #tpu.memory_space<vmem>>, vector<1x16x6xbf16>
    %249 = vector.shape_cast %248 : vector<1x16x6xbf16> to vector<16x6xbf16>
    %250 = vector.extract_strided_slice %139 {offsets = [0, 258], sizes = [6, 595], strides = [1, 1]} : vector<6x859xbf16> to vector<6x595xbf16>
    %cst_169 = arith.constant dense<0.000000e+00> : vector<16x595xf32>
    %251 = tpu.matmul %249, %250, %cst_169 {dimension_numbers = #tpu.dot_dimension_numbers<[1], [0], [0], [1], [0, 0, 1, 1], [], []>} : vector<16x6xbf16>, vector<6x595xbf16>, vector<16x595xf32> -> vector<16x595xf32>
    %252 = arith.addf %247, %251 : vector<16x595xf32>
    %c22_170 = arith.constant 22 : index
    %c0_171 = arith.constant 0 : index
    %c0_172 = arith.constant 0 : index
    %253 = vector.load %arg4[%c22_170, %c0_171, %c0_172] : memref<25x16x6xbf16, #tpu.memory_space<vmem>>, vector<1x16x6xbf16>
    %254 = vector.shape_cast %253 : vector<1x16x6xbf16> to vector<16x6xbf16>
    %255 = vector.extract_strided_slice %139 {offsets = [0, 260], sizes = [6, 595], strides = [1, 1]} : vector<6x859xbf16> to vector<6x595xbf16>
    %cst_173 = arith.constant dense<0.000000e+00> : vector<16x595xf32>
    %256 = tpu.matmul %254, %255, %cst_173 {dimension_numbers = #tpu.dot_dimension_numbers<[1], [0], [0], [1], [0, 0, 1, 1], [], []>} : vector<16x6xbf16>, vector<6x595xbf16>, vector<16x595xf32> -> vector<16x595xf32>
    %257 = arith.addf %252, %256 : vector<16x595xf32>
    %c23_174 = arith.constant 23 : index
    %c0_175 = arith.constant 0 : index
    %c0_176 = arith.constant 0 : index
    %258 = vector.load %arg4[%c23_174, %c0_175, %c0_176] : memref<25x16x6xbf16, #tpu.memory_space<vmem>>, vector<1x16x6xbf16>
    %259 = vector.shape_cast %258 : vector<1x16x6xbf16> to vector<16x6xbf16>
    %260 = vector.extract_strided_slice %139 {offsets = [0, 262], sizes = [6, 595], strides = [1, 1]} : vector<6x859xbf16> to vector<6x595xbf16>
    %cst_177 = arith.constant dense<0.000000e+00> : vector<16x595xf32>
    %261 = tpu.matmul %259, %260, %cst_177 {dimension_numbers = #tpu.dot_dimension_numbers<[1], [0], [0], [1], [0, 0, 1, 1], [], []>} : vector<16x6xbf16>, vector<6x595xbf16>, vector<16x595xf32> -> vector<16x595xf32>
    %262 = arith.addf %257, %261 : vector<16x595xf32>
    %c24_178 = arith.constant 24 : index
    %c0_179 = arith.constant 0 : index
    %c0_180 = arith.constant 0 : index
    %263 = vector.load %arg4[%c24_178, %c0_179, %c0_180] : memref<25x16x6xbf16, #tpu.memory_space<vmem>>, vector<1x16x6xbf16>
    %264 = vector.shape_cast %263 : vector<1x16x6xbf16> to vector<16x6xbf16>
    %265 = vector.extract_strided_slice %139 {offsets = [0, 264], sizes = [6, 595], strides = [1, 1]} : vector<6x859xbf16> to vector<6x595xbf16>
    %cst_181 = arith.constant dense<0.000000e+00> : vector<16x595xf32>
    %266 = tpu.matmul %264, %265, %cst_181 {dimension_numbers = #tpu.dot_dimension_numbers<[1], [0], [0], [1], [0, 0, 1, 1], [], []>} : vector<16x6xbf16>, vector<6x595xbf16>, vector<16x595xf32> -> vector<16x595xf32>
    %267 = arith.addf %262, %266 : vector<16x595xf32>
    %cst_182 = arith.constant 0.000000e+00 : f32
    %268 = vector.broadcast %cst_182 : f32 to vector<16x595xf32>
    %269 = arith.maximumf %267, %268 : vector<16x595xf32>
    %270 = vector.extract_strided_slice %269 {offsets = [0, 0], sizes = [16, 529], strides = [1, 1]} : vector<16x595xf32> to vector<16x529xf32>
    %271 = vector.extract_strided_slice %269 {offsets = [0, 2], sizes = [16, 529], strides = [1, 1]} : vector<16x595xf32> to vector<16x529xf32>
    %272 = arith.maximumf %270, %271 : vector<16x529xf32>
    %273 = vector.extract_strided_slice %269 {offsets = [0, 64], sizes = [16, 529], strides = [1, 1]} : vector<16x595xf32> to vector<16x529xf32>
    %274 = vector.extract_strided_slice %269 {offsets = [0, 66], sizes = [16, 529], strides = [1, 1]} : vector<16x595xf32> to vector<16x529xf32>
    %275 = arith.maximumf %273, %274 : vector<16x529xf32>
    %276 = arith.maximumf %272, %275 : vector<16x529xf32>
    %c0_183 = arith.constant 0 : index
    %c0_184 = arith.constant 0 : index
    %277 = vector.load %arg6[%c0_183, %c0_184] : memref<529x25xf32, #tpu.memory_space<vmem>>, vector<529x25xf32>
    %cst_185 = arith.constant dense<0.000000e+00> : vector<16x25xf32>
    %278 = tpu.matmul %276, %277, %cst_185 {dimension_numbers = #tpu.dot_dimension_numbers<[1], [0], [0], [1], [0, 0, 1, 1], [], []>} : vector<16x529xf32>, vector<529x25xf32>, vector<16x25xf32> -> vector<16x25xf32>
    %c0_186 = arith.constant 0 : index
    %c0_187 = arith.constant 0 : index
    %279 = vector.load %arg8[%c0_186, %c0_187] : memref<1x120xf32, #tpu.memory_space<vmem>>, vector<1x120xf32>
    %280 = vector.extract_strided_slice %278 {offsets = [0, 0], sizes = [1, 25], strides = [1, 1]} : vector<16x25xf32> to vector<1x25xf32>
    %c0_188 = arith.constant 0 : index
    %c0_189 = arith.constant 0 : index
    %c0_190 = arith.constant 0 : index
    %281 = vector.load %arg7[%c0_188, %c0_189, %c0_190] : memref<16x25x120xf32, #tpu.memory_space<vmem>>, vector<1x25x120xf32>
    %282 = vector.shape_cast %281 : vector<1x25x120xf32> to vector<25x120xf32>
    %cst_191 = arith.constant dense<0.000000e+00> : vector<1x120xf32>
    %283 = tpu.matmul %280, %282, %cst_191 {dimension_numbers = #tpu.dot_dimension_numbers<[1], [0], [0], [1], [0, 0, 1, 1], [], []>} : vector<1x25xf32>, vector<25x120xf32>, vector<1x120xf32> -> vector<1x120xf32>
    %284 = arith.addf %279, %283 : vector<1x120xf32>
    %285 = vector.extract_strided_slice %278 {offsets = [1, 0], sizes = [1, 25], strides = [1, 1]} : vector<16x25xf32> to vector<1x25xf32>
    %c1_192 = arith.constant 1 : index
    %c0_193 = arith.constant 0 : index
    %c0_194 = arith.constant 0 : index
    %286 = vector.load %arg7[%c1_192, %c0_193, %c0_194] : memref<16x25x120xf32, #tpu.memory_space<vmem>>, vector<1x25x120xf32>
    %287 = vector.shape_cast %286 : vector<1x25x120xf32> to vector<25x120xf32>
    %cst_195 = arith.constant dense<0.000000e+00> : vector<1x120xf32>
    %288 = tpu.matmul %285, %287, %cst_195 {dimension_numbers = #tpu.dot_dimension_numbers<[1], [0], [0], [1], [0, 0, 1, 1], [], []>} : vector<1x25xf32>, vector<25x120xf32>, vector<1x120xf32> -> vector<1x120xf32>
    %289 = arith.addf %284, %288 : vector<1x120xf32>
    %290 = vector.extract_strided_slice %278 {offsets = [2, 0], sizes = [1, 25], strides = [1, 1]} : vector<16x25xf32> to vector<1x25xf32>
    %c2_196 = arith.constant 2 : index
    %c0_197 = arith.constant 0 : index
    %c0_198 = arith.constant 0 : index
    %291 = vector.load %arg7[%c2_196, %c0_197, %c0_198] : memref<16x25x120xf32, #tpu.memory_space<vmem>>, vector<1x25x120xf32>
    %292 = vector.shape_cast %291 : vector<1x25x120xf32> to vector<25x120xf32>
    %cst_199 = arith.constant dense<0.000000e+00> : vector<1x120xf32>
    %293 = tpu.matmul %290, %292, %cst_199 {dimension_numbers = #tpu.dot_dimension_numbers<[1], [0], [0], [1], [0, 0, 1, 1], [], []>} : vector<1x25xf32>, vector<25x120xf32>, vector<1x120xf32> -> vector<1x120xf32>
    %294 = arith.addf %289, %293 : vector<1x120xf32>
    %295 = vector.extract_strided_slice %278 {offsets = [3, 0], sizes = [1, 25], strides = [1, 1]} : vector<16x25xf32> to vector<1x25xf32>
    %c3_200 = arith.constant 3 : index
    %c0_201 = arith.constant 0 : index
    %c0_202 = arith.constant 0 : index
    %296 = vector.load %arg7[%c3_200, %c0_201, %c0_202] : memref<16x25x120xf32, #tpu.memory_space<vmem>>, vector<1x25x120xf32>
    %297 = vector.shape_cast %296 : vector<1x25x120xf32> to vector<25x120xf32>
    %cst_203 = arith.constant dense<0.000000e+00> : vector<1x120xf32>
    %298 = tpu.matmul %295, %297, %cst_203 {dimension_numbers = #tpu.dot_dimension_numbers<[1], [0], [0], [1], [0, 0, 1, 1], [], []>} : vector<1x25xf32>, vector<25x120xf32>, vector<1x120xf32> -> vector<1x120xf32>
    %299 = arith.addf %294, %298 : vector<1x120xf32>
    %300 = vector.extract_strided_slice %278 {offsets = [4, 0], sizes = [1, 25], strides = [1, 1]} : vector<16x25xf32> to vector<1x25xf32>
    %c4_204 = arith.constant 4 : index
    %c0_205 = arith.constant 0 : index
    %c0_206 = arith.constant 0 : index
    %301 = vector.load %arg7[%c4_204, %c0_205, %c0_206] : memref<16x25x120xf32, #tpu.memory_space<vmem>>, vector<1x25x120xf32>
    %302 = vector.shape_cast %301 : vector<1x25x120xf32> to vector<25x120xf32>
    %cst_207 = arith.constant dense<0.000000e+00> : vector<1x120xf32>
    %303 = tpu.matmul %300, %302, %cst_207 {dimension_numbers = #tpu.dot_dimension_numbers<[1], [0], [0], [1], [0, 0, 1, 1], [], []>} : vector<1x25xf32>, vector<25x120xf32>, vector<1x120xf32> -> vector<1x120xf32>
    %304 = arith.addf %299, %303 : vector<1x120xf32>
    %305 = vector.extract_strided_slice %278 {offsets = [5, 0], sizes = [1, 25], strides = [1, 1]} : vector<16x25xf32> to vector<1x25xf32>
    %c5_208 = arith.constant 5 : index
    %c0_209 = arith.constant 0 : index
    %c0_210 = arith.constant 0 : index
    %306 = vector.load %arg7[%c5_208, %c0_209, %c0_210] : memref<16x25x120xf32, #tpu.memory_space<vmem>>, vector<1x25x120xf32>
    %307 = vector.shape_cast %306 : vector<1x25x120xf32> to vector<25x120xf32>
    %cst_211 = arith.constant dense<0.000000e+00> : vector<1x120xf32>
    %308 = tpu.matmul %305, %307, %cst_211 {dimension_numbers = #tpu.dot_dimension_numbers<[1], [0], [0], [1], [0, 0, 1, 1], [], []>} : vector<1x25xf32>, vector<25x120xf32>, vector<1x120xf32> -> vector<1x120xf32>
    %309 = arith.addf %304, %308 : vector<1x120xf32>
    %310 = vector.extract_strided_slice %278 {offsets = [6, 0], sizes = [1, 25], strides = [1, 1]} : vector<16x25xf32> to vector<1x25xf32>
    %c6_212 = arith.constant 6 : index
    %c0_213 = arith.constant 0 : index
    %c0_214 = arith.constant 0 : index
    %311 = vector.load %arg7[%c6_212, %c0_213, %c0_214] : memref<16x25x120xf32, #tpu.memory_space<vmem>>, vector<1x25x120xf32>
    %312 = vector.shape_cast %311 : vector<1x25x120xf32> to vector<25x120xf32>
    %cst_215 = arith.constant dense<0.000000e+00> : vector<1x120xf32>
    %313 = tpu.matmul %310, %312, %cst_215 {dimension_numbers = #tpu.dot_dimension_numbers<[1], [0], [0], [1], [0, 0, 1, 1], [], []>} : vector<1x25xf32>, vector<25x120xf32>, vector<1x120xf32> -> vector<1x120xf32>
    %314 = arith.addf %309, %313 : vector<1x120xf32>
    %315 = vector.extract_strided_slice %278 {offsets = [7, 0], sizes = [1, 25], strides = [1, 1]} : vector<16x25xf32> to vector<1x25xf32>
    %c7_216 = arith.constant 7 : index
    %c0_217 = arith.constant 0 : index
    %c0_218 = arith.constant 0 : index
    %316 = vector.load %arg7[%c7_216, %c0_217, %c0_218] : memref<16x25x120xf32, #tpu.memory_space<vmem>>, vector<1x25x120xf32>
    %317 = vector.shape_cast %316 : vector<1x25x120xf32> to vector<25x120xf32>
    %cst_219 = arith.constant dense<0.000000e+00> : vector<1x120xf32>
    %318 = tpu.matmul %315, %317, %cst_219 {dimension_numbers = #tpu.dot_dimension_numbers<[1], [0], [0], [1], [0, 0, 1, 1], [], []>} : vector<1x25xf32>, vector<25x120xf32>, vector<1x120xf32> -> vector<1x120xf32>
    %319 = arith.addf %314, %318 : vector<1x120xf32>
    %320 = vector.extract_strided_slice %278 {offsets = [8, 0], sizes = [1, 25], strides = [1, 1]} : vector<16x25xf32> to vector<1x25xf32>
    %c8_220 = arith.constant 8 : index
    %c0_221 = arith.constant 0 : index
    %c0_222 = arith.constant 0 : index
    %321 = vector.load %arg7[%c8_220, %c0_221, %c0_222] : memref<16x25x120xf32, #tpu.memory_space<vmem>>, vector<1x25x120xf32>
    %322 = vector.shape_cast %321 : vector<1x25x120xf32> to vector<25x120xf32>
    %cst_223 = arith.constant dense<0.000000e+00> : vector<1x120xf32>
    %323 = tpu.matmul %320, %322, %cst_223 {dimension_numbers = #tpu.dot_dimension_numbers<[1], [0], [0], [1], [0, 0, 1, 1], [], []>} : vector<1x25xf32>, vector<25x120xf32>, vector<1x120xf32> -> vector<1x120xf32>
    %324 = arith.addf %319, %323 : vector<1x120xf32>
    %325 = vector.extract_strided_slice %278 {offsets = [9, 0], sizes = [1, 25], strides = [1, 1]} : vector<16x25xf32> to vector<1x25xf32>
    %c9_224 = arith.constant 9 : index
    %c0_225 = arith.constant 0 : index
    %c0_226 = arith.constant 0 : index
    %326 = vector.load %arg7[%c9_224, %c0_225, %c0_226] : memref<16x25x120xf32, #tpu.memory_space<vmem>>, vector<1x25x120xf32>
    %327 = vector.shape_cast %326 : vector<1x25x120xf32> to vector<25x120xf32>
    %cst_227 = arith.constant dense<0.000000e+00> : vector<1x120xf32>
    %328 = tpu.matmul %325, %327, %cst_227 {dimension_numbers = #tpu.dot_dimension_numbers<[1], [0], [0], [1], [0, 0, 1, 1], [], []>} : vector<1x25xf32>, vector<25x120xf32>, vector<1x120xf32> -> vector<1x120xf32>
    %329 = arith.addf %324, %328 : vector<1x120xf32>
    %330 = vector.extract_strided_slice %278 {offsets = [10, 0], sizes = [1, 25], strides = [1, 1]} : vector<16x25xf32> to vector<1x25xf32>
    %c10_228 = arith.constant 10 : index
    %c0_229 = arith.constant 0 : index
    %c0_230 = arith.constant 0 : index
    %331 = vector.load %arg7[%c10_228, %c0_229, %c0_230] : memref<16x25x120xf32, #tpu.memory_space<vmem>>, vector<1x25x120xf32>
    %332 = vector.shape_cast %331 : vector<1x25x120xf32> to vector<25x120xf32>
    %cst_231 = arith.constant dense<0.000000e+00> : vector<1x120xf32>
    %333 = tpu.matmul %330, %332, %cst_231 {dimension_numbers = #tpu.dot_dimension_numbers<[1], [0], [0], [1], [0, 0, 1, 1], [], []>} : vector<1x25xf32>, vector<25x120xf32>, vector<1x120xf32> -> vector<1x120xf32>
    %334 = arith.addf %329, %333 : vector<1x120xf32>
    %335 = vector.extract_strided_slice %278 {offsets = [11, 0], sizes = [1, 25], strides = [1, 1]} : vector<16x25xf32> to vector<1x25xf32>
    %c11_232 = arith.constant 11 : index
    %c0_233 = arith.constant 0 : index
    %c0_234 = arith.constant 0 : index
    %336 = vector.load %arg7[%c11_232, %c0_233, %c0_234] : memref<16x25x120xf32, #tpu.memory_space<vmem>>, vector<1x25x120xf32>
    %337 = vector.shape_cast %336 : vector<1x25x120xf32> to vector<25x120xf32>
    %cst_235 = arith.constant dense<0.000000e+00> : vector<1x120xf32>
    %338 = tpu.matmul %335, %337, %cst_235 {dimension_numbers = #tpu.dot_dimension_numbers<[1], [0], [0], [1], [0, 0, 1, 1], [], []>} : vector<1x25xf32>, vector<25x120xf32>, vector<1x120xf32> -> vector<1x120xf32>
    %339 = arith.addf %334, %338 : vector<1x120xf32>
    %340 = vector.extract_strided_slice %278 {offsets = [12, 0], sizes = [1, 25], strides = [1, 1]} : vector<16x25xf32> to vector<1x25xf32>
    %c12_236 = arith.constant 12 : index
    %c0_237 = arith.constant 0 : index
    %c0_238 = arith.constant 0 : index
    %341 = vector.load %arg7[%c12_236, %c0_237, %c0_238] : memref<16x25x120xf32, #tpu.memory_space<vmem>>, vector<1x25x120xf32>
    %342 = vector.shape_cast %341 : vector<1x25x120xf32> to vector<25x120xf32>
    %cst_239 = arith.constant dense<0.000000e+00> : vector<1x120xf32>
    %343 = tpu.matmul %340, %342, %cst_239 {dimension_numbers = #tpu.dot_dimension_numbers<[1], [0], [0], [1], [0, 0, 1, 1], [], []>} : vector<1x25xf32>, vector<25x120xf32>, vector<1x120xf32> -> vector<1x120xf32>
    %344 = arith.addf %339, %343 : vector<1x120xf32>
    %345 = vector.extract_strided_slice %278 {offsets = [13, 0], sizes = [1, 25], strides = [1, 1]} : vector<16x25xf32> to vector<1x25xf32>
    %c13_240 = arith.constant 13 : index
    %c0_241 = arith.constant 0 : index
    %c0_242 = arith.constant 0 : index
    %346 = vector.load %arg7[%c13_240, %c0_241, %c0_242] : memref<16x25x120xf32, #tpu.memory_space<vmem>>, vector<1x25x120xf32>
    %347 = vector.shape_cast %346 : vector<1x25x120xf32> to vector<25x120xf32>
    %cst_243 = arith.constant dense<0.000000e+00> : vector<1x120xf32>
    %348 = tpu.matmul %345, %347, %cst_243 {dimension_numbers = #tpu.dot_dimension_numbers<[1], [0], [0], [1], [0, 0, 1, 1], [], []>} : vector<1x25xf32>, vector<25x120xf32>, vector<1x120xf32> -> vector<1x120xf32>
    %349 = arith.addf %344, %348 : vector<1x120xf32>
    %350 = vector.extract_strided_slice %278 {offsets = [14, 0], sizes = [1, 25], strides = [1, 1]} : vector<16x25xf32> to vector<1x25xf32>
    %c14_244 = arith.constant 14 : index
    %c0_245 = arith.constant 0 : index
    %c0_246 = arith.constant 0 : index
    %351 = vector.load %arg7[%c14_244, %c0_245, %c0_246] : memref<16x25x120xf32, #tpu.memory_space<vmem>>, vector<1x25x120xf32>
    %352 = vector.shape_cast %351 : vector<1x25x120xf32> to vector<25x120xf32>
    %cst_247 = arith.constant dense<0.000000e+00> : vector<1x120xf32>
    %353 = tpu.matmul %350, %352, %cst_247 {dimension_numbers = #tpu.dot_dimension_numbers<[1], [0], [0], [1], [0, 0, 1, 1], [], []>} : vector<1x25xf32>, vector<25x120xf32>, vector<1x120xf32> -> vector<1x120xf32>
    %354 = arith.addf %349, %353 : vector<1x120xf32>
    %355 = vector.extract_strided_slice %278 {offsets = [15, 0], sizes = [1, 25], strides = [1, 1]} : vector<16x25xf32> to vector<1x25xf32>
    %c15_248 = arith.constant 15 : index
    %c0_249 = arith.constant 0 : index
    %c0_250 = arith.constant 0 : index
    %356 = vector.load %arg7[%c15_248, %c0_249, %c0_250] : memref<16x25x120xf32, #tpu.memory_space<vmem>>, vector<1x25x120xf32>
    %357 = vector.shape_cast %356 : vector<1x25x120xf32> to vector<25x120xf32>
    %cst_251 = arith.constant dense<0.000000e+00> : vector<1x120xf32>
    %358 = tpu.matmul %355, %357, %cst_251 {dimension_numbers = #tpu.dot_dimension_numbers<[1], [0], [0], [1], [0, 0, 1, 1], [], []>} : vector<1x25xf32>, vector<25x120xf32>, vector<1x120xf32> -> vector<1x120xf32>
    %359 = arith.addf %354, %358 : vector<1x120xf32>
    %cst_252 = arith.constant 0.000000e+00 : f32
    %360 = vector.broadcast %cst_252 : f32 to vector<1x120xf32>
    %361 = arith.maximumf %359, %360 : vector<1x120xf32>
    %c0_253 = arith.constant 0 : index
    %c0_254 = arith.constant 0 : index
    %362 = vector.load %arg9[%c0_253, %c0_254] : memref<120x84xf32, #tpu.memory_space<vmem>>, vector<120x84xf32>
    %cst_255 = arith.constant dense<0.000000e+00> : vector<1x84xf32>
    %363 = tpu.matmul %361, %362, %cst_255 {dimension_numbers = #tpu.dot_dimension_numbers<[1], [0], [0], [1], [0, 0, 1, 1], [], []>} : vector<1x120xf32>, vector<120x84xf32>, vector<1x84xf32> -> vector<1x84xf32>
    %c0_256 = arith.constant 0 : index
    %c0_257 = arith.constant 0 : index
    %364 = vector.load %arg10[%c0_256, %c0_257] : memref<1x84xf32, #tpu.memory_space<vmem>>, vector<1x84xf32>
    %365 = arith.addf %363, %364 : vector<1x84xf32>
    %cst_258 = arith.constant 0.000000e+00 : f32
    %366 = vector.broadcast %cst_258 : f32 to vector<1x84xf32>
    %367 = arith.maximumf %365, %366 : vector<1x84xf32>
    %c0_259 = arith.constant 0 : index
    %c0_260 = arith.constant 0 : index
    %368 = vector.load %arg11[%c0_259, %c0_260] : memref<84x128xf32, #tpu.memory_space<vmem>>, vector<84x128xf32>
    %cst_261 = arith.constant dense<0.000000e+00> : vector<1x128xf32>
    %369 = tpu.matmul %367, %368, %cst_261 {dimension_numbers = #tpu.dot_dimension_numbers<[1], [0], [0], [1], [0, 0, 1, 1], [], []>} : vector<1x84xf32>, vector<84x128xf32>, vector<1x128xf32> -> vector<1x128xf32>
    %c0_262 = arith.constant 0 : index
    %c0_263 = arith.constant 0 : index
    %370 = vector.load %arg12[%c0_262, %c0_263] : memref<1x128xf32, #tpu.memory_space<vmem>>, vector<1x128xf32>
    %371 = arith.addf %369, %370 : vector<1x128xf32>
    %c0_264 = arith.constant 0 : index
    %c0_265 = arith.constant 0 : index
    %c0_266 = arith.constant 0 : index
    %372 = vector.load %arg13[%c0_264, %c0_265, %c0_266] : memref<1x1x128xf32, #tpu.memory_space<vmem>>, vector<1x1x128xf32>
    %373 = vector.shape_cast %372 : vector<1x1x128xf32> to vector<1x128xf32>
    %374 = vector.shape_cast %371 : vector<1x128xf32> to vector<1x1x128xf32>
    tpu.vector_store %arg13[%c0_264, %c0_265, %c0_266], %374 {strides = array<i32>} : memref<1x1x128xf32, #tpu.memory_space<vmem>>, vector<1x1x128xf32>,
    return
  }
  func.func @transform_0(%arg0: i32) -> (i32, i32, i32) {
    %c0_i32 = arith.constant 0 : i32
    %c0_i32_0 = arith.constant 0 : i32
    %c0_i32_1 = arith.constant 0 : i32
    return %arg0, %c0_i32, %c0_i32_0 : i32, i32, i32
  }
  func.func @transform_1(%arg0: i32) -> (i32, i32, i32) {
    %c0_i32 = arith.constant 0 : i32
    %c0_i32_0 = arith.constant 0 : i32
    %c0_i32_1 = arith.constant 0 : i32
    %c0_i32_2 = arith.constant 0 : i32
    return %c0_i32, %c0_i32_0, %c0_i32_1 : i32, i32, i32
  }
  func.func @transform_2(%arg0: i32) -> (i32, i32) {
    %c0_i32 = arith.constant 0 : i32
    %c0_i32_0 = arith.constant 0 : i32
    %c0_i32_1 = arith.constant 0 : i32
    return %c0_i32, %c0_i32_0 : i32, i32
  }
  func.func @transform_3(%arg0: i32) -> (i32, i32, i32) {
    %c0_i32 = arith.constant 0 : i32
    %c0_i32_0 = arith.constant 0 : i32
    %c0_i32_1 = arith.constant 0 : i32
    %c0_i32_2 = arith.constant 0 : i32
    return %c0_i32, %c0_i32_0, %c0_i32_1 : i32, i32, i32
  }
  func.func @transform_4(%arg0: i32) -> (i32, i32) {
    %c0_i32 = arith.constant 0 : i32
    %c0_i32_0 = arith.constant 0 : i32
    %c0_i32_1 = arith.constant 0 : i32
    return %c0_i32, %c0_i32_0 : i32, i32
  }
  func.func @transform_5(%arg0: i32) -> (i32, i32) {
    %c0_i32 = arith.constant 0 : i32
    %c0_i32_0 = arith.constant 0 : i32
    %c0_i32_1 = arith.constant 0 : i32
    return %c0_i32, %c0_i32_0 : i32, i32
  }
  func.func @transform_6(%arg0: i32) -> (i32, i32, i32) {
    %c0_i32 = arith.constant 0 : i32
    %c0_i32_0 = arith.constant 0 : i32
    %c0_i32_1 = arith.constant 0 : i32
    %c0_i32_2 = arith.constant 0 : i32
    return %c0_i32, %c0_i32_0, %c0_i32_1 : i32, i32, i32
  }
  func.func @transform_7(%arg0: i32) -> (i32, i32) {
    %c0_i32 = arith.constant 0 : i32
    %c0_i32_0 = arith.constant 0 : i32
    %c0_i32_1 = arith.constant 0 : i32
    return %c0_i32, %c0_i32_0 : i32, i32
  }
  func.func @transform_8(%arg0: i32) -> (i32, i32) {
    %c0_i32 = arith.constant 0 : i32
    %c0_i32_0 = arith.constant 0 : i32
    %c0_i32_1 = arith.constant 0 : i32
    return %c0_i32, %c0_i32_0 : i32, i32
  }
  func.func @transform_9(%arg0: i32) -> (i32, i32) {
    %c0_i32 = arith.constant 0 : i32
    %c0_i32_0 = arith.constant 0 : i32
    %c0_i32_1 = arith.constant 0 : i32
    return %c0_i32, %c0_i32_0 : i32, i32
  }
  func.func @transform_10(%arg0: i32) -> (i32, i32) {
    %c0_i32 = arith.constant 0 : i32
    %c0_i32_0 = arith.constant 0 : i32
    %c0_i32_1 = arith.constant 0 : i32
    return %c0_i32, %c0_i32_0 : i32, i32
  }
  func.func @transform_11(%arg0: i32) -> (i32, i32) {
    %c0_i32 = arith.constant 0 : i32
    %c0_i32_0 = arith.constant 0 : i32
    %c0_i32_1 = arith.constant 0 : i32
    return %c0_i32, %c0_i32_0 : i32, i32
  }
  func.func @transform_12(%arg0: i32) -> (i32, i32, i32) {
    %c0_i32 = arith.constant 0 : i32
    %c0_i32_0 = arith.constant 0 : i32
    %c0_i32_1 = arith.constant 0 : i32
    return %arg0, %c0_i32, %c0_i32_0 : i32, i32, i32
  }
}

</mosaic_0001>

<bundles_post_ra>
// kernel: net_forward.1
= control target key start
LH: loop header
LB: loop body
LE: loop exit
PB: predicated region body
PF: predicated region fallthrough
CT: control target
= control target key end

     0   :  { %s17400_s0 = inlined_call_operand.vmem [shape: bf16[2,3,1024], index: 0, kind: input, shape index: {}]   ;;  %s17401_s1 = inlined_call_operand.vmem [shape: bf16[25,6,3], index: 1, kind: input, shape index: {}]   ;;  %s17402_s2 = inlined_call_operand.vmem [shape: f32[6,1], index: 2, kind: input, shape index: {}]   ;;  %s17403_s3 = inlined_call_operand.vmem [shape: bf16[25,16,6], index: 3, kind: input, shape index: {}]   ;;  %s17404_s4 = inlined_call_operand.vmem [shape: f32[16,1], index: 4, kind: input, shape index: {}]   ;;  %s17405_s5 = inlined_call_operand.vmem [shape: f32[529,25], index: 5, kind: input, shape index: {}]   ;;  %s17406_s6 = inlined_call_operand.vmem [shape: f32[16,25,120], index: 6, kind: input, shape index: {}]   ;;  %s17407_s7 = inlined_call_operand.vmem [shape: f32[1,120], index: 7, kind: input, shape index: {}]   ;;  %s17408_s8 = inlined_call_operand.vmem [shape: f32[120,84], index: 8, kind: input, shape index: {}]   ;;  %s17409_s9 = inlined_call_operand.vmem [shape: f32[1,84], index: 9, kind: input, shape index: {}]   ;;  %s17410_s10 = inlined_call_operand.vmem [shape: f32[84,128], index: 10, kind: input, shape index: {}]   ;;  %s17411_s11 = inlined_call_operand.vmem [shape: f32[1,128], index: 11, kind: input, shape index: {}]   ;;  %s17412_s12 = inlined_call_operand.hbm [shape: f32[2,1,128], index: 12, kind: output, shape index: {}]  }
   0x1   :  { %17439 = sst [smem:[#allocation15_spill]] %s17400_s0 }
   0x2   :  { %17440 = sst [smem:[#allocation16_spill]] %s17401_s1 }
   0x3   :  { %17 = vsyncpa [#allocation3], 0 }
   0x4   :  { %19 = vsyncpa [#allocation3 + $0x1], 0  ;;  %s14474_s21 = smov 0   ;;  %s14476_s22 = smov 0  }
   0x5   :  { %s14478_s23 = smov 0   ;;  %s14480_s24 = smov 0  }
   0x6 LB: > { %s14495_s25 = sadd.s32 4294967295, %s14376_s24   ;;  %s11953_s26 = sadd.s32 4294967294, %s14376_s24   ;;  %s14376_s24 = sphi %s14480_s24, %s17479_s24   ;;  %s14372_s23 = sphi %s14478_s23, %s17478_s23   ;;  %s14368_s22 = sphi %s14476_s22, %s17477_s22   ;;  %s14364_s21 = sphi %s14474_s21, %s17476_s21  }
   0x7   : > { %s14499_s27 = sadd.s32 1, %s14376_s24   ;;  %s289_s28 = sadd.s32 1, %s14372_s23 }
   0x8   : > { %s286_s29 = ssub.s32 %s14376_s24, %s14499_s27  ;;  %p299_p0 = scmp.ne.s32.totalorder %s14372_s23, %s14368_s22 }
   0x9   : > { %p287_p1 = scmp.eq.s32.totalorder %s286_s29, 0  ;;  %p300_p2 = scmp.eq.s32.totalorder %s14495_s25, 1 }
   0xa   : > { %p305_p3 = scmp.ne.s32.totalorder %s14368_s22, %s14364_s21  ;;  %p306_p4 = scmp.eq.s32.totalorder %s11953_s26, 1 }
   0xb   : > { %s14510_s30 = scalar_select %p287_p1, %s14372_s23, %s289_s28  }
   0xc   : > { %p14512_p5 = por %p300_p2, %p299_p0  ;;  %p14516_p6 = por %p306_p4, %p305_p3 }
   0xd   : > { %p11956_p7 = scmp.ge.s32.totalorder %s14376_s24, 1  ;;  %p365_p8 = scmp.lt.s32.totalorder %s14376_s24, 3 }
   0xf   : > { %p366_p9 = pnand %p11956_p7, %p365_p8 }
  0x11   : > { %369 = sbr.rel (%p366_p9) target bundleno = 3036 (0xbdc), region = 68 }
  0x18   : > { %p406_p10 = scmp.lt.s32.totalorder %s14495_s25, 1  ;;  %v427_v0 = vlaneseq  ;;  %v14378_v1 = vmov 1983009808   ;;  %vm460_vm0 = vcmask 1040384   ;;  %v17423_v4 = vmov 0   ;;  %s17443_s0 = sld [smem:[#allocation15_spill]] }
  0x19   : > { %v425_v2 = vunpack.c.l.s4 %v14378_v1  ;;  %517 = vmatprep.mubr.bf16.mxu0 %v17423_v4  ;;  %558 = vmatprep.mubr.bf16.mxu1 %v17423_v4  ;;  %vm461_vm1 = vcmask 1041408   ;;  %v14380_v6 = vmov 65535   ;;  %s14381_s20 = smov 127   ;;  %s17444_s1 = sld [smem:[#allocation16_spill]]  ;;  %vm456_vm2 = vcmask 23552  }
  0x1a   : > { %s407_s15 = scalar_select %p406_p10, %s14495_s25, 1  ;;  %v428_v3 = vshrl.u32 %v427_v0, 7  ;;  %14220 = vset.pattern.permute.xlu0 %v17423_v4  ;;  %14251 = vset.pattern.permute.xlu1 %v17423_v4  ;;  %v462_v7 = vsel %vm460_vm0, 4294967295, %v14380_v6  ;;  %v17429_v29 = vmov 0.0   ;;  %vm14383_vm3 = vmmov 0  }
  0x1b   : > { %v426_v5 = vunpack.c.0.s8 %v425_v2  ;;  %v14536_v14 = vsel %vm461_vm1, %v462_v7, 0  ;;  %s14384_s29 = smov 126   ;;  %s14387_s17 = smov 96   ;;  %vm671_vm4 = vcmask 1039360   ;;  %vm888_vm5 = vcmask 1031168  }
  0x1c   : > { %s12382_s16 = sshll.u32 %s407_s15, 4  ;;  %s14385_s15 = smov 125   ;;  %vm1105_vm6 = vcmask 1022976   ;;  %vm1322_vm7 = vcmask 1014784   ;;  %vm1542_vm8 = vcmask 785408   ;;  %vm1762_vm9 = vcmask 777216  }
  0x1d   : > { %v429_v8 = vsub.s32 %v426_v5, %v428_v3  ;;  %s14388_s18 = smov 95   ;;  %s14390_s26 = smov 93   ;;  %vm1982_vm10 = vcmask 769024   ;;  %vm2202_vm11 = vcmask 760832   ;;  %vm2422_vm12 = vcmask 752640  }
  0x1e   : > { %s410_s19 = scalar_lea.vmem %s17443_s0, %s12382_s16  ;;  %s17417_s16 = smov 124   ;;  %vm2642_vm13 = vcmask 523264   ;;  %vm2862_vm14 = vcmask 515072   ;;  %vm3082_vm15 = vcmask 506880   ;;  %vm3302_vm1 = vcmask 498688  }
  0x1f   : > { %v412_v9 = vld [vmem:[%s410_s19] sm:$0xff]  ;;  %v413_v10 = vld [vmem:[%s410_s19 + $0x8] sm:$0xff]  ;;  %s14389_s19 = smov 94   ;;  %s14391_s28 = smov 92  }
  0x20   : > { %v14532_v11 = vrot.slane %v412_v9, %v429_v8  ;;  %v14534_v12 = vrot.slane %v413_v10, %v429_v8  ;;  %v423_v13 = vcombine.high %v412_v9, %v412_v9  ;;  %v440_v20 = vcombine.high %v413_v10, %v413_v10  ;;  %v420_v22 = vld [vmem:[%s17444_s1] sm:$0x7]  ;;  %v11963_v43 = vld [vmem:[%s17444_s1 + $0x4] sm:$0x7]  ;;  %v11968_v6 = vld [vmem:[%s17444_s1 + $0x8] sm:$0x7] }
  0x22   : > { %657 = vrot.lane.b32.xlu1 %v14532_v11, %s14381_s20  ;;  %v14540_v15 = vrot.slane %v423_v13, %v429_v8  ;;  %v14544_v16 = vcombine.high %v14532_v11, %v14532_v11  ;;  %v14548_v17 = vcombine.high %v14534_v12, %v14534_v12  ;;  %v465_v18 = vand.u32 %v14536_v14, %v14532_v11 }
  0x23   : > { %v14582_v26 = vand.u32 %v14536_v14, %v14534_v12  ;;  %v14586_v27 = vrot.slane %v440_v20, %v429_v8 }
  0x24   : > { %659 = vrot.lane.b32.xlu0 %v14544_v16, %s14381_s20  ;;  %v14556_v19 = vcombine.high %v14540_v15, %v14540_v15  ;;  %v14560_v21 = vand.u32 %v14536_v14, %v14544_v16  ;;  %v14567_v23 = vand.u32 %v14536_v14, %v14540_v15  ;;  %v14571_v24 = vand.u32 %v14536_v14, %v14548_v17 }
  0x25   : > { %v14596_v28 = vand.u32 %v14536_v14, %v14586_v27  ;;  %v14667_v30 = vcombine.high %v14586_v27, %v14586_v27 }
  0x26   : > { %663 = vrot.lane.b32.xlu1 %v14556_v19, %s14381_s20  ;;  %485 = vmatprep.subr.bf16.mxu0 %v14560_v21  ;;  %v14578_v25 = vand.u32 %v14536_v14, %v14556_v19 }
  0x27   : > { %486 = vmatpush1.bf16.msra.mxu0 %v465_v18 }
  0x28   : > { %661 = vrot.lane.b32.xlu0 %v14540_v15, %s14381_s20  ;;  %526 = vmatprep.subr.bf16.mxu1 %v14578_v25 }
  0x29   : > { %527 = vmatpush1.bf16.msra.mxu1 %v14567_v23  ;;  %567 = vmatprep.subr.bf16.mxu0 %v14571_v24 }
  0x2a   : > { %667 = vrot.lane.b32.xlu1 %v14548_v17, %s14381_s20  ;;  %11959 = vmatmul.mubr.msk.bf16.vlgmr.msra.gmra.mrb[0].mxu0 %vm456_vm2, %v420_v22 }
  0x2b   : > { %568 = vmatpush1.bf16.msra.mxu0 %v14582_v26  ;;  %599 = vmatprep.mubr.bf16.mxu0 %v17423_v4 }
  0x2c   : > { %665 = vrot.lane.b32.xlu0 %v14534_v12, %s14381_s20  ;;  %11960 = vmatmul.mubr.msk.bf16.vlgmr.msra.gmra.mrb[0].mxu1 %vm456_vm2, %v420_v22 }
  0x2d   : > { %12672 = vmatprep.subr.bf16.mxu1 %v17429_v29  ;;  %12674 = vmatprep.mubr.msk.bf16.mxu1 %vm14383_vm3, %v17429_v29 }
  0x2e   : > { %876 = vrot.lane.b32.xlu1 %v14544_v16, %s14384_s29  ;;  %12673 = vmatpush3.bf16.msra.mxu1 %v14596_v28 }
  0x30   : > { %669 = vrot.lane.b32.xlu0 %v14586_v27, %s14381_s20 }
  0x32   : > { %874 = vrot.lane.b32.xlu1 %v14532_v11, %s14384_s29  ;;  %11961 = vmatmul.mubr.msk.bf16.vlgmr.msra.gmra.mrb[4].mxu0 %vm456_vm2, %v420_v22 }
  0x33   : > { %734 = vmatprep.mubr.bf16.mxu0 %v17423_v4 }
  0x34   : > { %878 = vrot.lane.b32.xlu0 %v14540_v15, %s14384_s29  ;;  %12675 = vmatmul.mubr.msk.bf16.vlgmr.msra.gmra.mrb[4].mxu1 %vm456_vm2, %v420_v22 }
  0x35   : > { %775 = vmatprep.mubr.bf16.mxu1 %v17423_v4 }
  0x36   : > { %882 = vrot.lane.b32.xlu1 %v14534_v12, %s14384_s29 }
  0x38   : > { %880 = vrot.lane.b32.xlu0 %v14556_v19, %s14384_s29 }
  0x3a   : > { %886 = vrot.lane.b32.xlu1 %v14586_v27, %s14384_s29 }
  0x3c   : > { %884 = vrot.lane.b32.xlu0 %v14548_v17, %s14384_s29 }
  0x3e   : > { %1095 = vrot.lane.b32.xlu1 %v14540_v15, %s14385_s15 }
  0x40   : > { %1093 = vrot.lane.b32.xlu0 %v14544_v16, %s14385_s15 }
  0x42   : > { %1097 = vrot.lane.b32.xlu1 %v14556_v19, %s14385_s15 }
  0x44   : > { %1091 = vrot.lane.b32.xlu0 %v14532_v11, %s14385_s15 }
  0x46   : > { %1101 = vrot.lane.b32.xlu1 %v14548_v17, %s14385_s15 }
  0x48   : > { %1099 = vrot.lane.b32.xlu0 %v14534_v12, %s14385_s15 }
  0x4a   : > { %1310 = vrot.lane.b32.xlu1 %v14544_v16, %s17417_s16 }
  0x4c   : > { %1103 = vrot.lane.b32.xlu0 %v14586_v27, %s14385_s15 }
  0x4e   : > { %1308 = vrot.lane.b32.xlu1 %v14532_v11, %s17417_s16 }
  0x50   : > { %1312 = vrot.lane.b32.xlu0 %v14540_v15, %s17417_s16 }
  0x52   : > { %1316 = vrot.lane.b32.xlu1 %v14534_v12, %s17417_s16 }
  0x54   : > { %1314 = vrot.lane.b32.xlu0 %v14556_v19, %s17417_s16 }
  0x56   : > { %1320 = vrot.lane.b32.xlu1 %v14586_v27, %s17417_s16 }
  0x58   : > { %1318 = vrot.lane.b32.xlu0 %v14548_v17, %s17417_s16 }
  0x5a   : > { %1530 = vrot.lane.b32.xlu1 %v14540_v15, %s14387_s17 }
  0x5c   : > { %1528 = vrot.lane.b32.xlu0 %v14544_v16, %s14387_s17 }
  0x5e   : > { %1532 = vrot.lane.b32.xlu1 %v14556_v19, %s14387_s17 }
  0x60   : > { %1526 = vrot.lane.b32.xlu0 %v14532_v11, %s14387_s17 }
  0x62   : > { %1536 = vrot.lane.b32.xlu1 %v14548_v17, %s14387_s17 }
  0x64   : > { %1534 = vrot.lane.b32.xlu0 %v14534_v12, %s14387_s17 }
  0x66   : > { %1540 = vrot.lane.b32.xlu1 %v14667_v30, %s14387_s17 }
  0x68   : > { %1538 = vrot.lane.b32.xlu0 %v14586_v27, %s14387_s17 }
  0x6a   : > { %1750 = vrot.lane.b32.xlu1 %v14540_v15, %s14388_s18 }
  0x6c   : > { %1748 = vrot.lane.b32.xlu0 %v14544_v16, %s14388_s18 }
  0x6e   : > { %1752 = vrot.lane.b32.xlu1 %v14556_v19, %s14388_s18 }
  0x70   : > { %1746 = vrot.lane.b32.xlu0 %v14532_v11, %s14388_s18 }
  0x72   : > { %1756 = vrot.lane.b32.xlu1 %v14548_v17, %s14388_s18 }
  0x74   : > { %1754 = vrot.lane.b32.xlu0 %v14534_v12, %s14388_s18 }
  0x76   : > { %1760 = vrot.lane.b32.xlu1 %v14667_v30, %s14388_s18 }
  0x78   : > { %1758 = vrot.lane.b32.xlu0 %v14586_v27, %s14388_s18  ;;  %s14404_s18 = smov 58  }
  0x7a   : > { %1970 = vrot.lane.b32.xlu1 %v14540_v15, %s14389_s19 }
  0x7c   : > { %1968 = vrot.lane.b32.xlu0 %v14544_v16, %s14389_s19 }
  0x7e   : > { %1972 = vrot.lane.b32.xlu1 %v14556_v19, %s14389_s19 }
  0x80   : > { %1966 = vrot.lane.b32.xlu0 %v14532_v11, %s14389_s19 }
  0x82   : > { %1976 = vrot.lane.b32.xlu1 %v14548_v17, %s14389_s19 }
  0x84   : > { %1974 = vrot.lane.b32.xlu0 %v14534_v12, %s14389_s19 }
  0x86   : > { %1980 = vrot.lane.b32.xlu1 %v14667_v30, %s14389_s19 }
  0x88   : > { %1978 = vrot.lane.b32.xlu0 %v14586_v27, %s14389_s19  ;;  %s14393_s19 = smov 63  }
  0x8a   : > { %2190 = vrot.lane.b32.xlu1 %v14540_v15, %s14390_s26 }
  0x8c   : > { %2188 = vrot.lane.b32.xlu0 %v14544_v16, %s14390_s26 }
  0x8e   : > { %2192 = vrot.lane.b32.xlu1 %v14556_v19, %s14390_s26 }
  0x90   : > { %2186 = vrot.lane.b32.xlu0 %v14532_v11, %s14390_s26 }
  0x92   : > { %2196 = vrot.lane.b32.xlu1 %v14548_v17, %s14390_s26 }
  0x94   : > { %v658_v31 = vpop.permute.xlu1 %657  ;;  %2194 = vrot.lane.b32.xlu0 %v14534_v12, %s14390_s26 }
  0x96   : > { %v660_v32 = vpop.permute.xlu0 %659  ;;  %2200 = vrot.lane.b32.xlu1 %v14667_v30, %s14390_s26 }
  0x97   : > { %v672_v34 = vsel %vm671_vm4, %v658_v31, %v660_v32 }
  0x98   : > { %2198 = vrot.lane.b32.xlu0 %v14586_v27, %s14390_s26  ;;  %v664_v33 = vpop.permute.xlu1 %663  ;;  %v682_v39 = vand.u32 %v672_v34, %v14536_v14  ;;  %s17437_s26 = smov 64  }
  0x9a   : > { %v662_v35 = vpop.permute.xlu0 %661  ;;  %2410 = vrot.lane.b32.xlu1 %v14540_v15, %s14391_s28 }
  0x9b   : > { %v673_v36 = vsel %vm671_vm4, %v660_v32, %v662_v35  ;;  %v674_v41 = vsel %vm671_vm4, %v662_v35, %v664_v33 }
  0x9c   : > { %2408 = vrot.lane.b32.xlu0 %v14544_v16, %s14391_s28  ;;  %v668_v37 = vpop.permute.xlu1 %667  ;;  %v14706_v38 = vand.u32 %v673_v36, %v14536_v14  ;;  %v14723_v46 = vand.u32 %v674_v41, %v14536_v14 }
  0x9e   : > { %702 = vmatprep.subr.bf16.mxu0 %v14706_v38  ;;  %v666_v40 = vpop.permute.xlu0 %665  ;;  %2412 = vrot.lane.b32.xlu1 %v14556_v19, %s14391_s28 }
  0x9f   : > { %v675_v42 = vsel %vm671_vm4, %v664_v33, %v666_v40  ;;  %703 = vmatpush1.bf16.msra.mxu0 %v682_v39  ;;  %v676_v47 = vsel %vm671_vm4, %v666_v40, %v668_v37 }
  0xa0   : > { %2406 = vrot.lane.b32.xlu0 %v14532_v11, %s14391_s28  ;;  %v877_v44 = vpop.permute.xlu1 %876  ;;  %v14720_v45 = vand.u32 %v675_v42, %v14536_v14  ;;  %v14742_v52 = vand.u32 %v676_v47, %v14536_v14 }
  0xa2   : > { %11964 = vmatmul.mubr.msk.bf16.vlgmr.msra.gmra.mrb[0].mxu0 %vm456_vm2, %v11963_v43  ;;  %v14727_v48 = vpop.permute.xlu0 %669  ;;  %2416 = vrot.lane.b32.xlu1 %v14548_v17, %s14391_s28 }
  0xa3   : > { %743 = vmatprep.subr.bf16.mxu1 %v14720_v45  ;;  %v677_v49 = vsel %vm671_vm4, %v668_v37, %v14727_v48  ;;  %816 = vmatprep.mubr.bf16.mxu0 %v17423_v4  ;;  %v700_v54 = vand.u32 %v14727_v48, %v14536_v14 }
  0xa4   : > { %744 = vmatpush1.bf16.msra.mxu1 %v14723_v46  ;;  %2414 = vrot.lane.b32.xlu0 %v14534_v12, %s14391_s28  ;;  %v875_v50 = vpop.permute.xlu1 %874  ;;  %v14739_v51 = vand.u32 %v677_v49, %v14536_v14 }
  0xa5   : > { %v889_v53 = vsel %vm888_vm5, %v875_v50, %v877_v44  ;;  %12678 = vmatprep.subr.bf16.mxu1 %v17429_v29 }
  0xa6   : > { %v879_v55 = vpop.permute.xlu0 %878  ;;  %2420 = vrot.lane.b32.xlu1 %v14667_v30, %s14391_s28  ;;  %784 = vmatprep.subr.bf16.mxu0 %v14739_v51  ;;  %v899_v57 = vand.u32 %v889_v53, %v14536_v14 }
  0xa7   : > { %v890_v56 = vsel %vm888_vm5, %v877_v44, %v879_v55  ;;  %11965 = vmatmul.mubr.msk.bf16.vlgmr.msra.gmra.mrb[0].mxu1 %vm456_vm2, %v11963_v43  ;;  %785 = vmatpush1.bf16.msra.mxu0 %v14742_v52  ;;  %v11973_v44 = vld [vmem:[%s17444_s1 + $0xc] sm:$0x7] }
  0xa8   : > { %12679 = vmatpush3.bf16.msra.mxu1 %v700_v54  ;;  %2418 = vrot.lane.b32.xlu0 %v14586_v27, %s14391_s28  ;;  %v883_v58 = vpop.permute.xlu1 %882  ;;  %v14758_v59 = vand.u32 %v890_v56, %v14536_v14  ;;  %s17413_s28 = smov 62  }
  0xa9   : > { %12680 = vmatprep.mubr.msk.bf16.mxu1 %vm14383_vm3, %v17429_v29 }
  0xaa   : > { %v881_v60 = vpop.permute.xlu0 %880  ;;  %2630 = vrot.lane.b32.xlu1 %v14540_v15, %s17437_s26  ;;  %11966 = vmatmul.mubr.msk.bf16.vlgmr.msra.gmra.mrb[4].mxu0 %vm456_vm2, %v11963_v43 }
  0xab   : > { %v891_v61 = vsel %vm888_vm5, %v879_v55, %v881_v60  ;;  %v892_v62 = vsel %vm888_vm5, %v881_v60, %v883_v58  ;;  %919 = vmatprep.subr.bf16.mxu0 %v14758_v59  ;;  %951 = vmatprep.mubr.bf16.mxu0 %v17423_v4 }
  0xac   : > { %v14770_v63 = vand.u32 %v891_v61, %v14536_v14  ;;  %920 = vmatpush1.bf16.msra.mxu0 %v899_v57  ;;  %2628 = vrot.lane.b32.xlu0 %v14544_v16, %s17437_s26  ;;  %v14774_v0 = vpop.permute.xlu1 %886  ;;  %v14777_v1 = vand.u32 %v892_v62, %v14536_v14 }
  0xad   : > { %v917_v18 = vand.u32 %v14774_v0, %v14536_v14 }
  0xae   : > { %v885_v2 = vpop.permute.xlu0 %884  ;;  %2632 = vrot.lane.b32.xlu1 %v14556_v19, %s17437_s26  ;;  %960 = vmatprep.subr.bf16.mxu1 %v14777_v1 }
  0xaf   : > { %v893_v3 = vsel %vm888_vm5, %v883_v58, %v885_v2  ;;  %v894_v5 = vsel %vm888_vm5, %v885_v2, %v14774_v0  ;;  %12681 = vmatmul.mubr.msk.bf16.vlgmr.msra.gmra.mrb[4].mxu1 %vm456_vm2, %v11963_v43 }
  0xb0   : > { %v14790_v7 = vand.u32 %v893_v3, %v14536_v14  ;;  %961 = vmatpush1.bf16.msra.mxu1 %v14770_v63  ;;  %2626 = vrot.lane.b32.xlu0 %v14532_v11, %s17437_s26  ;;  %v1096_v8 = vpop.permute.xlu1 %1095  ;;  %v14796_v9 = vand.u32 %v894_v5, %v14536_v14 }
  0xb1   : > { %992 = vmatprep.mubr.bf16.mxu1 %v17423_v4  ;;  %12684 = vmatprep.subr.bf16.mxu1 %v17429_v29 }
  0xb2   : > { %v1094_v10 = vpop.permute.xlu0 %1093  ;;  %2636 = vrot.lane.b32.xlu1 %v14548_v17, %s17437_s26  ;;  %11969 = vmatmul.mubr.msk.bf16.vlgmr.msra.gmra.mrb[0].mxu0 %vm456_vm2, %v11968_v6 }
  0xb3   : > { %v1107_v13 = vsel %vm1105_vm6, %v1094_v10, %v1096_v8  ;;  %1001 = vmatprep.subr.bf16.mxu0 %v14796_v9  ;;  %1033 = vmatprep.mubr.bf16.mxu0 %v17423_v4 }
  0xb4   : > { %1002 = vmatpush1.bf16.msra.mxu0 %v14790_v7  ;;  %2634 = vrot.lane.b32.xlu0 %v14534_v12, %s17437_s26  ;;  %v1098_v20 = vpop.permute.xlu1 %1097  ;;  %v14812_v22 = vand.u32 %v1107_v13, %v14536_v14 }
  0xb5   : > { %v1108_v35 = vsel %vm1105_vm6, %v1096_v8, %v1098_v20 }
  0xb6   : > { %v1092_v31 = vpop.permute.xlu0 %1091  ;;  %2640 = vrot.lane.b32.xlu1 %v14667_v30, %s17437_s26  ;;  %1136 = vmatprep.subr.bf16.mxu0 %v14812_v22  ;;  %v14831_v39 = vand.u32 %v1108_v35, %v14536_v14  ;;  %v11978_v35 = vld [vmem:[%s17444_s1 + $0x10] sm:$0x7] }
  0xb7   : > { %v1106_v32 = vsel %vm1105_vm6, %v1092_v31, %v1094_v10  ;;  %11970 = vmatmul.mubr.msk.bf16.vlgmr.msra.gmra.mrb[0].mxu1 %vm456_vm2, %v11968_v6 }
  0xb8   : > { %v1116_v33 = vand.u32 %v1106_v32, %v14536_v14  ;;  %12685 = vmatpush3.bf16.msra.mxu1 %v917_v18  ;;  %2638 = vrot.lane.b32.xlu0 %v14586_v27, %s17437_s26  ;;  %v1102_v34 = vpop.permute.xlu1 %1101 }
  0xb9   : > { %12686 = vmatprep.mubr.msk.bf16.mxu1 %vm14383_vm3, %v17429_v29 }
  0xba   : > { %v1100_v36 = vpop.permute.xlu0 %1099  ;;  %2850 = vrot.lane.b32.xlu1 %v14540_v15, %s14393_s19  ;;  %11971 = vmatmul.mubr.msk.bf16.vlgmr.msra.gmra.mrb[4].mxu0 %vm456_vm2, %v11968_v6 }
  0xbb   : > { %v1109_v37 = vsel %vm1105_vm6, %v1098_v20, %v1100_v36  ;;  %1137 = vmatpush1.bf16.msra.mxu0 %v1116_v33  ;;  %1168 = vmatprep.mubr.bf16.mxu0 %v17423_v4  ;;  %v1110_v42 = vsel %vm1105_vm6, %v1100_v36, %v1102_v34 }
  0xbc   : > { %2848 = vrot.lane.b32.xlu0 %v14544_v16, %s14393_s19  ;;  %v1311_v40 = vpop.permute.xlu1 %1310  ;;  %v14836_v41 = vand.u32 %v1109_v37, %v14536_v14  ;;  %v14851_v49 = vand.u32 %v1110_v42, %v14536_v14 }
  0xbe   : > { %v14839_v43 = vpop.permute.xlu0 %1103  ;;  %2852 = vrot.lane.b32.xlu1 %v14556_v19, %s14393_s19  ;;  %1177 = vmatprep.subr.bf16.mxu1 %v14836_v41 }
  0xbf   : > { %12687 = vmatmul.mubr.msk.bf16.vlgmr.msra.gmra.mrb[4].mxu1 %vm456_vm2, %v11968_v6  ;;  %v1111_v47 = vsel %vm1105_vm6, %v1102_v34, %v14839_v43  ;;  %v1134_v56 = vand.u32 %v14839_v43, %v14536_v14 }
  0xc0   : > { %1178 = vmatpush1.bf16.msra.mxu1 %v14831_v39  ;;  %2846 = vrot.lane.b32.xlu0 %v14532_v11, %s14393_s19  ;;  %v1309_v50 = vpop.permute.xlu1 %1308  ;;  %v14857_v53 = vand.u32 %v1111_v47, %v14536_v14 }
  0xc1   : > { %1209 = vmatprep.mubr.bf16.mxu1 %v17423_v4  ;;  %12690 = vmatprep.subr.bf16.mxu1 %v17429_v29  ;;  %v1323_v57 = vsel %vm1322_vm7, %v1309_v50, %v1311_v40 }
  0xc2   : > { %v1313_v54 = vpop.permute.xlu0 %1312  ;;  %2856 = vrot.lane.b32.xlu1 %v14548_v17, %s14393_s19  ;;  %11974 = vmatmul.mubr.msk.bf16.vlgmr.msra.gmra.mrb[0].mxu0 %vm456_vm2, %v11973_v44  ;;  %v1333_v62 = vand.u32 %v1323_v57, %v14536_v14 }
  0xc3   : > { %v1324_v55 = vsel %vm1322_vm7, %v1311_v40, %v1313_v54  ;;  %1218 = vmatprep.subr.bf16.mxu0 %v14857_v53  ;;  %1250 = vmatprep.mubr.bf16.mxu0 %v17423_v4 }
  0xc4   : > { %1219 = vmatpush1.bf16.msra.mxu0 %v14851_v49  ;;  %2854 = vrot.lane.b32.xlu0 %v14534_v12, %s14393_s19  ;;  %v1317_v58 = vpop.permute.xlu1 %1316  ;;  %v14874_v60 = vand.u32 %v1324_v55, %v14536_v14 }
  0xc6   : > { %v1315_v61 = vpop.permute.xlu0 %1314  ;;  %2860 = vrot.lane.b32.xlu1 %v14667_v30, %s14393_s19  ;;  %1353 = vmatprep.subr.bf16.mxu0 %v14874_v60 }
  0xc7   : > { %v1326_v2 = vsel %vm1322_vm7, %v1315_v61, %v1317_v58  ;;  %11975 = vmatmul.mubr.msk.bf16.vlgmr.msra.gmra.mrb[0].mxu1 %vm456_vm2, %v11973_v44  ;;  %v1325_v6 = vsel %vm1322_vm7, %v1313_v54, %v1315_v61 }
  0xc8   : > { %12691 = vmatpush3.bf16.msra.mxu1 %v1134_v56  ;;  %2858 = vrot.lane.b32.xlu0 %v14586_v27, %s14393_s19  ;;  %v14884_v3 = vpop.permute.xlu1 %1320  ;;  %v14887_v5 = vand.u32 %v1326_v2, %v14536_v14  ;;  %v14899_v13 = vand.u32 %v1325_v6, %v14536_v14  ;;  %s14395_s19 = smov 61  }
  0xc9   : > { %12692 = vmatprep.mubr.msk.bf16.mxu1 %vm14383_vm3, %v17429_v29  ;;  %v1351_v42 = vand.u32 %v14884_v3, %v14536_v14 }
  0xca   : > { %v1319_v8 = vpop.permute.xlu0 %1318  ;;  %3070 = vrot.lane.b32.xlu1 %v14540_v15, %s17413_s28  ;;  %11976 = vmatmul.mubr.msk.bf16.vlgmr.msra.gmra.mrb[4].mxu0 %vm456_vm2, %v11973_v44 }
  0xcb   : > { %v1328_v10 = vsel %vm1322_vm7, %v1319_v8, %v14884_v3  ;;  %1354 = vmatpush1.bf16.msra.mxu0 %v1333_v62  ;;  %1394 = vmatprep.subr.bf16.mxu1 %v14887_v5  ;;  %v1327_v18 = vsel %vm1322_vm7, %v1317_v58, %v1319_v8 }
  0xcc   : > { %3068 = vrot.lane.b32.xlu0 %v14544_v16, %s17413_s28  ;;  %v1531_v20 = vpop.permute.xlu1 %1530  ;;  %1385 = vmatprep.mubr.bf16.mxu0 %v17423_v4  ;;  %v14906_v31 = vand.u32 %v1328_v10, %v14536_v14  ;;  %v14912_v33 = vand.u32 %v1327_v18, %v14536_v14 }
  0xce   : > { %v1529_v32 = vpop.permute.xlu0 %1528  ;;  %3072 = vrot.lane.b32.xlu1 %v14556_v19, %s17413_s28  ;;  %1435 = vmatprep.subr.bf16.mxu0 %v14906_v31 }
  0xcf   : > { %v1544_v34 = vsel %vm1542_vm8, %v1529_v32, %v1531_v20  ;;  %12693 = vmatmul.mubr.msk.bf16.vlgmr.msra.gmra.mrb[4].mxu1 %vm456_vm2, %v11973_v44 }
  0xd0   : > { %1395 = vmatpush1.bf16.msra.mxu1 %v14899_v13  ;;  %3066 = vrot.lane.b32.xlu0 %v14532_v11, %s17413_s28  ;;  %v1533_v36 = vpop.permute.xlu1 %1532  ;;  %v1557_v37 = vand.u32 %v1544_v34, %v14536_v14  ;;  %v11983_v34 = vld [vmem:[%s17444_s1 + $0x14] sm:$0x7] }
  0xd1   : > { %1426 = vmatprep.mubr.bf16.mxu1 %v17423_v4  ;;  %12696 = vmatprep.subr.bf16.mxu1 %v17429_v29  ;;  %v1545_v58 = vsel %vm1542_vm8, %v1531_v20, %v1533_v36 }
  0xd2   : > { %v1527_v40 = vpop.permute.xlu0 %1526  ;;  %3076 = vrot.lane.b32.xlu1 %v14548_v17, %s17413_s28  ;;  %11979 = vmatmul.mubr.msk.bf16.vlgmr.msra.gmra.mrb[0].mxu0 %vm456_vm2, %v11978_v35  ;;  %v1560_v2 = vand.u32 %v1545_v58, %v14536_v14 }
  0xd3   : > { %1436 = vmatpush1.bf16.msra.mxu0 %v14912_v33  ;;  %1467 = vmatprep.mubr.bf16.mxu0 %v17423_v4  ;;  %v1543_v44 = vsel %vm1542_vm8, %v1527_v40, %v1529_v32 }
  0xd4   : > { %3074 = vrot.lane.b32.xlu0 %v14534_v12, %s17413_s28  ;;  %v1537_v47 = vpop.permute.xlu1 %1536  ;;  %1574 = vmatprep.subr.bf16.mxu0 %v1557_v37  ;;  %v1554_v54 = vand.u32 %v1543_v44, %v14536_v14 }
  0xd6   : > { %v1535_v50 = vpop.permute.xlu0 %1534  ;;  %3080 = vrot.lane.b32.xlu1 %v14667_v30, %s17413_s28 }
  0xd7   : > { %v1546_v55 = vsel %vm1542_vm8, %v1533_v36, %v1535_v50  ;;  %11980 = vmatmul.mubr.msk.bf16.vlgmr.msra.gmra.mrb[0].mxu1 %vm456_vm2, %v11978_v35  ;;  %v1547_v6 = vsel %vm1542_vm8, %v1535_v50, %v1537_v47 }
  0xd8   : > { %12697 = vmatpush3.bf16.msra.mxu1 %v1351_v42  ;;  %3078 = vrot.lane.b32.xlu0 %v14586_v27, %s17413_s28  ;;  %v1541_v56 = vpop.permute.xlu1 %1540  ;;  %v1563_v57 = vand.u32 %v1546_v55, %v14536_v14  ;;  %v1566_v20 = vand.u32 %v1547_v6, %v14536_v14  ;;  %s17415_s28 = smov 60  }
  0xd9   : > { %12698 = vmatprep.mubr.msk.bf16.mxu1 %vm14383_vm3, %v17429_v29 }
  0xda   : > { %v1539_v61 = vpop.permute.xlu0 %1538  ;;  %3290 = vrot.lane.b32.xlu1 %v14540_v15, %s14395_s19  ;;  %11981 = vmatmul.mubr.msk.bf16.vlgmr.msra.gmra.mrb[4].mxu0 %vm456_vm2, %v11978_v35 }
  0xdb   : > { %v1548_v62 = vsel %vm1542_vm8, %v1537_v47, %v1539_v61  ;;  %1575 = vmatpush1.bf16.msra.mxu0 %v1554_v54  ;;  %1615 = vmatprep.subr.bf16.mxu1 %v1563_v57  ;;  %v1549_v40 = vsel %vm1542_vm8, %v1539_v61, %v1541_v56 }
  0xdc   : > { %3288 = vrot.lane.b32.xlu0 %v14544_v16, %s14395_s19  ;;  %v1751_v8 = vpop.permute.xlu1 %1750  ;;  %1606 = vmatprep.mubr.bf16.mxu0 %v17423_v4  ;;  %v1569_v10 = vand.u32 %v1548_v62, %v14536_v14 }
  0xde   : > { %v1749_v18 = vpop.permute.xlu0 %1748  ;;  %3292 = vrot.lane.b32.xlu1 %v14556_v19, %s14395_s19  ;;  %1656 = vmatprep.subr.bf16.mxu0 %v1569_v10 }
  0xdf   : > { %v1764_v32 = vsel %vm1762_vm9, %v1749_v18, %v1751_v8  ;;  %12699 = vmatmul.mubr.msk.bf16.vlgmr.msra.gmra.mrb[4].mxu1 %vm456_vm2, %v11978_v35  ;;  %v1572_v35 = vand.u32 %v1549_v40, %v14536_v14 }
  0xe0   : > { %1616 = vmatpush1.bf16.msra.mxu1 %v1560_v2  ;;  %3286 = vrot.lane.b32.xlu0 %v14532_v11, %s14395_s19  ;;  %v1753_v36 = vpop.permute.xlu1 %1752  ;;  %v1777_v37 = vand.u32 %v1764_v32, %v14536_v14 }
  0xe1   : > { %1647 = vmatprep.mubr.bf16.mxu1 %v17423_v4  ;;  %12702 = vmatprep.subr.bf16.mxu1 %v17429_v29  ;;  %v1765_v58 = vsel %vm1762_vm9, %v1751_v8, %v1753_v36 }
  0xe2   : > { %v1747_v42 = vpop.permute.xlu0 %1746  ;;  %3296 = vrot.lane.b32.xlu1 %v14548_v17, %s14395_s19  ;;  %11984 = vmatmul.mubr.msk.bf16.vlgmr.msra.gmra.mrb[0].mxu0 %vm456_vm2, %v11983_v34  ;;  %v1780_v2 = vand.u32 %v1765_v58, %v14536_v14 }
  0xe3   : > { %1657 = vmatpush1.bf16.msra.mxu0 %v1566_v20  ;;  %1688 = vmatprep.mubr.bf16.mxu0 %v17423_v4  ;;  %v1763_v44 = vsel %vm1762_vm9, %v1747_v42, %v1749_v18 }
  0xe4   : > { %3294 = vrot.lane.b32.xlu0 %v14534_v12, %s14395_s19  ;;  %v1757_v47 = vpop.permute.xlu1 %1756  ;;  %1794 = vmatprep.subr.bf16.mxu0 %v1777_v37  ;;  %v1774_v54 = vand.u32 %v1763_v44, %v14536_v14 }
  0xe6   : > { %v1755_v50 = vpop.permute.xlu0 %1754  ;;  %3300 = vrot.lane.b32.xlu1 %v14667_v30, %s14395_s19 }
  0xe7   : > { %v1766_v55 = vsel %vm1762_vm9, %v1753_v36, %v1755_v50  ;;  %11985 = vmatmul.mubr.msk.bf16.vlgmr.msra.gmra.mrb[0].mxu1 %vm456_vm2, %v11983_v34  ;;  %v1767_v6 = vsel %vm1762_vm9, %v1755_v50, %v1757_v47  ;;  %v11988_v36 = vld [vmem:[%s17444_s1 + $0x18] sm:$0x7] }
  0xe8   : > { %12703 = vmatpush3.bf16.msra.mxu1 %v1572_v35  ;;  %3298 = vrot.lane.b32.xlu0 %v14586_v27, %s14395_s19  ;;  %v1761_v56 = vpop.permute.xlu1 %1760  ;;  %v1783_v57 = vand.u32 %v1766_v55, %v14536_v14  ;;  %v1786_v20 = vand.u32 %v1767_v6, %v14536_v14  ;;  %s14397_s19 = smov 32  }
  0xe9   : > { %12704 = vmatprep.mubr.msk.bf16.mxu1 %vm14383_vm3, %v17429_v29 }
  0xea   : > { %v1759_v61 = vpop.permute.xlu0 %1758  ;;  %3510 = vrot.lane.b32.xlu1 %v14540_v15, %s17415_s28  ;;  %11986 = vmatmul.mubr.msk.bf16.vlgmr.msra.gmra.mrb[4].mxu0 %vm456_vm2, %v11983_v34 }
  0xeb   : > { %v1768_v62 = vsel %vm1762_vm9, %v1757_v47, %v1759_v61  ;;  %1795 = vmatpush1.bf16.msra.mxu0 %v1774_v54  ;;  %1835 = vmatprep.subr.bf16.mxu1 %v1783_v57  ;;  %v1769_v42 = vsel %vm1762_vm9, %v1759_v61, %v1761_v56  ;;  %vm3522_vm9 = vcmask 490496  }
  0xec   : > { %3508 = vrot.lane.b32.xlu0 %v14544_v16, %s17415_s28  ;;  %v1971_v8 = vpop.permute.xlu1 %1970  ;;  %1826 = vmatprep.mubr.bf16.mxu0 %v17423_v4  ;;  %v1789_v10 = vand.u32 %v1768_v62, %v14536_v14 }
  0xee   : > { %v1969_v18 = vpop.permute.xlu0 %1968  ;;  %3512 = vrot.lane.b32.xlu1 %v14556_v19, %s17415_s28  ;;  %1876 = vmatprep.subr.bf16.mxu0 %v1789_v10 }
  0xef   : > { %v1984_v32 = vsel %vm1982_vm10, %v1969_v18, %v1971_v8  ;;  %12705 = vmatmul.mubr.msk.bf16.vlgmr.msra.gmra.mrb[4].mxu1 %vm456_vm2, %v11983_v34  ;;  %v1792_v34 = vand.u32 %v1769_v42, %v14536_v14 }
  0xf0   : > { %1836 = vmatpush1.bf16.msra.mxu1 %v1780_v2  ;;  %3506 = vrot.lane.b32.xlu0 %v14532_v11, %s17415_s28  ;;  %v1973_v37 = vpop.permute.xlu1 %1972  ;;  %v1997_v40 = vand.u32 %v1984_v32, %v14536_v14 }
  0xf1   : > { %1867 = vmatprep.mubr.bf16.mxu1 %v17423_v4  ;;  %12708 = vmatprep.subr.bf16.mxu1 %v17429_v29  ;;  %v1985_v58 = vsel %vm1982_vm10, %v1971_v8, %v1973_v37 }
  0xf2   : > { %v1967_v35 = vpop.permute.xlu0 %1966  ;;  %3516 = vrot.lane.b32.xlu1 %v14548_v17, %s17415_s28  ;;  %11989 = vmatmul.mubr.msk.bf16.vlgmr.msra.gmra.mrb[0].mxu0 %vm456_vm2, %v11988_v36  ;;  %v2000_v2 = vand.u32 %v1985_v58, %v14536_v14 }
  0xf3   : > { %1877 = vmatpush1.bf16.msra.mxu0 %v1786_v20  ;;  %1908 = vmatprep.mubr.bf16.mxu0 %v17423_v4  ;;  %v1983_v44 = vsel %vm1982_vm10, %v1967_v35, %v1969_v18 }
  0xf4   : > { %3514 = vrot.lane.b32.xlu0 %v14534_v12, %s17415_s28  ;;  %v1977_v47 = vpop.permute.xlu1 %1976  ;;  %2014 = vmatprep.subr.bf16.mxu0 %v1997_v40  ;;  %v1994_v54 = vand.u32 %v1983_v44, %v14536_v14 }
  0xf6   : > { %v1975_v50 = vpop.permute.xlu0 %1974  ;;  %3520 = vrot.lane.b32.xlu1 %v14667_v30, %s17415_s28 }
  0xf7   : > { %v1986_v55 = vsel %vm1982_vm10, %v1973_v37, %v1975_v50  ;;  %11990 = vmatmul.mubr.msk.bf16.vlgmr.msra.gmra.mrb[0].mxu1 %vm456_vm2, %v11988_v36  ;;  %v1987_v6 = vsel %vm1982_vm10, %v1975_v50, %v1977_v47  ;;  %v11993_v37 = vld [vmem:[%s17444_s1 + $0x1c] sm:$0x7] }
  0xf8   : > { %12709 = vmatpush3.bf16.msra.mxu1 %v1792_v34  ;;  %3518 = vrot.lane.b32.xlu0 %v14586_v27, %s17415_s28  ;;  %v1981_v56 = vpop.permute.xlu1 %1980  ;;  %v2003_v57 = vand.u32 %v1986_v55, %v14536_v14  ;;  %v2006_v20 = vand.u32 %v1987_v6, %v14536_v14  ;;  %s14398_s28 = smov 31  }
  0xf9   : > { %12710 = vmatprep.mubr.msk.bf16.mxu1 %vm14383_vm3, %v17429_v29 }
  0xfa   : > { %v1979_v61 = vpop.permute.xlu0 %1978  ;;  %3730 = vrot.lane.b32.xlu1 %v14540_v15, %s14397_s19  ;;  %11991 = vmatmul.mubr.msk.bf16.vlgmr.msra.gmra.mrb[4].mxu0 %vm456_vm2, %v11988_v36 }
  0xfb   : > { %v1988_v62 = vsel %vm1982_vm10, %v1977_v47, %v1979_v61  ;;  %2015 = vmatpush1.bf16.msra.mxu0 %v1994_v54  ;;  %2055 = vmatprep.subr.bf16.mxu1 %v2003_v57  ;;  %v1989_v35 = vsel %vm1982_vm10, %v1979_v61, %v1981_v56  ;;  %vm3742_vm10 = vcmask 261120  }
  0xfc   : > { %3728 = vrot.lane.b32.xlu0 %v14544_v16, %s14397_s19  ;;  %v2191_v8 = vpop.permute.xlu1 %2190  ;;  %2046 = vmatprep.mubr.bf16.mxu0 %v17423_v4  ;;  %v2009_v10 = vand.u32 %v1988_v62, %v14536_v14 }
  0xfe   : > { %v2189_v18 = vpop.permute.xlu0 %2188  ;;  %3732 = vrot.lane.b32.xlu1 %v14556_v19, %s14397_s19  ;;  %2096 = vmatprep.subr.bf16.mxu0 %v2009_v10 }
  0xff   : > { %v2204_v32 = vsel %vm2202_vm11, %v2189_v18, %v2191_v8  ;;  %12711 = vmatmul.mubr.msk.bf16.vlgmr.msra.gmra.mrb[4].mxu1 %vm456_vm2, %v11988_v36  ;;  %v2012_v36 = vand.u32 %v1989_v35, %v14536_v14 }
 0x100   : > { %2056 = vmatpush1.bf16.msra.mxu1 %v2000_v2  ;;  %3726 = vrot.lane.b32.xlu0 %v14532_v11, %s14397_s19  ;;  %v2193_v40 = vpop.permute.xlu1 %2192  ;;  %v2217_v42 = vand.u32 %v2204_v32, %v14536_v14 }
 0x101   : > { %2087 = vmatprep.mubr.bf16.mxu1 %v17423_v4  ;;  %12714 = vmatprep.subr.bf16.mxu1 %v17429_v29  ;;  %v2205_v58 = vsel %vm2202_vm11, %v2191_v8, %v2193_v40 }
 0x102   : > { %v2187_v34 = vpop.permute.xlu0 %2186  ;;  %3736 = vrot.lane.b32.xlu1 %v14548_v17, %s14397_s19  ;;  %11994 = vmatmul.mubr.msk.bf16.vlgmr.msra.gmra.mrb[0].mxu0 %vm456_vm2, %v11993_v37  ;;  %v2220_v2 = vand.u32 %v2205_v58, %v14536_v14 }
 0x103   : > { %2097 = vmatpush1.bf16.msra.mxu0 %v2006_v20  ;;  %2128 = vmatprep.mubr.bf16.mxu0 %v17423_v4  ;;  %v2203_v44 = vsel %vm2202_vm11, %v2187_v34, %v2189_v18 }
 0x104   : > { %3734 = vrot.lane.b32.xlu0 %v14534_v12, %s14397_s19  ;;  %v2197_v47 = vpop.permute.xlu1 %2196  ;;  %2234 = vmatprep.subr.bf16.mxu0 %v2217_v42  ;;  %v2214_v54 = vand.u32 %v2203_v44, %v14536_v14 }
 0x106   : > { %v2195_v50 = vpop.permute.xlu0 %2194  ;;  %3740 = vrot.lane.b32.xlu1 %v14667_v30, %s14397_s19 }
 0x107   : > { %v2206_v55 = vsel %vm2202_vm11, %v2193_v40, %v2195_v50  ;;  %11995 = vmatmul.mubr.msk.bf16.vlgmr.msra.gmra.mrb[0].mxu1 %vm456_vm2, %v11993_v37  ;;  %v2207_v6 = vsel %vm2202_vm11, %v2195_v50, %v2197_v47  ;;  %v11998_v40 = vld [vmem:[%s17444_s1 + $0x20] sm:$0x7] }
 0x108   : > { %12715 = vmatpush3.bf16.msra.mxu1 %v2012_v36  ;;  %3738 = vrot.lane.b32.xlu0 %v14586_v27, %s14397_s19  ;;  %v2201_v56 = vpop.permute.xlu1 %2200  ;;  %v2223_v57 = vand.u32 %v2206_v55, %v14536_v14  ;;  %v2226_v20 = vand.u32 %v2207_v6, %v14536_v14  ;;  %s14399_s19 = smov 30  }
 0x109   : > { %12716 = vmatprep.mubr.msk.bf16.mxu1 %vm14383_vm3, %v17429_v29 }
 0x10a   : > { %v2199_v61 = vpop.permute.xlu0 %2198  ;;  %3950 = vrot.lane.b32.xlu1 %v14540_v15, %s14398_s28  ;;  %11996 = vmatmul.mubr.msk.bf16.vlgmr.msra.gmra.mrb[4].mxu0 %vm456_vm2, %v11993_v37 }
 0x10b   : > { %v2208_v62 = vsel %vm2202_vm11, %v2197_v47, %v2199_v61  ;;  %2235 = vmatpush1.bf16.msra.mxu0 %v2214_v54  ;;  %2275 = vmatprep.subr.bf16.mxu1 %v2223_v57  ;;  %v2209_v34 = vsel %vm2202_vm11, %v2199_v61, %v2201_v56  ;;  %vm3962_vm11 = vcmask 252928  }
 0x10c   : > { %3948 = vrot.lane.b32.xlu0 %v14544_v16, %s14398_s28  ;;  %v2411_v8 = vpop.permute.xlu1 %2410  ;;  %2266 = vmatprep.mubr.bf16.mxu0 %v17423_v4  ;;  %v2229_v10 = vand.u32 %v2208_v62, %v14536_v14 }
 0x10e   : > { %v2409_v18 = vpop.permute.xlu0 %2408  ;;  %3952 = vrot.lane.b32.xlu1 %v14556_v19, %s14398_s28  ;;  %2316 = vmatprep.subr.bf16.mxu0 %v2229_v10 }
 0x10f   : > { %v2424_v32 = vsel %vm2422_vm12, %v2409_v18, %v2411_v8  ;;  %12717 = vmatmul.mubr.msk.bf16.vlgmr.msra.gmra.mrb[4].mxu1 %vm456_vm2, %v11993_v37  ;;  %v2232_v37 = vand.u32 %v2209_v34, %v14536_v14 }
 0x110   : > { %2276 = vmatpush1.bf16.msra.mxu1 %v2220_v2  ;;  %3946 = vrot.lane.b32.xlu0 %v14532_v11, %s14398_s28  ;;  %v2413_v42 = vpop.permute.xlu1 %2412  ;;  %v2437_v35 = vand.u32 %v2424_v32, %v14536_v14 }
 0x111   : > { %2307 = vmatprep.mubr.bf16.mxu1 %v17423_v4  ;;  %12720 = vmatprep.subr.bf16.mxu1 %v17429_v29  ;;  %v2425_v58 = vsel %vm2422_vm12, %v2411_v8, %v2413_v42 }
 0x112   : > { %v2407_v36 = vpop.permute.xlu0 %2406  ;;  %3956 = vrot.lane.b32.xlu1 %v14548_v17, %s14398_s28  ;;  %11999 = vmatmul.mubr.msk.bf16.vlgmr.msra.gmra.mrb[0].mxu0 %vm456_vm2, %v11998_v40  ;;  %v2440_v2 = vand.u32 %v2425_v58, %v14536_v14 }
 0x113   : > { %2317 = vmatpush1.bf16.msra.mxu0 %v2226_v20  ;;  %2348 = vmatprep.mubr.bf16.mxu0 %v17423_v4  ;;  %v2423_v44 = vsel %vm2422_vm12, %v2407_v36, %v2409_v18 }
 0x114   : > { %3954 = vrot.lane.b32.xlu0 %v14534_v12, %s14398_s28  ;;  %v2417_v47 = vpop.permute.xlu1 %2416  ;;  %2454 = vmatprep.subr.bf16.mxu0 %v2437_v35  ;;  %v2434_v54 = vand.u32 %v2423_v44, %v14536_v14 }
 0x116   : > { %v2415_v50 = vpop.permute.xlu0 %2414  ;;  %3960 = vrot.lane.b32.xlu1 %v14667_v30, %s14398_s28 }
 0x117   : > { %v2426_v55 = vsel %vm2422_vm12, %v2413_v42, %v2415_v50  ;;  %12000 = vmatmul.mubr.msk.bf16.vlgmr.msra.gmra.mrb[0].mxu1 %vm456_vm2, %v11998_v40  ;;  %v2427_v6 = vsel %vm2422_vm12, %v2415_v50, %v2417_v47  ;;  %v12003_v42 = vld [vmem:[%s17444_s1 + $0x24] sm:$0x7] }
 0x118   : > { %12721 = vmatpush3.bf16.msra.mxu1 %v2232_v37  ;;  %3958 = vrot.lane.b32.xlu0 %v14586_v27, %s14398_s28  ;;  %v2421_v56 = vpop.permute.xlu1 %2420  ;;  %v2443_v57 = vand.u32 %v2426_v55, %v14536_v14  ;;  %v2446_v20 = vand.u32 %v2427_v6, %v14536_v14  ;;  %s14400_s28 = smov 29  }
 0x119   : > { %12722 = vmatprep.mubr.msk.bf16.mxu1 %vm14383_vm3, %v17429_v29 }
 0x11a   : > { %v2419_v61 = vpop.permute.xlu0 %2418  ;;  %4170 = vrot.lane.b32.xlu1 %v14540_v15, %s14399_s19  ;;  %12001 = vmatmul.mubr.msk.bf16.vlgmr.msra.gmra.mrb[4].mxu0 %vm456_vm2, %v11998_v40 }
 0x11b   : > { %v2428_v62 = vsel %vm2422_vm12, %v2417_v47, %v2419_v61  ;;  %2455 = vmatpush1.bf16.msra.mxu0 %v2434_v54  ;;  %2495 = vmatprep.subr.bf16.mxu1 %v2443_v57  ;;  %v2429_v36 = vsel %vm2422_vm12, %v2419_v61, %v2421_v56  ;;  %vm4182_vm12 = vcmask 244736  }
 0x11c   : > { %4168 = vrot.lane.b32.xlu0 %v14544_v16, %s14399_s19  ;;  %v2631_v8 = vpop.permute.xlu1 %2630  ;;  %2486 = vmatprep.mubr.bf16.mxu0 %v17423_v4  ;;  %v2449_v10 = vand.u32 %v2428_v62, %v14536_v14 }
 0x11e   : > { %v2629_v18 = vpop.permute.xlu0 %2628  ;;  %4172 = vrot.lane.b32.xlu1 %v14556_v19, %s14399_s19  ;;  %2536 = vmatprep.subr.bf16.mxu0 %v2449_v10 }
 0x11f   : > { %v2644_v32 = vsel %vm2642_vm13, %v2629_v18, %v2631_v8  ;;  %12723 = vmatmul.mubr.msk.bf16.vlgmr.msra.gmra.mrb[4].mxu1 %vm456_vm2, %v11998_v40  ;;  %v2452_v40 = vand.u32 %v2429_v36, %v14536_v14 }
 0x120   : > { %2496 = vmatpush1.bf16.msra.mxu1 %v2440_v2  ;;  %4166 = vrot.lane.b32.xlu0 %v14532_v11, %s14399_s19  ;;  %v2633_v35 = vpop.permute.xlu1 %2632  ;;  %v2657_v34 = vand.u32 %v2644_v32, %v14536_v14 }
 0x121   : > { %2527 = vmatprep.mubr.bf16.mxu1 %v17423_v4  ;;  %12726 = vmatprep.subr.bf16.mxu1 %v17429_v29  ;;  %v2645_v58 = vsel %vm2642_vm13, %v2631_v8, %v2633_v35 }
 0x122   : > { %v2627_v37 = vpop.permute.xlu0 %2626  ;;  %4176 = vrot.lane.b32.xlu1 %v14548_v17, %s14399_s19  ;;  %12004 = vmatmul.mubr.msk.bf16.vlgmr.msra.gmra.mrb[0].mxu0 %vm456_vm2, %v12003_v42  ;;  %v2660_v2 = vand.u32 %v2645_v58, %v14536_v14 }
 0x123   : > { %2537 = vmatpush1.bf16.msra.mxu0 %v2446_v20  ;;  %2568 = vmatprep.mubr.bf16.mxu0 %v17423_v4  ;;  %v2643_v44 = vsel %vm2642_vm13, %v2627_v37, %v2629_v18 }
 0x124   : > { %4174 = vrot.lane.b32.xlu0 %v14534_v12, %s14399_s19  ;;  %v2637_v47 = vpop.permute.xlu1 %2636  ;;  %2674 = vmatprep.subr.bf16.mxu0 %v2657_v34  ;;  %v2654_v54 = vand.u32 %v2643_v44, %v14536_v14 }
 0x126   : > { %v2635_v50 = vpop.permute.xlu0 %2634  ;;  %4180 = vrot.lane.b32.xlu1 %v14667_v30, %s14399_s19 }
 0x127   : > { %v2646_v55 = vsel %vm2642_vm13, %v2633_v35, %v2635_v50  ;;  %12005 = vmatmul.mubr.msk.bf16.vlgmr.msra.gmra.mrb[0].mxu1 %vm456_vm2, %v12003_v42  ;;  %v2647_v6 = vsel %vm2642_vm13, %v2635_v50, %v2637_v47  ;;  %v12008_v35 = vld [vmem:[%s17444_s1 + $0x28] sm:$0x7] }
 0x128   : > { %12727 = vmatpush3.bf16.msra.mxu1 %v2452_v40  ;;  %4178 = vrot.lane.b32.xlu0 %v14586_v27, %s14399_s19  ;;  %v2641_v56 = vpop.permute.xlu1 %2640  ;;  %v2663_v57 = vand.u32 %v2646_v55, %v14536_v14  ;;  %v2666_v20 = vand.u32 %v2647_v6, %v14536_v14  ;;  %s14401_s19 = smov 28  }
 0x129   : > { %12728 = vmatprep.mubr.msk.bf16.mxu1 %vm14383_vm3, %v17429_v29 }
 0x12a   : > { %v2639_v61 = vpop.permute.xlu0 %2638  ;;  %4390 = vrot.lane.b32.xlu1 %v14540_v15, %s14400_s28  ;;  %12006 = vmatmul.mubr.msk.bf16.vlgmr.msra.gmra.mrb[4].mxu0 %vm456_vm2, %v12003_v42 }
 0x12b   : > { %v2648_v62 = vsel %vm2642_vm13, %v2637_v47, %v2639_v61  ;;  %2675 = vmatpush1.bf16.msra.mxu0 %v2654_v54  ;;  %2715 = vmatprep.subr.bf16.mxu1 %v2663_v57  ;;  %v2649_v37 = vsel %vm2642_vm13, %v2639_v61, %v2641_v56 }
 0x12c   : > { %4388 = vrot.lane.b32.xlu0 %v14544_v16, %s14400_s28  ;;  %v2851_v8 = vpop.permute.xlu1 %2850  ;;  %2706 = vmatprep.mubr.bf16.mxu0 %v17423_v4  ;;  %v2669_v10 = vand.u32 %v2648_v62, %v14536_v14 }
 0x12e   : > { %v2849_v18 = vpop.permute.xlu0 %2848  ;;  %4392 = vrot.lane.b32.xlu1 %v14556_v19, %s14400_s28  ;;  %2756 = vmatprep.subr.bf16.mxu0 %v2669_v10 }
 0x12f   : > { %v2864_v32 = vsel %vm2862_vm14, %v2849_v18, %v2851_v8  ;;  %12729 = vmatmul.mubr.msk.bf16.vlgmr.msra.gmra.mrb[4].mxu1 %vm456_vm2, %v12003_v42  ;;  %v2672_v42 = vand.u32 %v2649_v37, %v14536_v14 }
 0x130   : > { %2716 = vmatpush1.bf16.msra.mxu1 %v2660_v2  ;;  %4386 = vrot.lane.b32.xlu0 %v14532_v11, %s14400_s28  ;;  %v2853_v34 = vpop.permute.xlu1 %2852  ;;  %v2877_v36 = vand.u32 %v2864_v32, %v14536_v14 }
 0x131   : > { %2747 = vmatprep.mubr.bf16.mxu1 %v17423_v4  ;;  %12732 = vmatprep.subr.bf16.mxu1 %v17429_v29  ;;  %v2865_v58 = vsel %vm2862_vm14, %v2851_v8, %v2853_v34 }
 0x132   : > { %v2847_v40 = vpop.permute.xlu0 %2846  ;;  %4396 = vrot.lane.b32.xlu1 %v14548_v17, %s14400_s28  ;;  %12009 = vmatmul.mubr.msk.bf16.vlgmr.msra.gmra.mrb[0].mxu0 %vm456_vm2, %v12008_v35  ;;  %v2880_v2 = vand.u32 %v2865_v58, %v14536_v14 }
 0x133   : > { %2757 = vmatpush1.bf16.msra.mxu0 %v2666_v20  ;;  %2788 = vmatprep.mubr.bf16.mxu0 %v17423_v4  ;;  %v2863_v44 = vsel %vm2862_vm14, %v2847_v40, %v2849_v18 }
 0x134   : > { %4394 = vrot.lane.b32.xlu0 %v14534_v12, %s14400_s28  ;;  %v2857_v47 = vpop.permute.xlu1 %2856  ;;  %2894 = vmatprep.subr.bf16.mxu0 %v2877_v36  ;;  %v2874_v54 = vand.u32 %v2863_v44, %v14536_v14 }
 0x136   : > { %v2855_v50 = vpop.permute.xlu0 %2854  ;;  %4400 = vrot.lane.b32.xlu1 %v14667_v30, %s14400_s28 }
 0x137   : > { %v2866_v55 = vsel %vm2862_vm14, %v2853_v34, %v2855_v50  ;;  %12010 = vmatmul.mubr.msk.bf16.vlgmr.msra.gmra.mrb[0].mxu1 %vm456_vm2, %v12008_v35  ;;  %v2867_v6 = vsel %vm2862_vm14, %v2855_v50, %v2857_v47 }
 0x138   : > { %12733 = vmatpush3.bf16.msra.mxu1 %v2672_v42  ;;  %4398 = vrot.lane.b32.xlu0 %v14586_v27, %s14400_s28  ;;  %v2861_v56 = vpop.permute.xlu1 %2860  ;;  %v2883_v57 = vand.u32 %v2866_v55, %v14536_v14  ;;  %v2886_v18 = vand.u32 %v2867_v6, %v14536_v14  ;;  %s17422_s28 = smov 120  }
 0x139   : > { %12734 = vmatprep.mubr.msk.bf16.mxu1 %vm14383_vm3, %v17429_v29 }
 0x13a   : > { %v2859_v61 = vpop.permute.xlu0 %2858  ;;  %4610 = vrot.lane.b32.xlu1 %v14540_v15, %s14401_s19  ;;  %12011 = vmatmul.mubr.msk.bf16.vlgmr.msra.gmra.mrb[4].mxu0 %vm456_vm2, %v12008_v35 }
 0x13b   : > { %v2868_v62 = vsel %vm2862_vm14, %v2857_v47, %v2859_v61  ;;  %2895 = vmatpush1.bf16.msra.mxu0 %v2874_v54  ;;  %2935 = vmatprep.subr.bf16.mxu1 %v2883_v57 }
 0x13c   : > { %4608 = vrot.lane.b32.xlu0 %v14544_v16, %s14401_s19  ;;  %v3071_v8 = vpop.permute.xlu1 %3070  ;;  %2926 = vmatprep.mubr.bf16.mxu0 %v17423_v4  ;;  %v2889_v10 = vand.u32 %v2868_v62, %v14536_v14  ;;  %v12013_v16 = vld [vmem:[%s17444_s1 + $0x2c] sm:$0x7] }
 0x13e   : > { %v3069_v15 = vpop.permute.xlu0 %3068  ;;  %4612 = vrot.lane.b32.xlu1 %v14556_v19, %s14401_s19  ;;  %2976 = vmatprep.subr.bf16.mxu0 %v2889_v10  ;;  %v2869_v19 = vsel %vm2862_vm14, %v2859_v61, %v2861_v56  ;;  %vm4402_vm14 = vcmask 236544  }
 0x13f   : > { %v3084_v20 = vsel %vm3082_vm15, %v3069_v15, %v3071_v8  ;;  %12735 = vmatmul.mubr.msk.bf16.vlgmr.msra.gmra.mrb[4].mxu1 %vm456_vm2, %v12008_v35 }
 0x140   : > { %2936 = vmatpush1.bf16.msra.mxu1 %v2880_v2  ;;  %4606 = vrot.lane.b32.xlu0 %v14532_v11, %s14401_s19  ;;  %v3073_v32 = vpop.permute.xlu1 %3072  ;;  %v3097_v34 = vand.u32 %v3084_v20, %v14536_v14  ;;  %v2892_v11 = vand.u32 %v2869_v19, %v14536_v14  ;;  %v12018_v2 = vld [vmem:[%s17444_s1 + $0x30] sm:$0x7] }
 0x141   : > { %2967 = vmatprep.mubr.bf16.mxu1 %v17423_v4  ;;  %12738 = vmatprep.subr.bf16.mxu1 %v17429_v29 }
 0x142   : > { %v3067_v36 = vpop.permute.xlu0 %3066  ;;  %4616 = vrot.lane.b32.xlu1 %v14548_v17, %s14401_s19  ;;  %12014 = vmatmul.mubr.msk.bf16.vlgmr.msra.gmra.mrb[0].mxu0 %vm456_vm2, %v12013_v16 }
 0x143   : > { %2977 = vmatpush1.bf16.msra.mxu0 %v2886_v18  ;;  %3008 = vmatprep.mubr.bf16.mxu0 %v17423_v4  ;;  %v3083_v35 = vsel %vm3082_vm15, %v3067_v36, %v3069_v15 }
 0x144   : > { %4614 = vrot.lane.b32.xlu0 %v14534_v12, %s14401_s19  ;;  %v3077_v37 = vpop.permute.xlu1 %3076  ;;  %3114 = vmatprep.subr.bf16.mxu0 %v3097_v34  ;;  %v3094_v17 = vand.u32 %v3083_v35, %v14536_v14  ;;  %v3085_v12 = vsel %vm3082_vm15, %v3071_v8, %v3073_v32 }
 0x146   : > { %v3075_v40 = vpop.permute.xlu0 %3074  ;;  %4620 = vrot.lane.b32.xlu1 %v14667_v30, %s14401_s19 }
 0x147   : > { %v3086_v42 = vsel %vm3082_vm15, %v3073_v32, %v3075_v40  ;;  %12015 = vmatmul.mubr.msk.bf16.vlgmr.msra.gmra.mrb[0].mxu1 %vm456_vm2, %v12013_v16  ;;  %v3087_v55 = vsel %vm3082_vm15, %v3075_v40, %v3077_v37 }
 0x148   : > { %12739 = vmatpush3.bf16.msra.mxu1 %v2892_v11  ;;  %4618 = vrot.lane.b32.xlu0 %v14586_v27, %s14401_s19  ;;  %v3081_v44 = vpop.permute.xlu1 %3080  ;;  %v3103_v47 = vand.u32 %v3086_v42, %v14536_v14  ;;  %v3100_v27 = vand.u32 %v3085_v12, %v14536_v14  ;;  %v3106_v61 = vand.u32 %v3087_v55, %v14536_v14  ;;  %s17448_s19 = smov 60  }
 0x149   : > { %12740 = vmatprep.mubr.msk.bf16.mxu1 %vm14383_vm3, %v17429_v29 }
 0x14a   : > { %v3079_v50 = vpop.permute.xlu0 %3078  ;;  %5188 = vrot.lane.b32.xlu1 %v14667_v30, %s14384_s29  ;;  %12016 = vmatmul.mubr.msk.bf16.vlgmr.msra.gmra.mrb[4].mxu0 %vm456_vm2, %v12013_v16 }
 0x14b   : > { %v3088_v54 = vsel %vm3082_vm15, %v3077_v37, %v3079_v50  ;;  %3115 = vmatpush1.bf16.msra.mxu0 %v3094_v17  ;;  %3155 = vmatprep.subr.bf16.mxu1 %v3103_v47  ;;  %v3089_v10 = vsel %vm3082_vm15, %v3079_v50, %v3081_v44 }
 0x14c   : > { %5004 = vrot.lane.b32.xlu0 %v14667_v30, %s14381_s20  ;;  %v3291_v56 = vpop.permute.xlu1 %3290  ;;  %3146 = vmatprep.mubr.bf16.mxu0 %v17423_v4  ;;  %v3109_v57 = vand.u32 %v3088_v54, %v14536_v14  ;;  %v3112_v18 = vand.u32 %v3089_v10, %v14536_v14 }
 0x14e   : > { %v3289_v58 = vpop.permute.xlu0 %3288  ;;  %5556 = vrot.lane.b32.xlu1 %v14667_v30, %s17417_s16  ;;  %3196 = vmatprep.subr.bf16.mxu0 %v3109_v57 }
 0x14f   : > { %v3304_v62 = vsel %vm3302_vm1, %v3289_v58, %v3291_v56  ;;  %12741 = vmatmul.mubr.msk.bf16.vlgmr.msra.gmra.mrb[4].mxu1 %vm456_vm2, %v12013_v16 }
 0x150   : > { %3156 = vmatpush1.bf16.msra.mxu1 %v3100_v27  ;;  %5372 = vrot.lane.b32.xlu0 %v14667_v30, %s14385_s15  ;;  %v3293_v6 = vpop.permute.xlu1 %3292  ;;  %v3317_v8 = vand.u32 %v3304_v62, %v14536_v14  ;;  %v12023_v27 = vld [vmem:[%s17444_s1 + $0x34] sm:$0x7]  ;;  %s17447_s15 = smov 62  }
 0x151   : > { %3187 = vmatprep.mubr.bf16.mxu1 %v17423_v4  ;;  %12744 = vmatprep.subr.bf16.mxu1 %v17429_v29  ;;  %v3305_v35 = vsel %vm3302_vm1, %v3291_v56, %v3293_v6 }
 0x152   : > { %v3287_v15 = vpop.permute.xlu0 %3286  ;;  %12019 = vmatmul.mubr.msk.bf16.vlgmr.msra.gmra.mrb[0].mxu0 %vm456_vm2, %v12018_v2  ;;  %v3320_v17 = vand.u32 %v3305_v35, %v14536_v14 }
 0x153   : > { %3197 = vmatpush1.bf16.msra.mxu0 %v3106_v61  ;;  %3228 = vmatprep.mubr.bf16.mxu0 %v17423_v4  ;;  %v3303_v20 = vsel %vm3302_vm1, %v3287_v15, %v3289_v58 }
 0x154   : > { %v3297_v16 = vpop.permute.xlu1 %3296  ;;  %3334 = vmatprep.subr.bf16.mxu0 %v3317_v8  ;;  %v3314_v34 = vand.u32 %v3303_v20, %v14536_v14 }
 0x156   : > { %v3295_v32 = vpop.permute.xlu0 %3294 }
 0x157   : > { %v3306_v19 = vsel %vm3302_vm1, %v3293_v6, %v3295_v32  ;;  %12020 = vmatmul.mubr.msk.bf16.vlgmr.msra.gmra.mrb[0].mxu1 %vm456_vm2, %v12018_v2  ;;  %v3307_v42 = vsel %vm3302_vm1, %v3295_v32, %v3297_v16 }
 0x158   : > { %12745 = vmatpush3.bf16.msra.mxu1 %v3112_v18  ;;  %v3301_v36 = vpop.permute.xlu1 %3300  ;;  %12746 = vmatprep.mubr.msk.bf16.mxu1 %vm14383_vm3, %v17429_v29  ;;  %v3323_v11 = vand.u32 %v3306_v19, %v14536_v14  ;;  %v3326_v50 = vand.u32 %v3307_v42, %v14536_v14 }
 0x15a   : > { %v3299_v37 = vpop.permute.xlu0 %3298  ;;  %12021 = vmatmul.mubr.msk.bf16.vlgmr.msra.gmra.mrb[4].mxu0 %vm456_vm2, %v12018_v2  ;;  %3375 = vmatprep.subr.bf16.mxu1 %v3323_v11 }
 0x15b   : > { %v3308_v40 = vsel %vm3302_vm1, %v3297_v16, %v3299_v37  ;;  %3335 = vmatpush1.bf16.msra.mxu0 %v3314_v34  ;;  %3366 = vmatprep.mubr.bf16.mxu0 %v17423_v4  ;;  %v3309_v57 = vsel %vm3302_vm1, %v3299_v37, %v3301_v36  ;;  %vm4622_vm1 = vcmask 228352  }
 0x15c   : > { %v3511_v44 = vpop.permute.xlu1 %3510  ;;  %v3329_v47 = vand.u32 %v3308_v40, %v14536_v14  ;;  %v3332_v61 = vand.u32 %v3309_v57, %v14536_v14 }
 0x15e   : > { %v3509_v12 = vpop.permute.xlu0 %3508  ;;  %3416 = vmatprep.subr.bf16.mxu0 %v3329_v47 }
 0x15f   : > { %v3524_v54 = vsel %vm3522_vm9, %v3509_v12, %v3511_v44  ;;  %12747 = vmatmul.mubr.msk.bf16.vlgmr.msra.gmra.mrb[4].mxu1 %vm456_vm2, %v12018_v2 }
 0x160   : > { %3376 = vmatpush1.bf16.msra.mxu1 %v3320_v17  ;;  %v3513_v55 = vpop.permute.xlu1 %3512  ;;  %3407 = vmatprep.mubr.bf16.mxu1 %v17423_v4  ;;  %v3537_v56 = vand.u32 %v3524_v54, %v14536_v14  ;;  %v12028_v17 = vld [vmem:[%s17444_s1 + $0x38] sm:$0x7] }
 0x161   : > { %12750 = vmatprep.subr.bf16.mxu1 %v17429_v29  ;;  %v3525_v20 = vsel %vm3522_vm9, %v3511_v44, %v3513_v55 }
 0x162   : > { %v3507_v58 = vpop.permute.xlu0 %3506  ;;  %12024 = vmatmul.mubr.msk.bf16.vlgmr.msra.gmra.mrb[0].mxu0 %vm456_vm2, %v12023_v27  ;;  %v3540_v34 = vand.u32 %v3525_v20, %v14536_v14 }
 0x163   : > { %3417 = vmatpush1.bf16.msra.mxu0 %v3326_v50  ;;  %3448 = vmatprep.mubr.bf16.mxu0 %v17423_v4  ;;  %v3523_v62 = vsel %vm3522_vm9, %v3507_v58, %v3509_v12 }
 0x164   : > { %v3517_v2 = vpop.permute.xlu1 %3516  ;;  %3554 = vmatprep.subr.bf16.mxu0 %v3537_v56  ;;  %v3534_v8 = vand.u32 %v3523_v62, %v14536_v14 }
 0x166   : > { %v3515_v6 = vpop.permute.xlu0 %3514 }
 0x167   : > { %v3526_v10 = vsel %vm3522_vm9, %v3513_v55, %v3515_v6  ;;  %12025 = vmatmul.mubr.msk.bf16.vlgmr.msra.gmra.mrb[0].mxu1 %vm456_vm2, %v12023_v27  ;;  %v3527_v19 = vsel %vm3522_vm9, %v3515_v6, %v3517_v2 }
 0x168   : > { %12751 = vmatpush3.bf16.msra.mxu1 %v3332_v61  ;;  %v3521_v15 = vpop.permute.xlu1 %3520  ;;  %12752 = vmatprep.mubr.msk.bf16.mxu1 %vm14383_vm3, %v17429_v29  ;;  %v3543_v18 = vand.u32 %v3526_v10, %v14536_v14  ;;  %v3546_v37 = vand.u32 %v3527_v19, %v14536_v14 }
 0x16a   : > { %v3519_v16 = vpop.permute.xlu0 %3518  ;;  %12026 = vmatmul.mubr.msk.bf16.vlgmr.msra.gmra.mrb[4].mxu0 %vm456_vm2, %v12023_v27  ;;  %3595 = vmatprep.subr.bf16.mxu1 %v3543_v18 }
 0x16b   : > { %v3528_v32 = vsel %vm3522_vm9, %v3517_v2, %v3519_v16  ;;  %3555 = vmatpush1.bf16.msra.mxu0 %v3534_v8  ;;  %3586 = vmatprep.mubr.bf16.mxu0 %v17423_v4  ;;  %v3529_v47 = vsel %vm3522_vm9, %v3519_v16, %v3521_v15 }
 0x16c   : > { %v3731_v36 = vpop.permute.xlu1 %3730  ;;  %v3549_v11 = vand.u32 %v3528_v32, %v14536_v14  ;;  %v3552_v50 = vand.u32 %v3529_v47, %v14536_v14 }
 0x16e   : > { %v3729_v35 = vpop.permute.xlu0 %3728  ;;  %3636 = vmatprep.subr.bf16.mxu0 %v3549_v11 }
 0x16f   : > { %v3744_v40 = vsel %vm3742_vm10, %v3729_v35, %v3731_v36  ;;  %12753 = vmatmul.mubr.msk.bf16.vlgmr.msra.gmra.mrb[4].mxu1 %vm456_vm2, %v12023_v27 }
 0x170   : > { %3596 = vmatpush1.bf16.msra.mxu1 %v3540_v34  ;;  %v3733_v42 = vpop.permute.xlu1 %3732  ;;  %3627 = vmatprep.mubr.bf16.mxu1 %v17423_v4  ;;  %v3757_v44 = vand.u32 %v3744_v40, %v14536_v14  ;;  %v12033_v34 = vld [vmem:[%s17444_s1 + $0x3c] sm:$0x7] }
 0x171   : > { %12756 = vmatprep.subr.bf16.mxu1 %v17429_v29  ;;  %v3745_v62 = vsel %vm3742_vm10, %v3731_v36, %v3733_v42 }
 0x172   : > { %v3727_v12 = vpop.permute.xlu0 %3726  ;;  %12029 = vmatmul.mubr.msk.bf16.vlgmr.msra.gmra.mrb[0].mxu0 %vm456_vm2, %v12028_v17  ;;  %v3760_v8 = vand.u32 %v3745_v62, %v14536_v14 }
 0x173   : > { %3637 = vmatpush1.bf16.msra.mxu0 %v3546_v37  ;;  %3668 = vmatprep.mubr.bf16.mxu0 %v17423_v4  ;;  %v3743_v54 = vsel %vm3742_vm10, %v3727_v12, %v3729_v35 }
 0x174   : > { %v3737_v27 = vpop.permute.xlu1 %3736  ;;  %3774 = vmatprep.subr.bf16.mxu0 %v3757_v44  ;;  %v3754_v56 = vand.u32 %v3743_v54, %v14536_v14 }
 0x176   : > { %v3735_v55 = vpop.permute.xlu0 %3734 }
 0x177   : > { %v3746_v57 = vsel %vm3742_vm10, %v3733_v42, %v3735_v55  ;;  %12030 = vmatmul.mubr.msk.bf16.vlgmr.msra.gmra.mrb[0].mxu1 %vm456_vm2, %v12028_v17  ;;  %v3747_v10 = vsel %vm3742_vm10, %v3735_v55, %v3737_v27 }
 0x178   : > { %12757 = vmatpush3.bf16.msra.mxu1 %v3552_v50  ;;  %v3741_v58 = vpop.permute.xlu1 %3740  ;;  %12758 = vmatprep.mubr.msk.bf16.mxu1 %vm14383_vm3, %v17429_v29  ;;  %v3763_v61 = vand.u32 %v3746_v57, %v14536_v14  ;;  %v3766_v16 = vand.u32 %v3747_v10, %v14536_v14 }
 0x17a   : > { %v3739_v2 = vpop.permute.xlu0 %3738  ;;  %12031 = vmatmul.mubr.msk.bf16.vlgmr.msra.gmra.mrb[4].mxu0 %vm456_vm2, %v12028_v17  ;;  %3815 = vmatprep.subr.bf16.mxu1 %v3763_v61 }
 0x17b   : > { %v3748_v6 = vsel %vm3742_vm10, %v3737_v27, %v3739_v2  ;;  %3775 = vmatpush1.bf16.msra.mxu0 %v3754_v56  ;;  %3806 = vmatprep.mubr.bf16.mxu0 %v17423_v4  ;;  %v3749_v11 = vsel %vm3742_vm10, %v3739_v2, %v3741_v58  ;;  %vm7288_vm10 = vcmask 474112  }
 0x17c   : > { %v3951_v15 = vpop.permute.xlu1 %3950  ;;  %v3769_v18 = vand.u32 %v3748_v6, %v14536_v14  ;;  %v3772_v37 = vand.u32 %v3749_v11, %v14536_v14 }
 0x17e   : > { %v3949_v20 = vpop.permute.xlu0 %3948  ;;  %3856 = vmatprep.subr.bf16.mxu0 %v3769_v18 }
 0x17f   : > { %v3964_v32 = vsel %vm3962_vm11, %v3949_v20, %v3951_v15  ;;  %12759 = vmatmul.mubr.msk.bf16.vlgmr.msra.gmra.mrb[4].mxu1 %vm456_vm2, %v12028_v17 }
 0x180   : > { %3816 = vmatpush1.bf16.msra.mxu1 %v3760_v8  ;;  %v3953_v19 = vpop.permute.xlu1 %3952  ;;  %3847 = vmatprep.mubr.bf16.mxu1 %v17423_v4  ;;  %v3977_v36 = vand.u32 %v3964_v32, %v14536_v14  ;;  %v12038_v8 = vld [vmem:[%s17444_s1 + $0x40] sm:$0x7] }
 0x181   : > { %12762 = vmatprep.subr.bf16.mxu1 %v17429_v29  ;;  %v3965_v54 = vsel %vm3962_vm11, %v3951_v15, %v3953_v19 }
 0x182   : > { %v3947_v35 = vpop.permute.xlu0 %3946  ;;  %12034 = vmatmul.mubr.msk.bf16.vlgmr.msra.gmra.mrb[0].mxu0 %vm456_vm2, %v12033_v34  ;;  %v3980_v56 = vand.u32 %v3965_v54, %v14536_v14 }
 0x183   : > { %3857 = vmatpush1.bf16.msra.mxu0 %v3766_v16  ;;  %3888 = vmatprep.mubr.bf16.mxu0 %v17423_v4  ;;  %v3963_v40 = vsel %vm3962_vm11, %v3947_v35, %v3949_v20 }
 0x184   : > { %v3957_v17 = vpop.permute.xlu1 %3956  ;;  %3994 = vmatprep.subr.bf16.mxu0 %v3977_v36  ;;  %v3974_v44 = vand.u32 %v3963_v40, %v14536_v14 }
 0x186   : > { %v3955_v42 = vpop.permute.xlu0 %3954 }
 0x187   : > { %v3966_v47 = vsel %vm3962_vm11, %v3953_v19, %v3955_v42  ;;  %12035 = vmatmul.mubr.msk.bf16.vlgmr.msra.gmra.mrb[0].mxu1 %vm456_vm2, %v12033_v34  ;;  %v3967_v57 = vsel %vm3962_vm11, %v3955_v42, %v3957_v17 }
 0x188   : > { %12763 = vmatpush3.bf16.msra.mxu1 %v3772_v37  ;;  %v3961_v12 = vpop.permute.xlu1 %3960  ;;  %12764 = vmatprep.mubr.msk.bf16.mxu1 %vm14383_vm3, %v17429_v29  ;;  %v3983_v50 = vand.u32 %v3966_v47, %v14536_v14  ;;  %v3986_v2 = vand.u32 %v3967_v57, %v14536_v14  ;;  %v414_v57 = vld [vmem:[%s17402_s2] sm:$0x3f] }
 0x189   : > { %417 = vperm.xlu0 %14220, %v414_v57  }
 0x18a   : > { %v3959_v27 = vpop.permute.xlu0 %3958  ;;  %12036 = vmatmul.mubr.msk.bf16.vlgmr.msra.gmra.mrb[4].mxu0 %vm456_vm2, %v12033_v34  ;;  %4035 = vmatprep.subr.bf16.mxu1 %v3983_v50 }
 0x18b   : > { %v3968_v55 = vsel %vm3962_vm11, %v3957_v17, %v3959_v27  ;;  %3995 = vmatpush1.bf16.msra.mxu0 %v3974_v44  ;;  %4026 = vmatprep.mubr.bf16.mxu0 %v17423_v4  ;;  %v3969_v18 = vsel %vm3962_vm11, %v3959_v27, %v3961_v12  ;;  %vm7469_vm11 = vcmask 457728  }
 0x18c   : > { %v4171_v58 = vpop.permute.xlu1 %4170  ;;  %v3989_v61 = vand.u32 %v3968_v55, %v14536_v14  ;;  %v3992_v16 = vand.u32 %v3969_v18, %v14536_v14 }
 0x18e   : > { %v4169_v62 = vpop.permute.xlu0 %4168  ;;  %4076 = vmatprep.subr.bf16.mxu0 %v3989_v61 }
 0x18f   : > { %v4184_v6 = vsel %vm4182_vm12, %v4169_v62, %v4171_v58  ;;  %12765 = vmatmul.mubr.msk.bf16.vlgmr.msra.gmra.mrb[4].mxu1 %vm456_vm2, %v12033_v34 }
 0x190   : > { %4036 = vmatpush1.bf16.msra.mxu1 %v3980_v56  ;;  %v4173_v10 = vpop.permute.xlu1 %4172  ;;  %4067 = vmatprep.mubr.bf16.mxu1 %v17423_v4  ;;  %v4197_v15 = vand.u32 %v4184_v6, %v14536_v14  ;;  %v12043_v56 = vld [vmem:[%s17444_s1 + $0x44] sm:$0x7] }
 0x191   : > { %12768 = vmatprep.subr.bf16.mxu1 %v17429_v29  ;;  %v4185_v40 = vsel %vm4182_vm12, %v4171_v58, %v4173_v10 }
 0x192   : > { %v4167_v20 = vpop.permute.xlu0 %4166  ;;  %12039 = vmatmul.mubr.msk.bf16.vlgmr.msra.gmra.mrb[0].mxu0 %vm456_vm2, %v12038_v8  ;;  %v4200_v44 = vand.u32 %v4185_v40, %v14536_v14 }
 0x193   : > { %4077 = vmatpush1.bf16.msra.mxu0 %v3986_v2  ;;  %4108 = vmatprep.mubr.bf16.mxu0 %v17423_v4  ;;  %v4183_v32 = vsel %vm4182_vm12, %v4167_v20, %v4169_v62 }
 0x194   : > { %v4177_v34 = vpop.permute.xlu1 %4176  ;;  %4214 = vmatprep.subr.bf16.mxu0 %v4197_v15  ;;  %v4194_v36 = vand.u32 %v4183_v32, %v14536_v14 }
 0x196   : > { %v4175_v19 = vpop.permute.xlu0 %4174 }
 0x197   : > { %v4186_v11 = vsel %vm4182_vm12, %v4173_v10, %v4175_v19  ;;  %12040 = vmatmul.mubr.msk.bf16.vlgmr.msra.gmra.mrb[0].mxu1 %vm456_vm2, %v12038_v8  ;;  %v4187_v47 = vsel %vm4182_vm12, %v4175_v19, %v4177_v34 }
 0x198   : > { %12769 = vmatpush3.bf16.msra.mxu1 %v3992_v16  ;;  %v4181_v35 = vpop.permute.xlu1 %4180  ;;  %12770 = vmatprep.mubr.msk.bf16.mxu1 %vm14383_vm3, %v17429_v29  ;;  %v4203_v37 = vand.u32 %v4186_v11, %v14536_v14  ;;  %v4206_v27 = vand.u32 %v4187_v47, %v14536_v14  ;;  %v12048_v47 = vld [vmem:[%s17444_s1 + $0x48] sm:$0x7] }
 0x19a   : > { %v4179_v17 = vpop.permute.xlu0 %4178  ;;  %12041 = vmatmul.mubr.msk.bf16.vlgmr.msra.gmra.mrb[4].mxu0 %vm456_vm2, %v12038_v8  ;;  %4255 = vmatprep.subr.bf16.mxu1 %v4203_v37 }
 0x19b   : > { %v4188_v42 = vsel %vm4182_vm12, %v4177_v34, %v4179_v17  ;;  %4215 = vmatpush1.bf16.msra.mxu0 %v4194_v36  ;;  %4246 = vmatprep.mubr.bf16.mxu0 %v17423_v4  ;;  %v4189_v62 = vsel %vm4182_vm12, %v4179_v17, %v4181_v35 }
 0x19c   : > { %v4391_v12 = vpop.permute.xlu1 %4390  ;;  %v4209_v50 = vand.u32 %v4188_v42, %v14536_v14  ;;  %v4212_v6 = vand.u32 %v4189_v62, %v14536_v14 }
 0x19e   : > { %v4389_v54 = vpop.permute.xlu0 %4388  ;;  %4296 = vmatprep.subr.bf16.mxu0 %v4209_v50 }
 0x19f   : > { %v4404_v55 = vsel %vm4402_vm14, %v4389_v54, %v4391_v12  ;;  %12771 = vmatmul.mubr.msk.bf16.vlgmr.msra.gmra.mrb[4].mxu1 %vm456_vm2, %v12038_v8 }
 0x1a0   : > { %4256 = vmatpush1.bf16.msra.mxu1 %v4200_v44  ;;  %v4393_v58 = vpop.permute.xlu1 %4392  ;;  %4287 = vmatprep.mubr.bf16.mxu1 %v17423_v4  ;;  %v4417_v61 = vand.u32 %v4404_v55, %v14536_v14 }
 0x1a1   : > { %12774 = vmatprep.subr.bf16.mxu1 %v17429_v29  ;;  %v4405_v34 = vsel %vm4402_vm14, %v4391_v12, %v4393_v58 }
 0x1a2   : > { %v4387_v2 = vpop.permute.xlu0 %4386  ;;  %12044 = vmatmul.mubr.msk.bf16.vlgmr.msra.gmra.mrb[0].mxu0 %vm456_vm2, %v12043_v56  ;;  %v4420_v11 = vand.u32 %v4405_v34, %v14536_v14 }
 0x1a3   : > { %4297 = vmatpush1.bf16.msra.mxu0 %v4206_v27  ;;  %4328 = vmatprep.mubr.bf16.mxu0 %v17423_v4  ;;  %v4403_v8 = vsel %vm4402_vm14, %v4387_v2, %v4389_v54 }
 0x1a4   : > { %v4397_v10 = vpop.permute.xlu1 %4396  ;;  %4434 = vmatprep.subr.bf16.mxu0 %v4417_v61  ;;  %v4414_v18 = vand.u32 %v4403_v8, %v14536_v14 }
 0x1a6   : > { %v4395_v15 = vpop.permute.xlu0 %4394 }
 0x1a7   : > { %v4406_v20 = vsel %vm4402_vm14, %v4393_v58, %v4395_v15  ;;  %12045 = vmatmul.mubr.msk.bf16.vlgmr.msra.gmra.mrb[0].mxu1 %vm456_vm2, %v12043_v56  ;;  %v4407_v35 = vsel %vm4402_vm14, %v4395_v15, %v4397_v10 }
 0x1a8   : > { %12775 = vmatpush3.bf16.msra.mxu1 %v4212_v6  ;;  %v4401_v16 = vpop.permute.xlu1 %4400  ;;  %12776 = vmatprep.mubr.msk.bf16.mxu1 %vm14383_vm3, %v17429_v29  ;;  %v4423_v32 = vand.u32 %v4406_v20, %v14536_v14  ;;  %v4426_v42 = vand.u32 %v4407_v35, %v14536_v14 }
 0x1aa   : > { %v4399_v19 = vpop.permute.xlu0 %4398  ;;  %12046 = vmatmul.mubr.msk.bf16.vlgmr.msra.gmra.mrb[4].mxu0 %vm456_vm2, %v12043_v56  ;;  %4475 = vmatprep.subr.bf16.mxu1 %v4423_v32  ;;  %v12053_v32 = vld [vmem:[%s17444_s1 + $0x4c] sm:$0x7] }
 0x1ab   : > { %v4408_v36 = vsel %vm4402_vm14, %v4397_v10, %v4399_v19  ;;  %4435 = vmatpush1.bf16.msra.mxu0 %v4414_v18  ;;  %4466 = vmatprep.mubr.bf16.mxu0 %v17423_v4  ;;  %v4409_v50 = vsel %vm4402_vm14, %v4399_v19, %v4401_v16 }
 0x1ac   : > { %v4429_v37 = vand.u32 %v4408_v36, %v14536_v14  ;;  %v4611_v40 = vpop.permute.xlu1 %4610  ;;  %v4432_v27 = vand.u32 %v4409_v50, %v14536_v14 }
 0x1ae   : > { %v4609_v17 = vpop.permute.xlu0 %4608  ;;  %4516 = vmatprep.subr.bf16.mxu0 %v4429_v37 }
 0x1af   : > { %v4624_v44 = vsel %vm4622_vm1, %v4609_v17, %v4611_v40  ;;  %12777 = vmatmul.mubr.msk.bf16.vlgmr.msra.gmra.mrb[4].mxu1 %vm456_vm2, %v12043_v56 }
 0x1b0   : > { %v4637_v12 = vand.u32 %v4624_v44, %v14536_v14  ;;  %4476 = vmatpush1.bf16.msra.mxu1 %v4420_v11  ;;  %4507 = vmatprep.mubr.bf16.mxu1 %v17423_v4  ;;  %v4613_v55 = vpop.permute.xlu1 %4612 }
 0x1b1   : > { %12780 = vmatprep.subr.bf16.mxu1 %v17429_v29  ;;  %v4625_v2 = vsel %vm4622_vm1, %v4611_v40, %v4613_v55 }
 0x1b2   : > { %v4607_v54 = vpop.permute.xlu0 %4606  ;;  %12049 = vmatmul.mubr.msk.bf16.vlgmr.msra.gmra.mrb[0].mxu0 %vm456_vm2, %v12048_v47  ;;  %v4640_v15 = vand.u32 %v4625_v2, %v14536_v14 }
 0x1b3   : > { %4517 = vmatpush1.bf16.msra.mxu0 %v4426_v42  ;;  %4548 = vmatprep.mubr.bf16.mxu0 %v17423_v4  ;;  %v4623_v56 = vsel %vm4622_vm1, %v4607_v54, %v4609_v17 }
 0x1b4   : > { %4654 = vmatprep.subr.bf16.mxu0 %v4637_v12  ;;  %v4634_v58 = vand.u32 %v4623_v56, %v14536_v14  ;;  %v4617_v6 = vpop.permute.xlu1 %4616 }
 0x1b6   : > { %v4615_v57 = vpop.permute.xlu0 %4614 }
 0x1b7   : > { %v4626_v61 = vsel %vm4622_vm1, %v4613_v55, %v4615_v57  ;;  %12050 = vmatmul.mubr.msk.bf16.vlgmr.msra.gmra.mrb[0].mxu1 %vm456_vm2, %v12048_v47  ;;  %v4627_v18 = vsel %vm4622_vm1, %v4615_v57, %v4617_v6 }
 0x1b8   : > { %v4643_v62 = vand.u32 %v4626_v61, %v14536_v14  ;;  %12781 = vmatpush3.bf16.msra.mxu1 %v4432_v27  ;;  %12782 = vmatprep.mubr.msk.bf16.mxu1 %vm14383_vm3, %v17429_v29  ;;  %v4646_v16 = vand.u32 %v4627_v18, %v14536_v14  ;;  %v4621_v34 = vpop.permute.xlu1 %4620 }
 0x1ba   : > { %v4619_v8 = vpop.permute.xlu0 %4618  ;;  %12051 = vmatmul.mubr.msk.bf16.vlgmr.msra.gmra.mrb[4].mxu0 %vm456_vm2, %v12048_v47  ;;  %4695 = vmatprep.subr.bf16.mxu1 %v4643_v62 }
 0x1bb   : > { %v4628_v10 = vsel %vm4622_vm1, %v4617_v6, %v4619_v8  ;;  %4655 = vmatpush1.bf16.msra.mxu0 %v4634_v58  ;;  %4686 = vmatprep.mubr.bf16.mxu0 %v17423_v4  ;;  %v4629_v19 = vsel %vm4622_vm1, %v4619_v8, %v4621_v34 }
 0x1bc   : > { %v4649_v20 = vand.u32 %v4628_v10, %v14536_v14  ;;  %v4652_v36 = vand.u32 %v4629_v19, %v14536_v14 }
 0x1be   : > { %4736 = vmatprep.subr.bf16.mxu0 %v4649_v20 }
 0x1bf   : > { %12783 = vmatmul.mubr.msk.bf16.vlgmr.msra.gmra.mrb[4].mxu1 %vm456_vm2, %v12048_v47 }
 0x1c0   : > { %4696 = vmatpush1.bf16.msra.mxu1 %v4640_v15  ;;  %4727 = vmatprep.mubr.bf16.mxu1 %v17423_v4 }
 0x1c1   : > { %12786 = vmatprep.subr.bf16.mxu1 %v17429_v29 }
 0x1c2   : > { %12054 = vmatmul.mubr.msk.bf16.vlgmr.msra.gmra.mrb[0].mxu0 %vm456_vm2, %v12053_v32 }
 0x1c3   : > { %4737 = vmatpush1.bf16.msra.mxu0 %v4646_v16  ;;  %4768 = vmatprep.mubr.bf16.mxu0 %v17423_v4 }
 0x1c4   : > { %4832 = vmatprep.subr.bf16.mxu0 %v14567_v23  ;;  %v12058_v23 = vld [vmem:[%s17444_s1 + $0x50] sm:$0x7] }
 0x1c7   : > { %12055 = vmatmul.mubr.msk.bf16.vlgmr.msra.gmra.mrb[0].mxu1 %vm456_vm2, %v12053_v32 }
 0x1c8   : > { %12787 = vmatpush3.bf16.msra.mxu1 %v4652_v36  ;;  %12788 = vmatprep.mubr.msk.bf16.mxu1 %vm14383_vm3, %v17429_v29 }
 0x1c9   : > { %4873 = vmatprep.subr.bf16.mxu1 %v14582_v26  ;;  %v4830_v26 = vand.u32 %v14667_v30, %v14536_v14  ;;  %v5189_v30 = vpop.permute.xlu1 %5188 }
 0x1ca   : > { %12056 = vmatmul.mubr.msk.bf16.vlgmr.msra.gmra.mrb[4].mxu0 %vm456_vm2, %v12053_v32 }
 0x1cb   : > { %4833 = vmatpush1.bf16.msra.mxu0 %v14560_v21  ;;  %4864 = vmatprep.mubr.bf16.mxu0 %v17423_v4  ;;  %v5005_v21 = vpop.permute.xlu0 %5004 }
 0x1cc   : > { %4914 = vmatprep.subr.bf16.mxu0 %v14596_v28  ;;  %v5006_v28 = vsel %vm671_vm4, %v14727_v48, %v5005_v21  ;;  %v12068_v48 = vld [vmem:[%s17444_s1 + $0x58] sm:$0x7] }
 0x1cf   : > { %12789 = vmatmul.mubr.msk.bf16.vlgmr.msra.gmra.mrb[4].mxu1 %vm456_vm2, %v12053_v32 }
 0x1d0   : > { %4874 = vmatpush1.bf16.msra.mxu1 %v14578_v25  ;;  %4905 = vmatprep.mubr.bf16.mxu1 %v17423_v4  ;;  %v12063_v25 = vld [vmem:[%s17444_s1 + $0x54] sm:$0x7] }
 0x1d1   : > { %12792 = vmatprep.subr.bf16.mxu1 %v17429_v29 }
 0x1d2   : > { %12059 = vmatmul.mubr.msk.bf16.vlgmr.msra.gmra.mrb[0].mxu0 %vm456_vm2, %v12058_v23 }
 0x1d3   : > { %4915 = vmatpush1.bf16.msra.mxu0 %v14571_v24  ;;  %4946 = vmatprep.mubr.bf16.mxu0 %v17423_v4  ;;  %v5011_v24 = vand.u32 %v5006_v28, %v14536_v14 }
 0x1d4   : > { %5016 = vmatprep.subr.bf16.mxu0 %v14723_v46  ;;  %v5190_v46 = vsel %vm888_vm5, %v14774_v0, %v5189_v30  ;;  %v12073_v0 = vld [vmem:[%s17444_s1 + $0x5c] sm:$0x7] }
 0x1d7   : > { %12060 = vmatmul.mubr.msk.bf16.vlgmr.msra.gmra.mrb[0].mxu1 %vm456_vm2, %v12058_v23 }
 0x1d8   : > { %12793 = vmatpush3.bf16.msra.mxu1 %v4830_v26  ;;  %12794 = vmatprep.mubr.msk.bf16.mxu1 %vm14383_vm3, %v17429_v29 }
 0x1d9   : > { %5057 = vmatprep.subr.bf16.mxu1 %v14742_v52  ;;  %v5373_v52 = vpop.permute.xlu0 %5372 }
 0x1da   : > { %12061 = vmatmul.mubr.msk.bf16.vlgmr.msra.gmra.mrb[4].mxu0 %vm456_vm2, %v12058_v23 }
 0x1db   : > { %5017 = vmatpush1.bf16.msra.mxu0 %v14706_v38  ;;  %5048 = vmatprep.mubr.bf16.mxu0 %v17423_v4  ;;  %v5014_v38 = vand.u32 %v5005_v21, %v14536_v14 }
 0x1dc   : > { %5098 = vmatprep.subr.bf16.mxu0 %v5011_v24 }
 0x1df   : > { %12795 = vmatmul.mubr.msk.bf16.vlgmr.msra.gmra.mrb[4].mxu1 %vm456_vm2, %v12058_v23 }
 0x1e0   : > { %5058 = vmatpush1.bf16.msra.mxu1 %v14720_v45  ;;  %5089 = vmatprep.mubr.bf16.mxu1 %v17423_v4  ;;  %v5195_v45 = vand.u32 %v5190_v46, %v14536_v14 }
 0x1e1   : > { %12798 = vmatprep.subr.bf16.mxu1 %v17429_v29 }
 0x1e2   : > { %12064 = vmatmul.mubr.msk.bf16.vlgmr.msra.gmra.mrb[0].mxu0 %vm456_vm2, %v12063_v25 }
 0x1e3   : > { %5099 = vmatpush1.bf16.msra.mxu0 %v14739_v51  ;;  %5130 = vmatprep.mubr.bf16.mxu0 %v17423_v4  ;;  %v5198_v51 = vand.u32 %v5189_v30, %v14536_v14 }
 0x1e4   : > { %5200 = vmatprep.subr.bf16.mxu0 %v14770_v63 }
 0x1e7   : > { %12065 = vmatmul.mubr.msk.bf16.vlgmr.msra.gmra.mrb[0].mxu1 %vm456_vm2, %v12063_v25 }
 0x1e8   : > { %12799 = vmatpush3.bf16.msra.mxu1 %v5014_v38  ;;  %12800 = vmatprep.mubr.msk.bf16.mxu1 %vm14383_vm3, %v17429_v29 }
 0x1e9   : > { %5241 = vmatprep.subr.bf16.mxu1 %v14790_v7  ;;  %v5382_v7 = vand.u32 %v5373_v52, %v14536_v14 }
 0x1ea   : > { %12066 = vmatmul.mubr.msk.bf16.vlgmr.msra.gmra.mrb[4].mxu0 %vm456_vm2, %v12063_v25 }
 0x1eb   : > { %5201 = vmatpush1.bf16.msra.mxu0 %v14758_v59  ;;  %5232 = vmatprep.mubr.bf16.mxu0 %v17423_v4  ;;  %v5374_v59 = vsel %vm1105_vm6, %v14839_v43, %v5373_v52  ;;  %vm6389_vm6 = vcmask 998400  }
 0x1ec   : > { %5282 = vmatprep.subr.bf16.mxu0 %v5195_v45  ;;  %v5379_v63 = vand.u32 %v5374_v59, %v14536_v14 }
 0x1ef   : > { %12801 = vmatmul.mubr.msk.bf16.vlgmr.msra.gmra.mrb[4].mxu1 %vm456_vm2, %v12063_v25 }
 0x1f0   : > { %5242 = vmatpush1.bf16.msra.mxu1 %v14777_v1  ;;  %5273 = vmatprep.mubr.bf16.mxu1 %v17423_v4  ;;  %v5557_v1 = vpop.permute.xlu1 %5556 }
 0x1f1   : > { %12804 = vmatprep.subr.bf16.mxu1 %v17429_v29 }
 0x1f2   : > { %12069 = vmatmul.mubr.msk.bf16.vlgmr.msra.gmra.mrb[0].mxu0 %vm456_vm2, %v12068_v48 }
 0x1f3   : > { %5283 = vmatpush1.bf16.msra.mxu0 %v14796_v9  ;;  %5314 = vmatprep.mubr.bf16.mxu0 %v17423_v4  ;;  %v5558_v9 = vsel %vm1322_vm7, %v14884_v3, %v5557_v1 }
 0x1f4   : > { %5384 = vmatprep.subr.bf16.mxu0 %v14831_v39  ;;  %v12078_v39 = vld [vmem:[%s17444_s1 + $0x60] sm:$0x7] }
 0x1f7   : > { %12070 = vmatmul.mubr.msk.bf16.vlgmr.msra.gmra.mrb[0].mxu1 %vm456_vm2, %v12068_v48 }
 0x1f8   : > { %12805 = vmatpush3.bf16.msra.mxu1 %v5198_v51  ;;  %12806 = vmatprep.mubr.msk.bf16.mxu1 %vm14383_vm3, %v17429_v29 }
 0x1f9   : > { %5425 = vmatprep.subr.bf16.mxu1 %v14851_v49 }
 0x1fa   : > { %12071 = vmatmul.mubr.msk.bf16.vlgmr.msra.gmra.mrb[4].mxu0 %vm456_vm2, %v12068_v48 }
 0x1fb   : > { %5385 = vmatpush1.bf16.msra.mxu0 %v14812_v22  ;;  %5416 = vmatprep.mubr.bf16.mxu0 %v17423_v4  ;;  %v5563_v22 = vand.u32 %v5558_v9, %v14536_v14 }
 0x1fc   : > { %5466 = vmatprep.subr.bf16.mxu0 %v5379_v63 }
 0x1ff   : > { %12807 = vmatmul.mubr.msk.bf16.vlgmr.msra.gmra.mrb[4].mxu1 %vm456_vm2, %v12068_v48 }
 0x200   : > { %5426 = vmatpush1.bf16.msra.mxu1 %v14836_v41  ;;  %5457 = vmatprep.mubr.bf16.mxu1 %v17423_v4  ;;  %v5566_v41 = vand.u32 %v5557_v1, %v14536_v14 }
 0x201   : > { %12810 = vmatprep.subr.bf16.mxu1 %v17429_v29 }
 0x202   : > { %12074 = vmatmul.mubr.msk.bf16.vlgmr.msra.gmra.mrb[0].mxu0 %vm456_vm2, %v12073_v0 }
 0x203   : > { %5467 = vmatpush1.bf16.msra.mxu0 %v14857_v53  ;;  %5498 = vmatprep.mubr.bf16.mxu0 %v17423_v4 }
 0x204   : > { %5568 = vmatprep.subr.bf16.mxu0 %v14899_v13 }
 0x207   : > { %12075 = vmatmul.mubr.msk.bf16.vlgmr.msra.gmra.mrb[0].mxu1 %vm456_vm2, %v12073_v0 }
 0x208   : > { %12811 = vmatpush3.bf16.msra.mxu1 %v5382_v7  ;;  %12812 = vmatprep.mubr.msk.bf16.mxu1 %vm14383_vm3, %v17429_v29  ;;  %v418_v43 = vpop.permute.xlu0 %417 }
 0x209   : > { %5609 = vmatprep.subr.bf16.mxu1 %v14912_v33 }
 0x20a   : > { %12076 = vmatmul.mubr.msk.bf16.vlgmr.msra.gmra.mrb[4].mxu0 %vm456_vm2, %v12073_v0 }
 0x20b   : > { %5569 = vmatpush1.bf16.msra.mxu0 %v14874_v60  ;;  %5600 = vmatprep.mubr.bf16.mxu0 %v17423_v4 }
 0x20c   : > { %5650 = vmatprep.subr.bf16.mxu0 %v5563_v22 }
 0x20f   : > { %12813 = vmatmul.mubr.msk.bf16.vlgmr.msra.gmra.mrb[4].mxu1 %vm456_vm2, %v12073_v0 }
 0x210   : > { %5610 = vmatpush1.bf16.msra.mxu1 %v14887_v5  ;;  %5641 = vmatprep.mubr.bf16.mxu1 %v17423_v4 }
 0x211   : > { %12816 = vmatprep.subr.bf16.mxu1 %v17429_v29 }
 0x212   : > { %12079 = vmatmul.mubr.msk.bf16.vlgmr.msra.gmra.mrb[0].mxu0 %vm456_vm2, %v12078_v39 }
 0x213   : > { %5651 = vmatpush1.bf16.msra.mxu0 %v14906_v31  ;;  %5682 = vmatprep.mubr.bf16.mxu0 %v17423_v4 }
 0x217   : > { %12080 = vmatmul.mubr.msk.bf16.vlgmr.msra.gmra.mrb[0].mxu1 %vm456_vm2, %v12078_v39 }
 0x218   : > { %12817 = vmatpush3.bf16.msra.mxu1 %v5566_v41  ;;  %12818 = vmatprep.mubr.msk.bf16.mxu1 %vm14383_vm3, %v17429_v29 }
 0x21a   : > { %12081 = vmatmul.mubr.msk.bf16.vlgmr.msra.gmra.mrb[4].mxu0 %vm456_vm2, %v12078_v39 }
 0x21b   : > { %5907 = vmatprep.mubr.bf16.mxu0 %v17423_v4 }
 0x21f   : > { %12819 = vmatmul.mubr.msk.bf16.vlgmr.msra.gmra.mrb[4].mxu1 %vm456_vm2, %v12078_v39  ;;  %vm5859_vm2 = vcmask 1042432  }
 0x220   : > { %5950 = vmatprep.mubr.bf16.mxu1 %v17423_v4 }
 0x2e5   : > { %v5602_v49 = vpop.f32.mrb[0].mxu0 }
 0x2e6   : > { %v13431_v53 = vadd.f32 %v5602_v49, %v418_v43  ;;  %v5604_v60 = vpop.f32.mrb[1].mxu0 }
 0x2e7   : > { %v13432_v3 = vadd.f32 %v5604_v60, %v418_v43  ;;  %v5606_v14 = vpop.f32.mrb[2].mxu0 }
 0x2e8   : > { %v5738_v5 = vmax.f32 %v13431_v53, 0.0  ;;  %v5607_v13 = vpop.f32.mrb[3].mxu0 }
 0x2e9   : > { %v5739_v31 = vmax.f32 %v13432_v3, 0.0 }
 0x2ea   : > { %v5643_v33 = vpop.f32.mrb[0].mxu1 }
 0x2eb   : > { %v14221_v11 = vpack.i.bf16 %v5739_v31, %v5738_v5  ;;  %v13433_v35 = vadd.f32 %v5643_v33, %v418_v43  ;;  %v5645_v37 = vpop.f32.mrb[1].mxu1 }
 0x2ec   : > { %v13434_v40 = vadd.f32 %v5645_v37, %v418_v43  ;;  %v5647_v17 = vpop.f32.mrb[2].mxu1 }
 0x2ed   : > { %v5740_v42 = vmax.f32 %v13433_v35, 0.0  ;;  %v5648_v44 = vpop.f32.mrb[3].mxu1  ;;  %14222 = vrot.lane.b32.xlu1 %v14221_v11, %s14381_s20  ;;  %v5684_v47 = vpop.f32.mrb[4].mxu0 }
 0x2ee   : > { %v5741_v12 = vmax.f32 %v13434_v40, 0.0  ;;  %v13435_v50 = vadd.f32 %v5684_v47, %v418_v43  ;;  %v5686_v54 = vpop.f32.mrb[5].mxu0 }
 0x2ef   : > { %v5688_v27 = vpop.f32.mrb[6].mxu0  ;;  %v13436_v58 = vadd.f32 %v5686_v54, %v418_v43 }
 0x2f0   : > { %v14226_v55 = vpack.i.bf16 %v5741_v12, %v5740_v42  ;;  %v5742_v56 = vmax.f32 %v13435_v50, 0.0  ;;  %v5689_v57 = vpop.f32.mrb[7].mxu0 }
 0x2f1   : > { %v5743_v8 = vmax.f32 %v13436_v58, 0.0 }
 0x2f2   : > { %14227 = vrot.lane.b32.xlu1 %v14226_v55, %s14381_s20  ;;  %v5725_v61 = vpop.f32.mrb[4].mxu1  ;;  %5760 = vrot.lane.b32.xlu0 %v5742_v56, %s14381_s20 }
 0x2f3   : > { %v15583_v62 = vadd.f32 %v5725_v61, %v418_v43  ;;  %v12820_v2 = vpop.f32.mrb[5].mxu1 }
 0x2f4   : > { %v5728_v6 = vpop.f32.mrb[6].mxu1 }
 0x2f5   : > { %v5744_v10 = vmax.f32 %v15583_v62, 0.0  ;;  %v12821_v15 = vpop.f32.mrb[7].mxu1 }
 0x2f7   : > { %v14231_v18 = vpack.i.bf16 %v5744_v10, %v5743_v8 }
 0x2f9   : > { %14232 = vrot.lane.b32.xlu1 %v14231_v18, %s14381_s20  ;;  %s404_s20 = sand.u32 1, %s14368_s22  }
 0x35f   : > { %v14223_v20 = vpop.permute.xlu1 %14222 }
 0x360   : > { %v14225_v16 = vunpack.i.h.bf16 %v14223_v20  ;;  %v14224_v32 = vunpack.i.l.bf16 %v14223_v20  ;;  %v15706_v20 = vld [vmem:[%s17403_s3 + $0x8] sm:$0xff]  }
 0x362   : > { %v5767_v36 = vsel %vm671_vm4, %v14224_v32, %v14225_v16 }
 0x363   : > { %v5780_v25 = vmax.f32 %v5738_v5, %v5767_v36 }
 0x364   : > { %v14228_v34 = vpop.permute.xlu1 %14227  ;;  %v5761_v19 = vpop.permute.xlu0 %5760 }
 0x365   : > { %v14230_v23 = vunpack.i.h.bf16 %v14228_v34  ;;  %v14229_v21 = vunpack.i.l.bf16 %v14228_v34 }
 0x367   : > { %v5768_v26 = vsel %vm671_vm4, %v14225_v16, %v14229_v21  ;;  %v5769_v28 = vsel %vm671_vm4, %v14229_v21, %v14230_v23  ;;  %v5770_v24 = vsel %vm671_vm4, %v14230_v23, %v5761_v19 }
 0x368   : > { %v5781_v30 = vmax.f32 %v5739_v31, %v5768_v26  ;;  %v5782_v38 = vmax.f32 %v5740_v42, %v5769_v28  ;;  %v5783_v46 = vmax.f32 %v5741_v12, %v5770_v24  ;;  %v14289_v42 = vld [vmem:[%s17403_s3] sm:$0xff]  }
 0x36a   : > { %v14241_v45 = vpack.i.bf16 %v5783_v46, %v5782_v38  ;;  %v14236_v48 = vpack.i.bf16 %v5781_v30, %v5780_v25 }
 0x36b   : > { %v14233_v51 = vpop.permute.xlu1 %14232 }
 0x36c   : > { %v14235_v52 = vunpack.i.h.bf16 %v14233_v51  ;;  %v14234_v59 = vunpack.i.l.bf16 %v14233_v51  ;;  %14237 = vrot.lane.b32.xlu0 %v14236_v48, %s14387_s17  ;;  %14242 = vrot.lane.b32.xlu1 %v14241_v45, %s14387_s17 }
 0x36e   : > { %v5771_v63 = vsel %vm671_vm4, %v5761_v19, %v14234_v59  ;;  %v5772_v0 = vsel %vm671_vm4, %v14234_v59, %v14235_v52  ;;  %vm5855_vm4 = vcmask 48128   ;;  %v15622_v50 = vmax.f32 %v5744_v10, %v14235_v52 }
 0x36f   : > { %v5784_v1 = vmax.f32 %v5742_v56, %v5771_v63  ;;  %v15595_v7 = vmax.f32 %v5743_v8, %v5772_v0 }
 0x371   : > { %v14246_v9 = vpack.i.bf16 %v15595_v7, %v5784_v1 }
 0x373   : > { %14247 = vrot.lane.b32.xlu0 %v14246_v9, %s14387_s17 }
 0x3de   : > { %v14238_v22 = vpop.permute.xlu0 %14237  ;;  %v14243_v39 = vpop.permute.xlu1 %14242 }
 0x3df   : > { %v14240_v41 = vunpack.i.h.bf16 %v14238_v22  ;;  %v14239_v43 = vunpack.i.l.bf16 %v14238_v22  ;;  %v14245_v49 = vunpack.i.h.bf16 %v14243_v39  ;;  %v14244_v53 = vunpack.i.l.bf16 %v14243_v39 }
 0x3e1   : > { %v5809_v60 = vsel %vm1542_vm8, %v14239_v43, %v14240_v41  ;;  %v5810_v3 = vsel %vm1542_vm8, %v14240_v41, %v14244_v53  ;;  %v5811_v14 = vsel %vm1542_vm8, %v14244_v53, %v14245_v49 }
 0x3e2   : > { %v5822_v5 = vmax.f32 %v5780_v25, %v5809_v60  ;;  %v5823_v13 = vmax.f32 %v5781_v30, %v5810_v3  ;;  %v5824_v33 = vmax.f32 %v5782_v38, %v5811_v14  ;;  %v15751_v38 = vld [vmem:[%s17403_s3 + $0x10] sm:$0xff]   ;;  %v15837_v60 = vld [vmem:[%s17403_s3 + $0x20] sm:$0xff]  }
 0x3e4   : > { %v15602_v31 = vpack.c.bf16 %v5822_v5, %v5822_v5  ;;  %v15604_v11 = vpack.c.bf16 %v5823_v13, %v5823_v13  ;;  %v15617_v44 = vpack.c.bf16 %v5824_v33, %v5824_v33 }
 0x3e5   : > { %v14248_v35 = vpop.permute.xlu0 %14247 }
 0x3e6   : > { %v14250_v37 = vunpack.i.h.bf16 %v14248_v35  ;;  %v14249_v40 = vunpack.i.l.bf16 %v14248_v35  ;;  %6025 = vrot.lane.b32.xlu1 %v15602_v31, %s14384_s29  ;;  %12084 = vmatprep.subr.msk.bf16.mxu0 %vm5859_vm2, %v15604_v11  ;;  %v5861_v17 = vsel %vm5859_vm2, %v15602_v31, 0  ;;  %v15639_v57 = vsel %vm5859_vm2, %v15617_v44, 0 }
 0x3e7   : > { %6027 = vrot.lane.b32.xlu0 %v15604_v11, %s14384_s29  ;;  %5876 = vmatpush1.bf16.msra.mxu0 %v5861_v17  ;;  %17445 = vst [vmem:[#allocation5_spill] sm:$0xff] %v15639_v57  ;;  %v5837_v17 = vld [vmem:[%s17404_s4 + $0x8] sm:$0xff] }
 0x3e8   : > { %v5812_v47 = vsel %vm1542_vm8, %v14245_v49, %v14249_v40  ;;  %v5813_v12 = vsel %vm1542_vm8, %v14249_v40, %v14250_v37  ;;  %12822 = vmatprep.subr.bf16.mxu0 %v17429_v29  ;;  %v15882_v40 = vld [vmem:[%s17403_s3 + $0x28] sm:$0xff]  }
 0x3e9   : > { %v5825_v54 = vmax.f32 %v5783_v46, %v5812_v47  ;;  %v5826_v27 = vmax.f32 %v5784_v1, %v5813_v12  ;;  %v15794_v1 = vld [vmem:[%s17403_s3 + $0x18] sm:$0xff]  }
 0x3ea   : > { %6029 = vrot.lane.b32.xlu1 %v15617_v44, %s14384_s29  ;;  %12085 = vmatmul.mubr.msk.bf16.vlgmr.msra.gmra.mrb[8].mxu0 %vm5855_vm4, %v14289_v42 }
 0x3eb   : > { %v15627_v55 = vpack.c.bf16 %v5825_v54, %v5825_v54  ;;  %v15629_v56 = vpack.c.bf16 %v5826_v27, %v5826_v27  ;;  %5806 = vrot.lane.b32.xlu0 %v15622_v50, %s14387_s17  ;;  %12824 = vmatprep.mubr.msk.bf16.mxu0 %vm14383_vm3, %v17429_v29  ;;  %s17419_s17 = smov 122  }
 0x3ed   : > { %12086 = vmatprep.subr.msk.bf16.mxu1 %vm5859_vm2, %v15627_v55  ;;  %v15643_v58 = vsel %vm5859_vm2, %v15629_v56, 0 }
 0x3ee   : > { %17446 = vst [vmem:[#allocation6_spill] sm:$0xff] %v15643_v58  ;;  %6033 = vrot.lane.b32.xlu1 %v15629_v56, %s14384_s29  ;;  %5919 = vmatpush1.bf16.msra.mxu1 %v15639_v57 }
 0x3ef   : > { %6202 = vrot.lane.b32.xlu0 %v15602_v31, %s17417_s16  ;;  %12823 = vmatpush3.bf16.msra.mxu0 %v15643_v58 }
 0x3f1   : > { %12087 = vmatmul.mubr.msk.bf16.vlgmr.msra.gmra.mrb[8].mxu1 %vm5855_vm4, %v14289_v42 }
 0x3f2   : > { %6204 = vrot.lane.b32.xlu1 %v15604_v11, %s17417_s16  ;;  %12825 = vmatmul.mubr.msk.bf16.vlgmr.msra.gmra.mrb[12].mxu0 %vm5855_vm4, %v14289_v42 }
 0x3f3   : > { %6206 = vrot.lane.b32.xlu0 %v15617_v44, %s17417_s16  ;;  %6089 = vmatprep.mubr.bf16.mxu0 %v17423_v4 }
 0x3f4   : > { %6132 = vmatprep.mubr.bf16.mxu1 %v17423_v4 }
 0x3f6   : > { %6210 = vrot.lane.b32.xlu1 %v15629_v56, %s17417_s16 }
 0x3f7   : > { %6379 = vrot.lane.b32.xlu0 %v15602_v31, %s17419_s17 }
 0x3fa   : > { %6381 = vrot.lane.b32.xlu1 %v15604_v11, %s17419_s17 }
 0x3fb   : > { %6383 = vrot.lane.b32.xlu0 %v15617_v44, %s17419_s17 }
 0x3fe   : > { %6387 = vrot.lane.b32.xlu1 %v15629_v56, %s17419_s17 }
 0x3ff   : > { %6557 = vrot.lane.b32.xlu0 %v15602_v31, %s17422_s28 }
 0x402   : > { %6559 = vrot.lane.b32.xlu1 %v15604_v11, %s17422_s28 }
 0x403   : > { %6561 = vrot.lane.b32.xlu0 %v15617_v44, %s17422_s28 }
 0x406   : > { %6565 = vrot.lane.b32.xlu1 %v15629_v56, %s17422_s28 }
 0x407   : > { %6736 = vrot.lane.b32.xlu0 %v15602_v31, %s17437_s26 }
 0x40a   : > { %6738 = vrot.lane.b32.xlu1 %v15604_v11, %s17437_s26 }
 0x40b   : > { %6740 = vrot.lane.b32.xlu0 %v15617_v44, %s17437_s26 }
 0x40e   : > { %6744 = vrot.lane.b32.xlu1 %v15629_v56, %s17437_s26 }
 0x412   : > { %6916 = vrot.lane.b32.xlu1 %v15602_v31, %s17447_s15 }
 0x416   : > { %6920 = vrot.lane.b32.xlu1 %v15617_v44, %s17447_s15 }
 0x458   : > { %v6026_v61 = vpop.permute.xlu1 %6025 }
 0x459   : > { %v6028_v62 = vpop.permute.xlu0 %6027 }
 0x45a   : > { %v6035_v2 = vsel %vm888_vm5, %v6026_v61, %v6028_v62 }
 0x45b   : > { %v6043_v15 = vsel %vm5859_vm2, %v6035_v2, 0 }
 0x45c   : > { %v15690_v6 = vpop.permute.xlu1 %6029 }
 0x45d   : > { %v15694_v8 = vsel %vm888_vm5, %v6028_v62, %v15690_v6  ;;  %v15696_v10 = vpop.permute.xlu0 %5806 }
 0x45e   : > { %v5814_v18 = vsel %vm1542_vm8, %v14250_v37, %v15696_v10  ;;  %12092 = vmatprep.subr.msk.bf16.mxu0 %vm5859_vm2, %v15694_v8  ;;  %vm6567_vm8 = vcmask 982016   ;;  %v5828_v33 = vmax.f32 %v15622_v50, %v15696_v10 }
 0x45f   : > { %v5827_v16 = vmax.f32 %v15595_v7, %v5814_v18  ;;  %6058 = vmatpush1.bf16.msra.mxu0 %v6043_v15 }
 0x460   : > { %v15709_v32 = vpop.permute.xlu1 %6033  ;;  %12828 = vmatprep.subr.bf16.mxu0 %v17429_v29  ;;  %v15876_v37 = vpack.c.bf16 %v5828_v33, %v5828_v33 }
 0x461   : > { %v15712_v34 = vpack.c.bf16 %v5827_v16, %v5827_v16  ;;  %v6203_v19 = vpop.permute.xlu0 %6202  ;;  %v6055_v36 = vsel %vm5859_vm2, %v15709_v32, 0 }
 0x462   : > { %12093 = vmatmul.mubr.msk.bf16.vlgmr.msra.gmra.mrb[8].mxu0 %vm5855_vm4, %v15706_v20  ;;  %17449 = vst [vmem:[#allocation7_spill] sm:$0xff] %v15876_v37 }
 0x463   : > { %6746 = vrot.lane.b32.xlu0 %v15712_v34, %s17437_s26  ;;  %6926 = vrot.lane.b32.xlu1 %v15712_v34, %s17447_s15 }
 0x464   : > { %12829 = vmatpush3.bf16.msra.mxu0 %v6055_v36  ;;  %v6205_v23 = vpop.permute.xlu1 %6204  ;;  %12830 = vmatprep.mubr.msk.bf16.mxu0 %vm14383_vm3, %v17429_v29  ;;  %v15947_v36 = vld [vmem:[%s17403_s3 + $0x30] sm:$0xff]  }
 0x465   : > { %v15724_v21 = vpop.permute.xlu0 %6206  ;;  %v6212_v28 = vsel %vm1322_vm7, %v6203_v19, %v6205_v23 }
 0x466   : > { %v15728_v26 = vsel %vm1322_vm7, %v6205_v23, %v15724_v21  ;;  %v6220_v30 = vsel %vm5859_vm2, %v6212_v28, 0 }
 0x467   : > { %6918 = vrot.lane.b32.xlu0 %v15604_v11, %s17447_s15  ;;  %7096 = vrot.lane.b32.xlu1 %v15602_v31, %s17448_s19 }
 0x468   : > { %12100 = vmatprep.subr.msk.bf16.mxu0 %vm5859_vm2, %v15728_v26  ;;  %v15737_v25 = vpop.permute.xlu1 %6210 }
 0x469   : > { %v6380_v24 = vpop.permute.xlu0 %6379  ;;  %v6232_v48 = vsel %vm5859_vm2, %v15737_v25, 0 }
 0x46a   : > { %12831 = vmatmul.mubr.msk.bf16.vlgmr.msra.gmra.mrb[12].mxu0 %vm5855_vm4, %v15706_v20 }
 0x46b   : > { %6924 = vrot.lane.b32.xlu0 %v15629_v56, %s17447_s15  ;;  %7100 = vrot.lane.b32.xlu1 %v15617_v44, %s17448_s19 }
 0x46c   : > { %6235 = vmatpush1.bf16.msra.mxu0 %v6220_v30  ;;  %6266 = vmatprep.mubr.bf16.mxu0 %v17423_v4  ;;  %v6382_v45 = vpop.permute.xlu1 %6381 }
 0x46d   : > { %12834 = vmatprep.subr.bf16.mxu0 %v17429_v29  ;;  %v15757_v46 = vpop.permute.xlu0 %6383  ;;  %v6390_v52 = vsel %vm6389_vm6, %v6380_v24, %v6382_v45 }
 0x46e   : > { %v15765_v51 = vsel %vm6389_vm6, %v6382_v45, %v15757_v46  ;;  %v6398_v59 = vsel %vm5859_vm2, %v6390_v52, 0 }
 0x46f   : > { %7104 = vrot.lane.b32.xlu1 %v15629_v56, %s17448_s19  ;;  %6031 = vrot.lane.b32.xlu0 %v15627_v55, %s14384_s29 }
 0x470   : > { %v15781_v0 = vpop.permute.xlu1 %6387 }
 0x471   : > { %v6558_v63 = vpop.permute.xlu0 %6557  ;;  %v6410_v22 = vsel %vm5859_vm2, %v15781_v0, 0 }
 0x472   : > { %12101 = vmatmul.mubr.msk.bf16.vlgmr.msra.gmra.mrb[8].mxu0 %vm5855_vm4, %v15751_v38 }
 0x473   : > { %7276 = vrot.lane.b32.xlu1 %v15602_v31, %s14404_s18  ;;  %12835 = vmatpush3.bf16.msra.mxu0 %v6232_v48 }
 0x474   : > { %7098 = vrot.lane.b32.xlu0 %v15604_v11, %s17448_s19  ;;  %12108 = vmatprep.subr.msk.bf16.mxu0 %vm5859_vm2, %v15765_v51  ;;  %v6560_v9 = vpop.permute.xlu1 %6559 }
 0x475   : > { %12836 = vmatprep.mubr.msk.bf16.mxu0 %vm14383_vm3, %v17429_v29  ;;  %v15798_v7 = vpop.permute.xlu0 %6561  ;;  %v6568_v41 = vsel %vm6567_vm8, %v6558_v63, %v6560_v9 }
 0x476   : > { %v15808_v39 = vsel %vm6567_vm8, %v6560_v9, %v15798_v7  ;;  %v6576_v43 = vsel %vm5859_vm2, %v6568_v41, 0 }
 0x477   : > { %7280 = vrot.lane.b32.xlu1 %v15617_v44, %s14404_s18 }
 0x478   : > { %6208 = vrot.lane.b32.xlu0 %v15627_v55, %s17417_s16  ;;  %s17421_s16 = smov 56   ;;  %v15824_v53 = vpop.permute.xlu1 %6565 }
 0x479   : > { %v6737_v49 = vpop.permute.xlu0 %6736  ;;  %v6588_v5 = vsel %vm5859_vm2, %v15824_v53, 0 }
 0x47a   : > { %12837 = vmatmul.mubr.msk.bf16.vlgmr.msra.gmra.mrb[12].mxu0 %vm5855_vm4, %v15751_v38 }
 0x47b   : > { %7284 = vrot.lane.b32.xlu1 %v15629_v56, %s14404_s18  ;;  %6413 = vmatpush1.bf16.msra.mxu0 %v6398_v59 }
 0x47c   : > { %7106 = vrot.lane.b32.xlu0 %v15712_v34, %s17448_s19  ;;  %6444 = vmatprep.mubr.bf16.mxu0 %v17423_v4  ;;  %v6739_v14 = vpop.permute.xlu1 %6738 }
 0x47d   : > { %12840 = vmatprep.subr.bf16.mxu0 %v17429_v29  ;;  %v15841_v3 = vpop.permute.xlu0 %6740 }
 0x47e   : > { %v15851_v13 = vsel %vm2642_vm13, %v6739_v14, %v15841_v3 }
 0x47f   : > { %6563 = vrot.lane.b32.xlu1 %v15627_v55, %s17422_s28 }
 0x480   : > { %7278 = vrot.lane.b32.xlu0 %v15604_v11, %s14404_s18  ;;  %v15913_v42 = vpop.permute.xlu1 %6744 }
 0x482   : > { %12109 = vmatmul.mubr.msk.bf16.vlgmr.msra.gmra.mrb[8].mxu0 %vm5855_vm4, %v15794_v1 }
 0x483   : > { %12841 = vmatpush3.bf16.msra.mxu0 %v6410_v22  ;;  %7459 = vrot.lane.b32.xlu1 %v15604_v11, %s17421_s16 }
 0x484   : > { %6385 = vrot.lane.b32.xlu0 %v15627_v55, %s17419_s17  ;;  %12116 = vmatprep.subr.msk.bf16.mxu0 %vm5859_vm2, %v15808_v39  ;;  %v6917_v47 = vpop.permute.xlu1 %6916  ;;  %s17473_s17 = smov 64  }
 0x485   : > { %12842 = vmatprep.mubr.msk.bf16.mxu0 %vm14383_vm3, %v17429_v29 }
 0x487   : > { %7465 = vrot.lane.b32.xlu1 %v15629_v56, %s17421_s16 }
 0x488   : > { %7286 = vrot.lane.b32.xlu0 %v15712_v34, %s14404_s18  ;;  %v15915_v12 = vpop.permute.xlu1 %6920 }
 0x48a   : > { %12843 = vmatmul.mubr.msk.bf16.vlgmr.msra.gmra.mrb[12].mxu0 %vm5855_vm4, %v15794_v1 }
 0x48b   : > { %6591 = vmatpush1.bf16.msra.mxu0 %v6576_v43  ;;  %6742 = vrot.lane.b32.xlu1 %v15627_v55, %s17437_s26 }
 0x48c   : > { %7457 = vrot.lane.b32.xlu0 %v15602_v31, %s17421_s16  ;;  %6622 = vmatprep.mubr.bf16.mxu0 %v17423_v4  ;;  %v6748_v31 = vsel %vm2642_vm13, %v6737_v49, %v6739_v14 }
 0x48d   : > { %12846 = vmatprep.subr.bf16.mxu0 %v17429_v29  ;;  %v6757_v35 = vsel %vm5859_vm2, %v6748_v31, 0  ;;  %v16016_v31 = vld [vmem:[%s17403_s3 + $0x38] sm:$0xff]  }
 0x48f   : > { %7102 = vrot.lane.b32.xlu1 %v15627_v55, %s17448_s19 }
 0x490   : > { %7461 = vrot.lane.b32.xlu0 %v15617_v44, %s17421_s16 }
 0x492   : > { %12117 = vmatmul.mubr.msk.bf16.vlgmr.msra.gmra.mrb[8].mxu0 %vm5855_vm4, %v15837_v60 }
 0x493   : > { %12847 = vmatpush3.bf16.msra.mxu0 %v6588_v5  ;;  %7282 = vrot.lane.b32.xlu1 %v15627_v55, %s14404_s18 }
 0x494   : > { %7467 = vrot.lane.b32.xlu0 %v15712_v34, %s17421_s16  ;;  %12124 = vmatprep.subr.msk.bf16.mxu0 %vm5859_vm2, %v15851_v13 }
 0x495   : > { %12848 = vmatprep.mubr.msk.bf16.mxu0 %vm14383_vm3, %v17429_v29 }
 0x497   : > { %7463 = vrot.lane.b32.xlu1 %v15627_v55, %s17421_s16  ;;  %s17450_s16 = smov 124  }
 0x498   : > { %6922 = vrot.lane.b32.xlu0 %v15627_v55, %s17447_s15 }
 0x49a   : > { %12849 = vmatmul.mubr.msk.bf16.vlgmr.msra.gmra.mrb[12].mxu0 %vm5855_vm4, %v15837_v60 }
 0x49b   : > { %6772 = vmatpush1.bf16.msra.mxu0 %v6757_v35  ;;  %8260 = vrot.lane.b32.xlu1 %v15712_v34, %s17422_s28  ;;  %s17451_s28 = smov 122  }
 0x49c   : > { %7789 = vrot.lane.b32.xlu0 %v15712_v34, %s14384_s29  ;;  %6803 = vmatprep.mubr.bf16.mxu0 %v17423_v4 }
 0x49d   : > { %12852 = vmatprep.subr.bf16.mxu0 %v17429_v29 }
 0x49f   : > { %8572 = vrot.lane.b32.xlu1 %v15876_v37, %s17447_s15  ;;  %s17452_s15 = smov 56  }
 0x4a0   : > { %7946 = vrot.lane.b32.xlu0 %v15712_v34, %s17450_s16 }
 0x4a2   : > { %12125 = vmatmul.mubr.msk.bf16.vlgmr.msra.gmra.mrb[8].mxu0 %vm5855_vm4, %v15882_v40 }
 0x4a3   : > { %8880 = vrot.lane.b32.xlu1 %v15876_v37, %s14404_s18  ;;  %12854 = vmatprep.mubr.msk.bf16.mxu0 %vm14383_vm3, %v17429_v29  ;;  %s17453_s18 = smov 120  }
 0x4a4   : > { %8103 = vrot.lane.b32.xlu0 %v15712_v34, %s17451_s28 }
 0x4a7   : > { %9339 = vrot.lane.b32.xlu1 %v15876_v37, %s14384_s29 }
 0x4a8   : > { %8418 = vrot.lane.b32.xlu0 %v15876_v37, %s17437_s26 }
 0x4ab   : > { %9653 = vrot.lane.b32.xlu1 %v15876_v37, %s17451_s28 }
 0x4ac   : > { %8726 = vrot.lane.b32.xlu0 %v15876_v37, %s17448_s19  ;;  %s12379_s19 = sshll.u32 %s14495_s25, 4  ;;  %s14408_s25 = smov [#allocation2]  }
 0x4ad   : > { %s14318_s28 = sshll.u32 %s14408_s25, 4  ;;  %s14319_s28 = int_to_ptr.vmem [resolvable:$false] %s14318_s28 }
 0x4ae   : > { %s14320_s1 = scalar_lea.vmem %s14319_s28, 32 }
 0x4b0   : > { %9034 = vrot.lane.b32.xlu0 %v15876_v37, %s17452_s15 }
 0x4b4   : > { %9496 = vrot.lane.b32.xlu0 %v15876_v37, %s17450_s16  ;;  %s405_s16 = scalar_lea.vmem [#allocation2], %s404_s20 }
 0x4b5   : > { %s11898_s26 = sshll.u32 %s405_s16, 4  ;;  %s17360_s26 = int_to_ptr.vmem [resolvable:$true] %s11898_s26 }
 0x4b6   : > { %p14321_p0 = scmp.lt.s32.totalorder %s17360_s26, %s14319_s28 }
 0x4b8   : > { %9810 = vrot.lane.b32.xlu0 %v15876_v37, %s17453_s18  ;;  %s17358_s18 = scalar_lea.hbm %s17412_s12, %s12379_s19 }
 0x4bc   : > { %5845 = vperm.xlu0 %14220, %v5837_v17  }
 0x4d5   : > { %v15917_v50 = vpop.permute.xlu0 %6746  ;;  %v15919_v54 = vpop.permute.xlu1 %6926 }
 0x4d6   : > { %v15924_v27 = vsel %vm2642_vm13, %v15913_v42, %v15917_v50 }
 0x4d7   : > { %v6769_v61 = vsel %vm5859_vm2, %v15924_v27, 0 }
 0x4d8   : > { %12853 = vmatpush3.bf16.msra.mxu0 %v6769_v61 }
 0x4d9   : > { %v6919_v62 = vpop.permute.xlu0 %6918  ;;  %v7097_v2 = vpop.permute.xlu1 %7096 }
 0x4da   : > { %v6928_v10 = vsel %vm3082_vm15, %v6917_v47, %v6919_v62  ;;  %v15931_v15 = vsel %vm3082_vm15, %v6919_v62, %v15915_v12 }
 0x4db   : > { %v6937_v18 = vsel %vm5859_vm2, %v6928_v10, 0  ;;  %12855 = vmatmul.mubr.msk.bf16.vlgmr.msra.gmra.mrb[12].mxu0 %vm5855_vm4, %v15882_v40  ;;  %12132 = vmatprep.subr.msk.bf16.mxu0 %vm5859_vm2, %v15931_v15 }
 0x4dc   : > { %6952 = vmatpush1.bf16.msra.mxu0 %v6937_v18  ;;  %6983 = vmatprep.mubr.bf16.mxu0 %v17423_v4 }
 0x4dd   : > { %v15939_v16 = vpop.permute.xlu0 %6924  ;;  %v15941_v19 = vpop.permute.xlu1 %7100  ;;  %12858 = vmatprep.subr.bf16.mxu0 %v17429_v29 }
 0x4de   : > { %v15952_v23 = vsel %vm3082_vm15, %v15939_v16, %v15919_v54 }
 0x4df   : > { %v6949_v48 = vsel %vm5859_vm2, %v15952_v23, 0 }
 0x4e1   : > { %v15954_v28 = vpop.permute.xlu1 %7104  ;;  %v6032_v24 = vpop.permute.xlu0 %6031 }
 0x4e2   : > { %v15958_v30 = vsel %vm888_vm5, %v15690_v6, %v6032_v24  ;;  %v15962_v45 = vsel %vm888_vm5, %v6032_v24, %v15709_v32 }
 0x4e3   : > { %v15968_v52 = vsel %vm5859_vm2, %v15958_v30, 0  ;;  %12094 = vmatprep.subr.msk.bf16.mxu1 %vm5859_vm2, %v15962_v45  ;;  %12133 = vmatmul.mubr.msk.bf16.vlgmr.msra.gmra.mrb[8].mxu0 %vm5855_vm4, %v15947_v36 }
 0x4e4   : > { %17454 = vst [vmem:[#allocation8_spill] sm:$0xff] %v15968_v52  ;;  %12859 = vmatpush3.bf16.msra.mxu0 %v6949_v48  ;;  %6101 = vmatpush1.bf16.msra.mxu1 %v15968_v52 }
 0x4e5   : > { %v7277_v6 = vpop.permute.xlu1 %7276  ;;  %12860 = vmatprep.mubr.msk.bf16.mxu0 %vm14383_vm3, %v17429_v29 }
 0x4e6   : > { %v7099_v59 = vpop.permute.xlu0 %7098 }
 0x4e7   : > { %v15979_v63 = vsel %vm3522_vm9, %v7099_v59, %v15941_v19  ;;  %12095 = vmatmul.mubr.msk.bf16.vlgmr.msra.gmra.mrb[8].mxu1 %vm5855_vm4, %v15706_v20  ;;  %v7108_v9 = vsel %vm3522_vm9, %v7097_v2, %v7099_v59 }
 0x4e8   : > { %12140 = vmatprep.subr.msk.bf16.mxu0 %vm5859_vm2, %v15979_v63  ;;  %6309 = vmatprep.mubr.bf16.mxu1 %v17423_v4  ;;  %v7117_v43 = vsel %vm5859_vm2, %v7108_v9, 0 }
 0x4e9   : > { %v15987_v22 = vpop.permute.xlu1 %7280 }
 0x4ea   : > { %v6209_v41 = vpop.permute.xlu0 %6208 }
 0x4eb   : > { %v15992_v49 = vsel %vm1322_vm7, %v15724_v21, %v6209_v41  ;;  %v15996_v14 = vsel %vm1322_vm7, %v6209_v41, %v15737_v25  ;;  %12861 = vmatmul.mubr.msk.bf16.vlgmr.msra.gmra.mrb[12].mxu0 %vm5855_vm4, %v15947_v36 }
 0x4ec   : > { %v16002_v20 = vsel %vm5859_vm2, %v15992_v49, 0  ;;  %12102 = vmatprep.subr.msk.bf16.mxu1 %vm5859_vm2, %v15996_v14  ;;  %7132 = vmatpush1.bf16.msra.mxu0 %v7117_v43 }
 0x4ed   : > { %17455 = vst [vmem:[#allocation9_spill] sm:$0xff] %v16002_v20  ;;  %6278 = vmatpush1.bf16.msra.mxu1 %v16002_v20  ;;  %v16007_v5 = vpop.permute.xlu1 %7284  ;;  %7163 = vmatprep.mubr.bf16.mxu0 %v17423_v4 }
 0x4ee   : > { %v16010_v21 = vpop.permute.xlu0 %7106  ;;  %12864 = vmatprep.subr.bf16.mxu0 %v17429_v29 }
 0x4ef   : > { %v16021_v33 = vsel %vm3522_vm9, %v15954_v28, %v16010_v21 }
 0x4f0   : > { %v7129_v47 = vsel %vm5859_vm2, %v16021_v33, 0 }
 0x4f1   : > { %v6564_v35 = vpop.permute.xlu1 %6563 }
 0x4f2   : > { %v7279_v17 = vpop.permute.xlu0 %7278  ;;  %v16055_v48 = vsel %vm6567_vm8, %v6564_v35, %v15824_v53  ;;  %v16067_v9 = vsel %vm6567_vm8, %v15798_v7, %v6564_v35  ;;  %v16084_v7 = vld [vmem:[%s17403_s3 + $0x40] sm:$0xff]  }
 0x4f3   : > { %v16027_v61 = vsel %vm7288_vm10, %v7279_v17, %v15987_v22  ;;  %12103 = vmatmul.mubr.msk.bf16.vlgmr.msra.gmra.mrb[8].mxu1 %vm5855_vm4, %v15751_v38  ;;  %12141 = vmatmul.mubr.msk.bf16.vlgmr.msra.gmra.mrb[8].mxu0 %vm5855_vm4, %v16016_v31  ;;  %v7289_v18 = vsel %vm7288_vm10, %v7277_v6, %v7279_v17 }
 0x4f4   : > { %12865 = vmatpush3.bf16.msra.mxu0 %v7129_v47  ;;  %12866 = vmatprep.mubr.msk.bf16.mxu0 %vm14383_vm3, %v17429_v29  ;;  %v7298_v6 = vsel %vm5859_vm2, %v7289_v18, 0  ;;  %v16077_v47 = vsel %vm5859_vm2, %v16067_v9, 0 }
 0x4f5   : > { %12148 = vmatprep.subr.msk.bf16.mxu0 %vm5859_vm2, %v16027_v61  ;;  %v7460_v62 = vpop.permute.xlu1 %7459  ;;  %6487 = vmatprep.mubr.bf16.mxu1 %v17423_v4  ;;  %17457 = vst [vmem:[#allocation11_spill] sm:$0xff] %v16077_v47 }
 0x4f6   : > { %v6386_v2 = vpop.permute.xlu0 %6385 }
 0x4f7   : > { %v16040_v10 = vsel %vm6389_vm6, %v15757_v46, %v6386_v2  ;;  %v16044_v38 = vsel %vm6389_vm6, %v6386_v2, %v15781_v0 }
 0x4f8   : > { %v16049_v24 = vsel %vm5859_vm2, %v16040_v10, 0  ;;  %12110 = vmatprep.subr.msk.bf16.mxu1 %vm5859_vm2, %v16044_v38 }
 0x4f9   : > { %17456 = vst [vmem:[#allocation10_spill] sm:$0xff] %v16049_v24  ;;  %6456 = vmatpush1.bf16.msra.mxu1 %v16049_v24  ;;  %v16058_v46 = vpop.permute.xlu1 %7465 }
 0x4fa   : > { %v7287_v59 = vpop.permute.xlu0 %7286  ;;  %12118 = vmatprep.subr.msk.bf16.mxu1 %vm5859_vm2, %v16055_v48 }
 0x4fb   : > { %12867 = vmatmul.mubr.msk.bf16.vlgmr.msra.gmra.mrb[12].mxu0 %vm5855_vm4, %v16016_v31  ;;  %v16088_v35 = vsel %vm7288_vm10, %v16007_v5, %v7287_v59 }
 0x4fc   : > { %7313 = vmatpush1.bf16.msra.mxu0 %v7298_v6  ;;  %7344 = vmatprep.mubr.bf16.mxu0 %v17423_v4  ;;  %17458 = vst [vmem:[#allocation12_spill] sm:$0xff] %v16088_v35 }
 0x4fd   : > { %v6743_v41 = vpop.permute.xlu1 %6742  ;;  %12870 = vmatprep.subr.bf16.mxu0 %v17429_v29 }
 0x4fe   : > { %v16073_v43 = vsel %vm2642_vm13, %v6743_v41, %v15913_v42  ;;  %v7458_v17 = vpop.permute.xlu0 %7457 }
 0x4ff   : > { %12111 = vmatmul.mubr.msk.bf16.vlgmr.msra.gmra.mrb[8].mxu1 %vm5855_vm4, %v15794_v1  ;;  %v7310_v1 = vsel %vm5859_vm2, %v16088_v35, 0  ;;  %v7470_v24 = vsel %vm7469_vm11, %v7458_v17, %v7460_v62 }
 0x500   : > { %6634 = vmatpush1.bf16.msra.mxu1 %v16077_v47  ;;  %6665 = vmatprep.mubr.bf16.mxu1 %v17423_v4  ;;  %v16112_v47 = vsel %vm2642_vm13, %v15841_v3, %v6743_v41  ;;  %v17461_v41 = vmov 0.0  }
 0x501   : > { %12126 = vmatprep.subr.msk.bf16.mxu1 %vm5859_vm2, %v16073_v43  ;;  %v7103_v42 = vpop.permute.xlu1 %7102 }
 0x502   : > { %v16094_v2 = vpop.permute.xlu0 %7461 }
 0x503   : > { %v16100_v18 = vsel %vm7469_vm11, %v7460_v62, %v16094_v2  ;;  %12149 = vmatmul.mubr.msk.bf16.vlgmr.msra.gmra.mrb[8].mxu0 %vm5855_vm4, %v16084_v7  ;;  %v17460_v62 = vmov 0  }
 0x504   : > { %17459 = vst [vmem:[#allocation13_spill] sm:$0xff] %v16100_v18  ;;  %12871 = vmatpush3.bf16.msra.mxu0 %v7310_v1  ;;  %12872 = vmatprep.mubr.msk.bf16.mxu0 %vm14383_vm3, %v17429_v29  ;;  %v6763_v1 = vsel %vm5859_vm2, %v16112_v47, 0  ;;  %v7479_v29 = vsel %vm5859_vm2, %v7470_v24, 0 }
 0x505   : > { %12156 = vmatprep.subr.msk.bf16.mxu0 %vm5859_vm2, %v16100_v18  ;;  %v16108_v6 = vpop.permute.xlu1 %7282 }
 0x506   : > { %v7468_v4 = vpop.permute.xlu0 %7467 }
 0x509   : > { %v16115_v20 = vpop.permute.xlu1 %7463 }
 0x50a   : > { %v6923_v52 = vpop.permute.xlu0 %6922 }
 0x50b   : > { %v16122_v37 = vsel %vm3082_vm15, %v6923_v52, %v15939_v16  ;;  %12119 = vmatmul.mubr.msk.bf16.vlgmr.msra.gmra.mrb[8].mxu1 %vm5855_vm4, %v15837_v60  ;;  %12873 = vmatmul.mubr.msk.bf16.vlgmr.msra.gmra.mrb[12].mxu0 %vm5855_vm4, %v16084_v7  ;;  %v16140_v60 = vld [vmem:[%s17403_s3 + $0x48] sm:$0xff]   ;;  %v16156_v58 = vsel %vm3082_vm15, %v15915_v12, %v6923_v52  ;;  %v16173_v12 = vsel %vm3522_vm9, %v7103_v42, %v15954_v28  ;;  %v14299_v28 = vld [vmem:[%s17403_s3 + $0x50] sm:$0xff]  }
 0x50c   : > { %6815 = vmatpush1.bf16.msra.mxu1 %v6763_v1  ;;  %7494 = vmatpush1.bf16.msra.mxu0 %v7479_v29  ;;  %v16144_v29 = vsel %vm7469_vm11, %v16058_v46, %v7468_v4  ;;  %v16193_v52 = vsel %vm3522_vm9, %v15941_v19, %v7103_v42  ;;  %v16208_v19 = vsel %vm7288_vm10, %v16108_v6, %v16007_v5 }
 0x50d   : > { %12134 = vmatprep.subr.msk.bf16.mxu1 %vm5859_vm2, %v16122_v37  ;;  %v16130_v3 = vpop.permute.xlu1 %8260  ;;  %7525 = vmatprep.mubr.bf16.mxu0 %v17460_v62  ;;  %17462 = vst [vmem:[#allocation14_spill] sm:$0xff] %v16144_v29  ;;  %v7491_v1 = vsel %vm5859_vm2, %v16144_v29, 0  ;;  %v6943_v29 = vsel %vm5859_vm2, %v16156_v58, 0 }
 0x50e   : > { %v16133_v24 = vpop.permute.xlu0 %7789  ;;  %12876 = vmatprep.subr.bf16.mxu0 %v17461_v41  ;;  %6846 = vmatprep.mubr.bf16.mxu1 %v17460_v62 }
 0x50f   : > { %v7799_v5 = vsel %vm5859_vm2, %v16133_v24, 0 }
 0x511   : > { %v16146_v16 = vpop.permute.xlu1 %8572 }
 0x512   : > { %v16148_v17 = vpop.permute.xlu0 %7946 }
 0x513   : > { %12157 = vmatmul.mubr.msk.bf16.vlgmr.msra.gmra.mrb[8].mxu0 %vm5855_vm4, %v16140_v60 }
 0x514   : > { %12877 = vmatpush3.bf16.msra.mxu0 %v7491_v1  ;;  %12878 = vmatprep.mubr.msk.bf16.mxu0 %vm14383_vm3, %v17461_v41  ;;  %v7642_v1 = vsel %vm5859_vm2, %v15712_v34, 0 }
 0x515   : > { %12164 = vmatprep.subr.msk.bf16.mxu0 %vm5859_vm2, %v15617_v44  ;;  %v8881_v57 = vpop.permute.xlu1 %8880 }
 0x516   : > { %v16163_v18 = vsel %vm7288_vm10, %v7287_v59, %v8881_v57  ;;  %v16165_v35 = vpop.permute.xlu0 %8103  ;;  %v5864_v57 = vsel %vm5859_vm2, %v15604_v11, 0 }
 0x517   : > { %12127 = vmatmul.mubr.msk.bf16.vlgmr.msra.gmra.mrb[8].mxu1 %vm5855_vm4, %v15882_v40 }
 0x518   : > { %6995 = vmatpush1.bf16.msra.mxu1 %v6943_v29  ;;  %7026 = vmatprep.mubr.bf16.mxu1 %v17460_v62  ;;  %v7123_v29 = vsel %vm5859_vm2, %v16193_v52, 0 }
 0x519   : > { %12142 = vmatprep.subr.msk.bf16.mxu1 %vm5859_vm2, %v16173_v12 }
 0x51a   : > { %v16178_v44 = vpop.permute.xlu0 %8418 }
 0x51b   : > { %12879 = vmatmul.mubr.msk.bf16.vlgmr.msra.gmra.mrb[12].mxu0 %vm5855_vm4, %v16140_v60 }
 0x51c   : > { %7645 = vmatpush1.bf16.msra.mxu0 %v5864_v57  ;;  %7676 = vmatprep.mubr.bf16.mxu0 %v17460_v62  ;;  %v6407_v57 = vsel %vm5859_vm2, %v16044_v38, 0 }
 0x51d   : > { %12882 = vmatprep.subr.bf16.mxu0 %v17461_v41 }
 0x51e   : > { %v16186_v40 = vpop.permute.xlu0 %8726 }
 0x522   : > { %v9035_v59 = vpop.permute.xlu0 %9034 }
 0x523   : > { %v16198_v11 = vsel %vm7469_vm11, %v7468_v4, %v9035_v59  ;;  %12135 = vmatmul.mubr.msk.bf16.vlgmr.msra.gmra.mrb[8].mxu1 %vm5855_vm4, %v15947_v36  ;;  %12165 = vmatmul.mubr.msk.bf16.vlgmr.msra.gmra.mrb[8].mxu0 %vm5855_vm4, %v14299_v28  ;;  %v6046_v4 = vsel %vm5859_vm2, %v15694_v8, 0  ;;  %v16223_v36 = vsel %vm7288_vm10, %v15987_v22, %v16108_v6  ;;  %v14300_v8 = vld [vmem:[%s17403_s3 + $0x58] sm:$0xff]   ;;  %v16237_v22 = vsel %vm7469_vm11, %v16115_v20, %v16058_v46 }
 0x524   : > { %7175 = vmatpush1.bf16.msra.mxu1 %v7123_v29  ;;  %12883 = vmatpush3.bf16.msra.mxu0 %v7642_v1  ;;  %v6223_v46 = vsel %vm5859_vm2, %v15728_v26, 0  ;;  %v14301_v26 = vld [vmem:[%s17403_s3 + $0x60] sm:$0xff]   ;;  %v6579_v6 = vsel %vm5859_vm2, %v15808_v39, 0  ;;  %v16328_v39 = vsel %vm6389_vm6, %v15781_v0, %v16165_v35  ;;  %v6760_v0 = vsel %vm5859_vm2, %v15851_v13, 0  ;;  %v14304_v13 = vld [vmem:[%s17403_s3 + $0x78] sm:$0xff]   ;;  %v17464_v29 = vld [vmem:[#allocation14_spill] sm:$0xff] }
 0x525   : > { %12150 = vmatprep.subr.msk.bf16.mxu1 %vm5859_vm2, %v16208_v19  ;;  %12172 = vmatprep.subr.msk.bf16.mxu0 %vm5859_vm2, %v15958_v30  ;;  %v7304_v30 = vsel %vm5859_vm2, %v16223_v36, 0  ;;  %v6585_v59 = vsel %vm5859_vm2, %v16055_v48, 0 }
 0x526   : > { %12884 = vmatprep.mubr.msk.bf16.mxu0 %vm14383_vm3, %v17461_v41  ;;  %7206 = vmatprep.mubr.bf16.mxu1 %v17460_v62 }
 0x52b   : > { %12885 = vmatmul.mubr.msk.bf16.vlgmr.msra.gmra.mrb[12].mxu0 %vm5855_vm4, %v14299_v28 }
 0x52c   : > { %7802 = vmatpush1.bf16.msra.mxu0 %v6046_v4  ;;  %7833 = vmatprep.mubr.bf16.mxu0 %v17460_v62  ;;  %v7488_v4 = vsel %vm5859_vm2, %v16237_v22, 0 }
 0x52d   : > { %12888 = vmatprep.subr.bf16.mxu0 %v17461_v41 }
 0x52f   : > { %12143 = vmatmul.mubr.msk.bf16.vlgmr.msra.gmra.mrb[8].mxu1 %vm5855_vm4, %v16016_v31  ;;  %v16252_v31 = vsel %vm7469_vm11, %v16094_v2, %v16115_v20  ;;  %v16283_v20 = vsel %vm888_vm5, %v15709_v32, %v16133_v24  ;;  %v14302_v32 = vld [vmem:[%s17403_s3 + $0x68] sm:$0xff]   ;;  %v16305_v2 = vsel %vm1322_vm7, %v15737_v25, %v16148_v17  ;;  %v6229_v25 = vsel %vm5859_vm2, %v15996_v14, 0 }
 0x530   : > { %7356 = vmatpush1.bf16.msra.mxu1 %v7304_v30  ;;  %7387 = vmatprep.mubr.bf16.mxu1 %v17460_v62  ;;  %v7485_v42 = vsel %vm5859_vm2, %v16252_v31, 0  ;;  %v9340_v30 = vpop.permute.xlu1 %9339 }
 0x531   : > { %12158 = vmatprep.subr.msk.bf16.mxu1 %vm5859_vm2, %v16237_v22  ;;  %v17468_v22 = vld [vmem:[#allocation7_spill] sm:$0xff] }
 0x533   : > { %12173 = vmatmul.mubr.msk.bf16.vlgmr.msra.gmra.mrb[8].mxu0 %vm5855_vm4, %v14300_v8 }
 0x534   : > { %12889 = vmatpush3.bf16.msra.mxu0 %v7799_v5  ;;  %12890 = vmatprep.mubr.msk.bf16.mxu0 %vm14383_vm3, %v17461_v41  ;;  %v9192_v5 = vsel %vm5859_vm2, %v17468_v22, 0  ;;  %v10104_v22 = vld [vmem:[%s17405_s5 + $0x88] sm:$0xff] }
 0x535   : > { %12180 = vmatprep.subr.msk.bf16.mxu0 %vm5859_vm2, %v15992_v49  ;;  %v7956_v49 = vsel %vm5859_vm2, %v16148_v17, 0 }
 0x53b   : > { %12151 = vmatmul.mubr.msk.bf16.vlgmr.msra.gmra.mrb[8].mxu1 %vm5855_vm4, %v16084_v7  ;;  %12891 = vmatmul.mubr.msk.bf16.vlgmr.msra.gmra.mrb[12].mxu0 %vm5855_vm4, %v14300_v8  ;;  %v6052_v7 = vsel %vm5859_vm2, %v15962_v45, 0 }
 0x53c   : > { %7537 = vmatpush1.bf16.msra.mxu1 %v7485_v42  ;;  %7959 = vmatpush1.bf16.msra.mxu0 %v6223_v46  ;;  %v17469_v42 = vld [vmem:[#allocation8_spill] sm:$0xff] }
 0x53d   : > { %12166 = vmatprep.subr.msk.bf16.mxu1 %vm5859_vm2, %v15629_v56  ;;  %7990 = vmatprep.mubr.bf16.mxu0 %v17460_v62  ;;  %v5870_v56 = vsel %vm5859_vm2, %v15627_v55, 0 }
 0x53e   : > { %12894 = vmatprep.subr.bf16.mxu0 %v17461_v41  ;;  %7568 = vmatprep.mubr.bf16.mxu1 %v17460_v62 }
 0x543   : > { %12181 = vmatmul.mubr.msk.bf16.vlgmr.msra.gmra.mrb[8].mxu0 %vm5855_vm4, %v14301_v26 }
 0x544   : > { %12895 = vmatpush3.bf16.msra.mxu0 %v7956_v49  ;;  %12896 = vmatprep.mubr.msk.bf16.mxu0 %vm14383_vm3, %v17461_v41  ;;  %v7953_v49 = vsel %vm5859_vm2, %v16305_v2, 0 }
 0x545   : > { %12188 = vmatprep.subr.msk.bf16.mxu0 %vm5859_vm2, %v16040_v10  ;;  %v6401_v10 = vsel %vm5859_vm2, %v15765_v51, 0  ;;  %v8113_v51 = vsel %vm5859_vm2, %v16165_v35, 0 }
 0x547   : > { %12159 = vmatmul.mubr.msk.bf16.vlgmr.msra.gmra.mrb[8].mxu1 %vm5855_vm4, %v16140_v60  ;;  %v8270_v60 = vsel %vm5859_vm2, %v16130_v3, 0 }
 0x548   : > { %7688 = vmatpush1.bf16.msra.mxu1 %v5870_v56  ;;  %7719 = vmatprep.mubr.bf16.mxu1 %v17460_v62 }
 0x549   : > { %12174 = vmatprep.subr.msk.bf16.mxu1 %vm5859_vm2, %v16283_v20 }
 0x54b   : > { %12897 = vmatmul.mubr.msk.bf16.vlgmr.msra.gmra.mrb[12].mxu0 %vm5855_vm4, %v14301_v26 }
 0x54c   : > { %8116 = vmatpush1.bf16.msra.mxu0 %v6401_v10  ;;  %8147 = vmatprep.mubr.bf16.mxu0 %v17460_v62 }
 0x54d   : > { %12900 = vmatprep.subr.bf16.mxu0 %v17461_v41 }
 0x553   : > { %12167 = vmatmul.mubr.msk.bf16.vlgmr.msra.gmra.mrb[8].mxu1 %vm5855_vm4, %v14299_v28  ;;  %12189 = vmatmul.mubr.msk.bf16.vlgmr.msra.gmra.mrb[8].mxu0 %vm5855_vm4, %v14302_v32  ;;  %v16349_v28 = vsel %vm6567_vm8, %v15824_v53, %v16130_v3 }
 0x554   : > { %7845 = vmatpush1.bf16.msra.mxu1 %v6052_v7  ;;  %12901 = vmatpush3.bf16.msra.mxu0 %v8113_v51  ;;  %v14312_v51 = vld [vmem:[%s17403_s3 + $0xb8] sm:$0xff]  }
 0x555   : > { %12182 = vmatprep.subr.msk.bf16.mxu1 %vm5859_vm2, %v16305_v2  ;;  %12196 = vmatprep.subr.msk.bf16.mxu0 %vm5859_vm2, %v16067_v9  ;;  %v14303_v9 = vld [vmem:[%s17403_s3 + $0x70] sm:$0xff]  }
 0x556   : > { %12902 = vmatprep.mubr.msk.bf16.mxu0 %vm14383_vm3, %v17461_v41  ;;  %7876 = vmatprep.mubr.bf16.mxu1 %v17460_v62  ;;  %v17471_v2 = vld [vmem:[#allocation10_spill] sm:$0xff] }
 0x55b   : > { %12903 = vmatmul.mubr.msk.bf16.vlgmr.msra.gmra.mrb[12].mxu0 %vm5855_vm4, %v14302_v32 }
 0x55c   : > { %8273 = vmatpush1.bf16.msra.mxu0 %v6579_v6  ;;  %8304 = vmatprep.mubr.bf16.mxu0 %v17460_v62  ;;  %v14313_v6 = vld [vmem:[%s17403_s3 + $0xc0] sm:$0xff]  }
 0x55d   : > { %12906 = vmatprep.subr.bf16.mxu0 %v17461_v41 }
 0x55f   : > { %12175 = vmatmul.mubr.msk.bf16.vlgmr.msra.gmra.mrb[8].mxu1 %vm5855_vm4, %v14300_v8  ;;  %v17467_v8 = vld [vmem:[#allocation6_spill] sm:$0xff] }
 0x560   : > { %8002 = vmatpush1.bf16.msra.mxu1 %v6229_v25  ;;  %8033 = vmatprep.mubr.bf16.mxu1 %v17460_v62  ;;  %v17472_v25 = vld [vmem:[#allocation11_spill] sm:$0xff] }
 0x561   : > { %12190 = vmatprep.subr.msk.bf16.mxu1 %vm5859_vm2, %v16328_v39 }
 0x563   : > { %12197 = vmatmul.mubr.msk.bf16.vlgmr.msra.gmra.mrb[8].mxu0 %vm5855_vm4, %v14303_v9 }
 0x564   : > { %12907 = vmatpush3.bf16.msra.mxu0 %v8270_v60  ;;  %12908 = vmatprep.mubr.msk.bf16.mxu0 %vm14383_vm3, %v17461_v41 }
 0x565   : > { %12204 = vmatprep.subr.msk.bf16.mxu0 %vm5859_vm2, %v16112_v47  ;;  %v8420_v47 = vsel %vm2642_vm13, %v15917_v50, %v16178_v44  ;;  %v6940_v50 = vsel %vm5859_vm2, %v15931_v15, 0  ;;  %v8574_v44 = vsel %vm3082_vm15, %v15919_v54, %v16146_v16  ;;  %v7120_v54 = vsel %vm5859_vm2, %v15979_v63, 0  ;;  %v14306_v63 = vld [vmem:[%s17403_s3 + $0x88] sm:$0xff]  }
 0x566   : > { %v8425_v53 = vsel %vm5859_vm2, %v8420_v47, 0  ;;  %v8579_v15 = vsel %vm5859_vm2, %v8574_v44, 0  ;;  %v8728_v16 = vsel %vm3522_vm9, %v16010_v21, %v16186_v40  ;;  %v7126_v21 = vsel %vm5859_vm2, %v16173_v12, 0 }
 0x567   : > { %v8887_v12 = vsel %vm5859_vm2, %v16163_v18, 0  ;;  %v7307_v40 = vsel %vm5859_vm2, %v16208_v19, 0  ;;  %v17465_v18 = vld [vmem:[#allocation13_spill] sm:$0xff]  ;;  %v14308_v19 = vld [vmem:[%s17403_s3 + $0x98] sm:$0xff]   ;;  %vm11806_vm15 = vcmask 687104  }
 0x568   : > { %v7482_v1 = vsel %vm5859_vm2, %v17465_v18, 0 }
 0x56b   : > { %12183 = vmatmul.mubr.msk.bf16.vlgmr.msra.gmra.mrb[8].mxu1 %vm5855_vm4, %v14301_v26  ;;  %12909 = vmatmul.mubr.msk.bf16.vlgmr.msra.gmra.mrb[12].mxu0 %vm5855_vm4, %v14303_v9  ;;  %v9349_v26 = vsel %vm5859_vm2, %v9340_v30, 0 }
 0x56c   : > { %8159 = vmatpush1.bf16.msra.mxu1 %v6407_v57  ;;  %8428 = vmatpush1.bf16.msra.mxu0 %v6760_v0 }
 0x56d   : > { %12198 = vmatprep.subr.msk.bf16.mxu1 %vm5859_vm2, %v16349_v28  ;;  %8459 = vmatprep.mubr.bf16.mxu0 %v17460_v62 }
 0x56e   : > { %12912 = vmatprep.subr.bf16.mxu0 %v17461_v41  ;;  %8190 = vmatprep.mubr.bf16.mxu1 %v17460_v62 }
 0x573   : > { %12205 = vmatmul.mubr.msk.bf16.vlgmr.msra.gmra.mrb[8].mxu0 %vm5855_vm4, %v14304_v13 }
 0x574   : > { %12913 = vmatpush3.bf16.msra.mxu0 %v8425_v53  ;;  %12914 = vmatprep.mubr.msk.bf16.mxu0 %vm14383_vm3, %v17461_v41 }
 0x575   : > { %12212 = vmatprep.subr.msk.bf16.mxu0 %vm5859_vm2, %v16156_v58  ;;  %v14305_v58 = vld [vmem:[%s17403_s3 + $0x80] sm:$0xff]  }
 0x577   : > { %12191 = vmatmul.mubr.msk.bf16.vlgmr.msra.gmra.mrb[8].mxu1 %vm5855_vm4, %v14302_v32  ;;  %v8110_v32 = vsel %vm5859_vm2, %v16328_v39, 0 }
 0x578   : > { %8316 = vmatpush1.bf16.msra.mxu1 %v6585_v59  ;;  %8347 = vmatprep.mubr.bf16.mxu1 %v17460_v62 }
 0x579   : > { %12206 = vmatprep.subr.msk.bf16.mxu1 %vm5859_vm2, %v15924_v27  ;;  %v6766_v27 = vsel %vm5859_vm2, %v16073_v43, 0  ;;  %v5836_v43 = vld [vmem:[%s17404_s4] sm:$0xff] }
 0x57a   : > { %5840 = vperm.xlu1 %14251, %v5836_v43  }
 0x57b   : > { %12915 = vmatmul.mubr.msk.bf16.vlgmr.msra.gmra.mrb[12].mxu0 %vm5855_vm4, %v14304_v13 }
 0x57c   : > { %8582 = vmatpush1.bf16.msra.mxu0 %v6940_v50  ;;  %8613 = vmatprep.mubr.bf16.mxu0 %v17460_v62 }
 0x57d   : > { %12918 = vmatprep.subr.bf16.mxu0 %v17461_v41 }
 0x583   : > { %12199 = vmatmul.mubr.msk.bf16.vlgmr.msra.gmra.mrb[8].mxu1 %vm5855_vm4, %v14303_v9  ;;  %12213 = vmatmul.mubr.msk.bf16.vlgmr.msra.gmra.mrb[8].mxu0 %vm5855_vm4, %v14305_v58 }
 0x584   : > { %8471 = vmatpush1.bf16.msra.mxu1 %v6766_v27  ;;  %12919 = vmatpush3.bf16.msra.mxu0 %v8579_v15 }
 0x585   : > { %12214 = vmatprep.subr.msk.bf16.mxu1 %vm5859_vm2, %v15952_v23  ;;  %12220 = vmatprep.subr.msk.bf16.mxu0 %vm5859_vm2, %v16193_v52  ;;  %v6946_v23 = vsel %vm5859_vm2, %v16122_v37, 0  ;;  %v8733_v52 = vsel %vm5859_vm2, %v8728_v16, 0  ;;  %v7301_v37 = vsel %vm5859_vm2, %v16027_v61, 0  ;;  %v14307_v61 = vld [vmem:[%s17403_s3 + $0x90] sm:$0xff]  }
 0x586   : > { %12920 = vmatprep.mubr.msk.bf16.mxu0 %vm14383_vm3, %v17461_v41  ;;  %8502 = vmatprep.mubr.bf16.mxu1 %v17460_v62 }
 0x58b   : > { %12921 = vmatmul.mubr.msk.bf16.vlgmr.msra.gmra.mrb[12].mxu0 %vm5855_vm4, %v14305_v58 }
 0x58c   : > { %8736 = vmatpush1.bf16.msra.mxu0 %v7120_v54  ;;  %8767 = vmatprep.mubr.bf16.mxu0 %v17460_v62 }
 0x58d   : > { %12924 = vmatprep.subr.bf16.mxu0 %v17461_v41 }
 0x58f   : > { %12207 = vmatmul.mubr.msk.bf16.vlgmr.msra.gmra.mrb[8].mxu1 %vm5855_vm4, %v14304_v13 }
 0x590   : > { %8625 = vmatpush1.bf16.msra.mxu1 %v6946_v23  ;;  %8656 = vmatprep.mubr.bf16.mxu1 %v17460_v62 }
 0x591   : > { %12222 = vmatprep.subr.msk.bf16.mxu1 %vm5859_vm2, %v16021_v33  ;;  %v17463_v33 = vld [vmem:[#allocation12_spill] sm:$0xff] }
 0x593   : > { %12221 = vmatmul.mubr.msk.bf16.vlgmr.msra.gmra.mrb[8].mxu0 %vm5855_vm4, %v14306_v63 }
 0x594   : > { %12925 = vmatpush3.bf16.msra.mxu0 %v8733_v52  ;;  %12926 = vmatprep.mubr.msk.bf16.mxu0 %vm14383_vm3, %v17461_v41 }
 0x595   : > { %12228 = vmatprep.subr.msk.bf16.mxu0 %vm5859_vm2, %v16223_v36  ;;  %v9041_v36 = vsel %vm5859_vm2, %v16198_v11, 0  ;;  %v17466_v11 = vld [vmem:[#allocation5_spill] sm:$0xff] }
 0x59b   : > { %12215 = vmatmul.mubr.msk.bf16.vlgmr.msra.gmra.mrb[8].mxu1 %vm5855_vm4, %v14305_v58  ;;  %12927 = vmatmul.mubr.msk.bf16.vlgmr.msra.gmra.mrb[12].mxu0 %vm5855_vm4, %v14306_v63 }
 0x59c   : > { %8779 = vmatpush1.bf16.msra.mxu1 %v7126_v21  ;;  %8890 = vmatpush1.bf16.msra.mxu0 %v7301_v37 }
 0x59d   : > { %12230 = vmatprep.subr.msk.bf16.mxu1 %vm5859_vm2, %v17463_v33  ;;  %8921 = vmatprep.mubr.bf16.mxu0 %v17460_v62 }
 0x59e   : > { %12930 = vmatprep.subr.bf16.mxu0 %v17461_v41  ;;  %8810 = vmatprep.mubr.bf16.mxu1 %v17460_v62 }
 0x5a3   : > { %12229 = vmatmul.mubr.msk.bf16.vlgmr.msra.gmra.mrb[8].mxu0 %vm5855_vm4, %v14307_v61 }
 0x5a4   : > { %12931 = vmatpush3.bf16.msra.mxu0 %v8887_v12  ;;  %12932 = vmatprep.mubr.msk.bf16.mxu0 %vm14383_vm3, %v17461_v41 }
 0x5a5   : > { %12236 = vmatprep.subr.msk.bf16.mxu0 %vm5859_vm2, %v16252_v31  ;;  %v9497_v31 = vpop.permute.xlu0 %9496 }
 0x5a6   : > { %v9498_v46 = vsel %vm1322_vm7, %v16148_v17, %v9497_v31  ;;  %v9654_v17 = vpop.permute.xlu1 %9653  ;;  %vm14407_vm7 = vmmov 1  }
 0x5a7   : > { %12223 = vmatmul.mubr.msk.bf16.vlgmr.msra.gmra.mrb[8].mxu1 %vm5855_vm4, %v14306_v63  ;;  %v9655_v56 = vsel %vm6389_vm6, %v16165_v35, %v9654_v17  ;;  %v9506_v35 = vsel %vm5859_vm2, %v9497_v31, 0 }
 0x5a8   : > { %8933 = vmatpush1.bf16.msra.mxu1 %v7307_v40  ;;  %8964 = vmatprep.mubr.bf16.mxu1 %v17460_v62 }
 0x5a9   : > { %12238 = vmatprep.subr.msk.bf16.mxu1 %vm5859_vm2, %v17464_v29  ;;  %v9811_v10 = vpop.permute.xlu0 %9810 }
 0x5aa   : > { %v9812_v7 = vsel %vm6567_vm8, %v16130_v3, %v9811_v10  ;;  %v9663_v3 = vsel %vm5859_vm2, %v9654_v17, 0  ;;  %v9820_v9 = vsel %vm5859_vm2, %v9811_v10, 0  ;;  %v10089_v17 = vld [vmem:[%s17405_s5 + $0x10] sm:$0xff] }
 0x5ab   : > { %12933 = vmatmul.mubr.msk.bf16.vlgmr.msra.gmra.mrb[12].mxu0 %vm5855_vm4, %v14307_v61 }
 0x5ac   : > { %9044 = vmatpush1.bf16.msra.mxu0 %v7482_v1  ;;  %9075 = vmatprep.mubr.bf16.mxu0 %v17460_v62 }
 0x5ad   : > { %12936 = vmatprep.subr.bf16.mxu0 %v17461_v41  ;;  %v5846_v59 = vpop.permute.xlu0 %5845 }
 0x5b3   : > { %12231 = vmatmul.mubr.msk.bf16.vlgmr.msra.gmra.mrb[8].mxu1 %vm5855_vm4, %v14307_v61  ;;  %12237 = vmatmul.mubr.msk.bf16.vlgmr.msra.gmra.mrb[8].mxu0 %vm5855_vm4, %v14308_v19 }
 0x5b4   : > { %9087 = vmatpush1.bf16.msra.mxu1 %v7488_v4  ;;  %12937 = vmatpush3.bf16.msra.mxu0 %v9041_v36 }
 0x5b5   : > { %12244 = vmatprep.subr.msk.bf16.mxu0 %vm5859_vm2, %v15627_v55  ;;  %12246 = vmatprep.subr.msk.bf16.mxu1 %vm5859_vm2, %v15712_v34  ;;  %v14309_v55 = vld [vmem:[%s17403_s3 + $0xa0] sm:$0xff]   ;;  %v9341_v34 = vsel %vm888_vm5, %v16133_v24, %v9340_v30  ;;  %v7796_v24 = vsel %vm5859_vm2, %v16283_v20, 0 }
 0x5b6   : > { %12938 = vmatprep.mubr.msk.bf16.mxu0 %vm14383_vm3, %v17461_v41  ;;  %9118 = vmatprep.mubr.bf16.mxu1 %v17460_v62  ;;  %v17470_v20 = vld [vmem:[#allocation9_spill] sm:$0xff] }
 0x5bb   : > { %12939 = vmatmul.mubr.msk.bf16.vlgmr.msra.gmra.mrb[12].mxu0 %vm5855_vm4, %v14308_v19 }
 0x5bc   : > { %9195 = vmatpush1.bf16.msra.mxu0 %v17466_v11  ;;  %9226 = vmatprep.mubr.bf16.mxu0 %v17460_v62 }
 0x5bd   : > { %12942 = vmatprep.subr.bf16.mxu0 %v17461_v41 }
 0x5bf   : > { %12239 = vmatmul.mubr.msk.bf16.vlgmr.msra.gmra.mrb[8].mxu1 %vm5855_vm4, %v14308_v19 }
 0x5c0   : > { %9238 = vmatpush1.bf16.msra.mxu1 %v17467_v8  ;;  %9269 = vmatprep.mubr.bf16.mxu1 %v17460_v62  ;;  %v10103_v8 = vld [vmem:[%s17405_s5 + $0x80] sm:$0xff] }
 0x5c1   : > { %12254 = vmatprep.subr.msk.bf16.mxu1 %vm5859_vm2, %v9341_v34  ;;  %v13215_v31 = vpack.c.bf16 %v10104_v22, %v10103_v8  ;;  %v10118_v8 = vld [vmem:[%s17405_s5 + $0xf8] sm:$0xff] }
 0x5c3   : > { %12245 = vmatmul.mubr.msk.bf16.vlgmr.msra.gmra.mrb[8].mxu0 %vm5855_vm4, %v14309_v55 }
 0x5c4   : > { %12943 = vmatpush3.bf16.msra.mxu0 %v9192_v5  ;;  %12944 = vmatprep.mubr.msk.bf16.mxu0 %vm14383_vm3, %v17461_v41  ;;  %v10087_v5 = vld [vmem:[%s17405_s5] sm:$0xff] }
 0x5c5   : > { %12252 = vmatprep.subr.msk.bf16.mxu0 %vm5859_vm2, %v15962_v45  ;;  %v14310_v45 = vld [vmem:[%s17403_s3 + $0xa8] sm:$0xff]  }
 0x5cb   : > { %12247 = vmatmul.mubr.msk.bf16.vlgmr.msra.gmra.mrb[8].mxu1 %vm5855_vm4, %v14309_v55  ;;  %12945 = vmatmul.mubr.msk.bf16.vlgmr.msra.gmra.mrb[12].mxu0 %vm5855_vm4, %v14309_v55 }
 0x5cc   : > { %9352 = vmatpush1.bf16.msra.mxu0 %v17469_v42  ;;  %9395 = vmatpush1.bf16.msra.mxu1 %v7796_v24  ;;  %v10088_v24 = vld [vmem:[%s17405_s5 + $0x8] sm:$0xff]  ;;  %v10106_v42 = vld [vmem:[%s17405_s5 + $0x98] sm:$0xff] }
 0x5cd   : > { %12262 = vmatprep.subr.msk.bf16.mxu1 %vm5859_vm2, %v9498_v46  ;;  %9383 = vmatprep.mubr.bf16.mxu0 %v17460_v62  ;;  %v10105_v46 = vld [vmem:[%s17405_s5 + $0x90] sm:$0xff] }
 0x5ce   : > { %12948 = vmatprep.subr.bf16.mxu0 %v17461_v41  ;;  %9426 = vmatprep.mubr.bf16.mxu1 %v17460_v62 }
 0x5d3   : > { %12253 = vmatmul.mubr.msk.bf16.vlgmr.msra.gmra.mrb[8].mxu0 %vm5855_vm4, %v14310_v45 }
 0x5d4   : > { %12949 = vmatpush3.bf16.msra.mxu0 %v9349_v26  ;;  %12950 = vmatprep.mubr.msk.bf16.mxu0 %vm14383_vm3, %v17461_v41  ;;  %v13219_v26 = vpack.c.bf16 %v10106_v42, %v10105_v46  ;;  %v10135_v46 = vld [vmem:[%s17405_s5 + $0x180] sm:$0xff]  ;;  %v10136_v42 = vld [vmem:[%s17405_s5 + $0x188] sm:$0xff] }
 0x5d5   : > { %12260 = vmatprep.subr.msk.bf16.mxu0 %vm5859_vm2, %v15996_v14  ;;  %v14311_v14 = vld [vmem:[%s17403_s3 + $0xb0] sm:$0xff]  }
 0x5d7   : > { %12255 = vmatmul.mubr.msk.bf16.vlgmr.msra.gmra.mrb[8].mxu1 %vm5855_vm4, %v14310_v45 }
 0x5d8   : > { %9552 = vmatpush1.bf16.msra.mxu1 %v7953_v49  ;;  %9583 = vmatprep.mubr.bf16.mxu1 %v17460_v62  ;;  %v10090_v49 = vld [vmem:[%s17405_s5 + $0x18] sm:$0xff] }
 0x5d9   : > { %12270 = vmatprep.subr.msk.bf16.mxu1 %vm5859_vm2, %v9655_v56  ;;  %v10107_v56 = vld [vmem:[%s17405_s5 + $0xa0] sm:$0xff] }
 0x5db   : > { %12951 = vmatmul.mubr.msk.bf16.vlgmr.msra.gmra.mrb[12].mxu0 %vm5855_vm4, %v14310_v45  ;;  %v13217_v45 = vpack.c.bf16 %v10088_v24, %v10087_v5  ;;  %v10101_v5 = vld [vmem:[%s17405_s5 + $0x70] sm:$0xff] }
 0x5dc   : > { %9509 = vmatpush1.bf16.msra.mxu0 %v17470_v20  ;;  %9540 = vmatprep.mubr.bf16.mxu0 %v17460_v62  ;;  %v10108_v20 = vld [vmem:[%s17405_s5 + $0xa8] sm:$0xff] }
 0x5dd   : > { %12954 = vmatprep.subr.bf16.mxu0 %v17461_v41  ;;  %v13223_v10 = vpack.c.bf16 %v10108_v20, %v10107_v56 }
 0x5e3   : > { %12261 = vmatmul.mubr.msk.bf16.vlgmr.msra.gmra.mrb[8].mxu0 %vm5855_vm4, %v14311_v14  ;;  %12263 = vmatmul.mubr.msk.bf16.vlgmr.msra.gmra.mrb[8].mxu1 %vm5855_vm4, %v14311_v14 }
 0x5e4   : > { %12955 = vmatpush3.bf16.msra.mxu0 %v9506_v35  ;;  %9709 = vmatpush1.bf16.msra.mxu1 %v8110_v32  ;;  %v10091_v35 = vld [vmem:[%s17405_s5 + $0x20] sm:$0xff]  ;;  %v10092_v32 = vld [vmem:[%s17405_s5 + $0x28] sm:$0xff] }
 0x5e5   : > { %12268 = vmatprep.subr.msk.bf16.mxu0 %vm5859_vm2, %v16044_v38  ;;  %12278 = vmatprep.subr.msk.bf16.mxu1 %vm5859_vm2, %v9812_v7  ;;  %v8267_v38 = vsel %vm5859_vm2, %v16349_v28, 0  ;;  %v10109_v7 = vld [vmem:[%s17405_s5 + $0xb0] sm:$0xff] }
 0x5e6   : > { %12956 = vmatprep.mubr.msk.bf16.mxu0 %vm14383_vm3, %v17461_v41  ;;  %9740 = vmatprep.mubr.bf16.mxu1 %v17460_v62 }
 0x5eb   : > { %12957 = vmatmul.mubr.msk.bf16.vlgmr.msra.gmra.mrb[12].mxu0 %vm5855_vm4, %v14311_v14  ;;  %v13221_v14 = vpack.c.bf16 %v10090_v49, %v10089_v17 }
 0x5ec   : > { %9666 = vmatpush1.bf16.msra.mxu0 %v17471_v2  ;;  %9697 = vmatprep.mubr.bf16.mxu0 %v17460_v62  ;;  %v13225_v2 = vpack.c.bf16 %v10092_v32, %v10091_v35 }
 0x5ed   : > { %12960 = vmatprep.subr.bf16.mxu0 %v17461_v41 }
 0x5ef   : > { %12271 = vmatmul.mubr.msk.bf16.vlgmr.msra.gmra.mrb[8].mxu1 %vm5855_vm4, %v14312_v51 }
 0x5f0   : > { %9866 = vmatpush1.bf16.msra.mxu1 %v8267_v38  ;;  %9897 = vmatprep.mubr.bf16.mxu1 %v17460_v62 }
 0x5f1   : > { %13216 = vmatprep.subr.bf16.mxu1 %v13215_v31  ;;  %v10102_v31 = vld [vmem:[%s17405_s5 + $0x78] sm:$0xff] }
 0x5f2   : > { %v13245_v24 = vpack.c.bf16 %v10102_v31, %v10101_v5 }
 0x5f3   : > { %12269 = vmatmul.mubr.msk.bf16.vlgmr.msra.gmra.mrb[8].mxu0 %vm5855_vm4, %v14312_v51 }
 0x5f4   : > { %12961 = vmatpush3.bf16.msra.mxu0 %v9663_v3  ;;  %12962 = vmatprep.mubr.msk.bf16.mxu0 %vm14383_vm3, %v17461_v41  ;;  %v10093_v3 = vld [vmem:[%s17405_s5 + $0x30] sm:$0xff] }
 0x5f5   : > { %12276 = vmatprep.subr.msk.bf16.mxu0 %vm5859_vm2, %v16055_v48 }
 0x5fb   : > { %12963 = vmatmul.mubr.msk.bf16.vlgmr.msra.gmra.mrb[12].mxu0 %vm5855_vm4, %v14312_v51  ;;  %12279 = vmatmul.mubr.msk.bf16.vlgmr.msra.gmra.mrb[8].mxu1 %vm5855_vm4, %v14313_v6  ;;  %v10110_v51 = vld [vmem:[%s17405_s5 + $0xb8] sm:$0xff] }
 0x5fc   : > { %9823 = vmatpush1.bf16.msra.mxu0 %v17472_v25  ;;  %9854 = vmatprep.mubr.bf16.mxu0 %v17460_v62  ;;  %v5841_v62 = vpop.permute.xlu1 %5840  ;;  %v13227_v38 = vpack.c.bf16 %v10110_v51, %v10109_v7  ;;  %v10111_v25 = vld [vmem:[%s17405_s5 + $0xc0] sm:$0xff] }
 0x5fd   : > { %12966 = vmatprep.subr.bf16.mxu0 %v17461_v41  ;;  %13218 = vmatpush3.bf16.msra.mxu1 %v13217_v45 }
 0x5fe   : > { %13220 = vmatprep.subr.bf16.mxu1 %v13219_v26  ;;  %v13247_v26 = vpack.c.bf16 %v10136_v42, %v10135_v46 }
 0x601   : > { %13222 = vmatpush3.bf16.msra.mxu1 %v13221_v14 }
 0x602   : > { %13224 = vmatprep.subr.bf16.mxu1 %v13223_v10 }
 0x603   : > { %12277 = vmatmul.mubr.msk.bf16.vlgmr.msra.gmra.mrb[8].mxu0 %vm5855_vm4, %v14313_v6 }
 0x604   : > { %12967 = vmatpush3.bf16.msra.mxu0 %v9820_v9  ;;  %12968 = vmatprep.mubr.msk.bf16.mxu0 %vm14383_vm3, %v17461_v41  ;;  %v10112_v9 = vld [vmem:[%s17405_s5 + $0xc8] sm:$0xff] }
 0x605   : > { %13226 = vmatpush3.bf16.msra.mxu1 %v13225_v2 }
 0x606   : > { %13228 = vmatprep.subr.bf16.mxu1 %v13227_v38 }
 0x60b   : > { %12969 = vmatmul.mubr.msk.bf16.vlgmr.msra.gmra.mrb[12].mxu0 %vm5855_vm4, %v14313_v6  ;;  %v10094_v6 = vld [vmem:[%s17405_s5 + $0x38] sm:$0xff] }
 0x60c   : > { %13187 = vmatprep.mubr.msk.f32.mxu0 %vm14383_vm3, %v17461_v41 }
 0x6ce   : > { %v9899_v48 = vpop.f32.mrb[8].mxu1 }
 0x6cf   : > { %v9901_v39 = vpop.f32.mrb[9].mxu1  ;;  %v16572_v28 = vadd.f32 %v9899_v48, %v5841_v62  ;;  %v13229_v48 = vpack.c.bf16 %v10094_v6, %v10093_v3 }
 0x6d0   : > { %v9903_v60 = vpop.f32.mrb[10].mxu1  ;;  %v16570_v57 = vadd.f32 %v9901_v39, %v5841_v62  ;;  %v13231_v39 = vpack.c.bf16 %v10112_v9, %v10111_v25 }
 0x6d1   : > { %v9905_v0 = vpop.f32.mrb[11].mxu1  ;;  %v9961_v23 = vmax.f32 %v16572_v28, 0.0  ;;  %v16585_v63 = vadd.f32 %v9903_v60, %v5846_v59  ;;  %v10095_v60 = vld [vmem:[%s17405_s5 + $0x40] sm:$0xff]  ;;  %13230 = vmatpush3.bf16.msra.mxu1 %v13229_v48 }
 0x6d2   : > { %v9962_v44 = vmax.f32 %v16570_v57, 0.0  ;;  %v16579_v27 = vadd.f32 %v9905_v0, %v5846_v59  ;;  %v10096_v0 = vld [vmem:[%s17405_s5 + $0x48] sm:$0xff]  ;;  %13232 = vmatprep.subr.bf16.mxu1 %v13231_v39 }
 0x6d3   : > { %v9966_v40 = vmax.f32 %v16585_v63, 0.0 }
 0x6d4   : > { %v9967_v12 = vmax.f32 %v16579_v27, 0.0 }
 0x6d6   : > { %v9856_v13 = vpop.f32.mrb[8].mxu0 }
 0x6d7   : > { %v16574_v47 = vadd.f32 %v9856_v13, %v5841_v62  ;;  %v9858_v53 = vpop.f32.mrb[9].mxu0  ;;  %v10114_v13 = vld [vmem:[%s17405_s5 + $0xd8] sm:$0xff] }
 0x6d8   : > { %v16576_v50 = vadd.f32 %v9858_v53, %v5841_v62  ;;  %v9860_v58 = vpop.f32.mrb[10].mxu0  ;;  %v13233_v53 = vpack.c.bf16 %v10096_v0, %v10095_v60 }
 0x6d9   : > { %v9959_v15 = vmax.f32 %v16574_v47, 0.0  ;;  %v16582_v54 = vadd.f32 %v9860_v58, %v5846_v59  ;;  %v9862_v43 = vpop.f32.mrb[11].mxu0  ;;  %v10097_v58 = vld [vmem:[%s17405_s5 + $0x50] sm:$0xff] }
 0x6da   : > { %v9960_v16 = vmax.f32 %v16576_v50, 0.0  ;;  %v16588_v52 = vadd.f32 %v9862_v43, %v5846_v59  ;;  %v10098_v43 = vld [vmem:[%s17405_s5 + $0x58] sm:$0xff]  ;;  %13234 = vmatpush3.bf16.msra.mxu1 %v13233_v53 }
 0x6db   : > { %v14257_v37 = vpack.i.bf16 %v9959_v15, %v9962_v44  ;;  %v9964_v21 = vmax.f32 %v16582_v54, 0.0 }
 0x6dc   : > { %v14252_v33 = vpack.i.bf16 %v9961_v23, %v9960_v16  ;;  %v9965_v61 = vmax.f32 %v16588_v52, 0.0 }
 0x6dd   : > { %14258 = vrot.lane.b32.xlu0 %v14257_v37, %s14384_s29  ;;  %v14262_v18 = vpack.i.bf16 %v9964_v21, %v9967_v12  ;;  %v10115_v37 = vld [vmem:[%s17405_s5 + $0xe0] sm:$0xff] }
 0x6de   : > { %v9942_v29 = vpop.f32.mrb[12].mxu0  ;;  %14253 = vrot.lane.b32.xlu1 %v14252_v33, %s14384_s29  ;;  %v14267_v19 = vpack.i.bf16 %v9966_v40, %v9965_v61  ;;  %v10116_v33 = vld [vmem:[%s17405_s5 + $0xe8] sm:$0xff] }
 0x6df   : > { %v12970_v1 = vpop.f32.mrb[13].mxu0  ;;  %v16612_v4 = vadd.f32 %v9942_v29, %v5841_v62  ;;  %v10113_v62 = vld [vmem:[%s17405_s5 + $0xd0] sm:$0xff]  ;;  %v13237_v29 = vpack.c.bf16 %v10098_v43, %v10097_v58 }
 0x6e0   : > { %v9945_v36 = vpop.f32.mrb[14].mxu0  ;;  %v10099_v1 = vld [vmem:[%s17405_s5 + $0x60] sm:$0xff] }
 0x6e1   : > { %v16614_v11 = vadd.f32 %v9945_v36, %v5846_v59  ;;  %v12971_v30 = vpop.f32.mrb[15].mxu0  ;;  %14263 = vrot.lane.b32.xlu0 %v14262_v18, %s14384_s29  ;;  %v9963_v34 = vmax.f32 %v16612_v4, 0.0  ;;  %v13235_v59 = vpack.c.bf16 %v10114_v13, %v10113_v62  ;;  %v13239_v18 = vpack.c.bf16 %v10116_v33, %v10115_v37 }
 0x6e2   : > { %14268 = vrot.lane.b32.xlu1 %v14267_v19, %s14384_s29  ;;  %v10100_v19 = vld [vmem:[%s17405_s5 + $0x68] sm:$0xff]  ;;  %v10117_v30 = vld [vmem:[%s17405_s5 + $0xf0] sm:$0xff] }
 0x6e3   : > { %v9968_v55 = vmax.f32 %v16614_v11, 0.0  ;;  %13236 = vmatprep.subr.bf16.mxu1 %v13235_v59  ;;  %v13241_v36 = vpack.c.bf16 %v10100_v19, %v10099_v1  ;;  %v13243_v22 = vpack.c.bf16 %v10118_v8, %v10117_v30  ;;  %v10137_v11 = vld [vmem:[%s17405_s5 + $0x190] sm:$0xff]  ;;  %v10139_v8 = vld [vmem:[%s17405_s5 + $0x1a0] sm:$0xff] }
 0x6e4   : > { %13238 = vmatpush3.bf16.msra.mxu1 %v13237_v29  ;;  %v10121_v19 = vld [vmem:[%s17405_s5 + $0x110] sm:$0xff] }
 0x6e5   : > { %9997 = vrot.lane.b32.xlu0 %v9968_v55, %s14384_s29  ;;  %13240 = vmatprep.subr.bf16.mxu1 %v13239_v18 }
 0x6e6   : > { %9987 = vrot.lane.b32.xlu1 %v9963_v34, %s14384_s29  ;;  %s14314_s29 = scalar_lea.vmem %s17360_s26, 16 }
 0x6e7   : > { %p14315_p11 = scmp.ne.s32.totalorder %s17360_s26, %s14314_s29  ;;  %p14322_p1 = scmp.lt.s32.totalorder %s14320_s1, %s14314_s29 }
 0x6e8   : > { %13242 = vmatpush3.bf16.msra.mxu1 %v13241_v36  ;;  %v10122_v36 = vld [vmem:[%s17405_s5 + $0x118] sm:$0xff] }
 0x6e9   : > { %13244 = vmatprep.subr.bf16.mxu1 %v13243_v22  ;;  %v10140_v22 = vld [vmem:[%s17405_s5 + $0x1a8] sm:$0xff]  ;;  %p14316_p12 = pnand %p14315_p11, %p14512_p5  ;;  %p14323_p2 = por %p14322_p1, %p14321_p0 }
 0x6eb   : > { %p14317_p13 = pneg %p14316_p12 }
 0x6ec   : > { %13246 = vmatpush3.bf16.msra.mxu1 %v13245_v24 }
 0x6ed   : > { %13248 = vmatprep.subr.bf16.mxu1 %v13247_v26  ;;  %p14324_p3 = pnand %p14323_p2, %p14317_p13 }
 0x74f   : > { %v14259_v45 = vpop.permute.xlu0 %14258 }
 0x750   : > { %v14261_v17 = vunpack.i.h.bf16 %v14259_v45  ;;  %v14260_v49 = vunpack.i.l.bf16 %v14259_v45  ;;  %v14254_v56 = vpop.permute.xlu1 %14253  ;;  %v13253_v45 = vpack.c.bf16 %v10122_v36, %v10121_v19 }
 0x751   : > { %v14256_v20 = vunpack.i.h.bf16 %v14254_v56  ;;  %v14255_v14 = vunpack.i.l.bf16 %v14254_v56  ;;  %v10123_v56 = vld [vmem:[%s17405_s5 + $0x120] sm:$0xff] }
 0x753   : > { %v10000_v10 = vsel %vm888_vm5, %v14261_v17, %v14255_v14  ;;  %v10001_v35 = vsel %vm888_vm5, %v14255_v14, %v14256_v20  ;;  %v10002_v32 = vsel %vm888_vm5, %v14256_v20, %v14260_v49  ;;  %v14264_v7 = vpop.permute.xlu0 %14263  ;;  %v10124_v20 = vld [vmem:[%s17405_s5 + $0x128] sm:$0xff] }
 0x754   : > { %v10018_v51 = vmax.f32 %v9959_v15, %v10000_v10  ;;  %v10019_v2 = vmax.f32 %v9960_v16, %v10001_v35  ;;  %v16737_v38 = vmax.f32 %v9961_v23, %v10002_v32  ;;  %v14266_v3 = vunpack.i.h.bf16 %v14264_v7  ;;  %v14269_v6 = vpop.permute.xlu1 %14268  ;;  %v10141_v35 = vld [vmem:[%s17405_s5 + $0x1b0] sm:$0xff]  ;;  %v10142_v32 = vld [vmem:[%s17405_s5 + $0x1b8] sm:$0xff] }
 0x755   : > { %v14265_v25 = vunpack.i.l.bf16 %v14264_v7  ;;  %v14271_v9 = vunpack.i.h.bf16 %v14269_v6  ;;  %v14270_v48 = vunpack.i.l.bf16 %v14269_v6  ;;  %v13257_v7 = vpack.c.bf16 %v10124_v20, %v10123_v56  ;;  %v10143_v6 = vld [vmem:[%s17405_s5 + $0x1c0] sm:$0xff] }
 0x756   : > { %10038 = vrot.lane.b32.xlu0 %v10018_v51, %s17473_s17  ;;  %v14272_v39 = vpack.i.bf16 %v16737_v38, %v10019_v2 }
 0x757   : > { %v10004_v60 = vsel %vm888_vm5, %v14266_v3, %v14270_v48  ;;  %v10005_v47 = vsel %vm888_vm5, %v14270_v48, %v14271_v9  ;;  %v10006_v50 = vsel %vm888_vm5, %v14271_v9, %v14265_v25  ;;  %v9998_v0 = vpop.permute.xlu0 %9997  ;;  %v10126_v3 = vld [vmem:[%s17405_s5 + $0x138] sm:$0xff] }
 0x758   : > { %v10024_v28 = vmax.f32 %v9965_v61, %v10005_v47  ;;  %v16748_v15 = vmax.f32 %v9966_v40, %v10006_v50  ;;  %14273 = vrot.lane.b32.xlu1 %v14272_v39, %s17473_s17  ;;  %v9988_v23 = vpop.permute.xlu1 %9987  ;;  %v10023_v13 = vmax.f32 %v9964_v21, %v10004_v60  ;;  %v10007_v63 = vsel %vm888_vm5, %v14265_v25, %v9998_v0  ;;  %v10120_v40 = vld [vmem:[%s17405_s5 + $0x108] sm:$0xff]  ;;  %v10127_v39 = vld [vmem:[%s17405_s5 + $0x140] sm:$0xff]  ;;  %v10145_v47 = vld [vmem:[%s17405_s5 + $0x1d0] sm:$0xff] }
 0x759   : > { %v10003_v16 = vsel %vm888_vm5, %v14260_v49, %v9988_v23  ;;  %v16761_v61 = vmax.f32 %v9963_v34, %v9988_v23  ;;  %v16766_v57 = vmax.f32 %v9967_v12, %v10007_v63  ;;  %v10119_v12 = vld [vmem:[%s17405_s5 + $0x100] sm:$0xff]  ;;  %v13255_v49 = vpack.c.bf16 %v10140_v22, %v10139_v8  ;;  %v10144_v25 = vld [vmem:[%s17405_s5 + $0x1c8] sm:$0xff]  ;;  %v10146_v50 = vld [vmem:[%s17405_s5 + $0x1d8] sm:$0xff] }
 0x75a   : > { %v10021_v62 = vmax.f32 %v9962_v44, %v10003_v16  ;;  %v14277_v53 = vpack.i.bf16 %v16748_v15, %v10024_v28  ;;  %v16772_v44 = vmax.f32 %v9968_v55, %v9998_v0  ;;  %v10138_v55 = vld [vmem:[%s17405_s5 + $0x198] sm:$0xff]  ;;  %v13249_v33 = vpack.c.bf16 %v10120_v40, %v10119_v12  ;;  %v10128_v60 = vld [vmem:[%s17405_s5 + $0x148] sm:$0xff]  ;;  %v10129_v16 = vld [vmem:[%s17405_s5 + $0x150] sm:$0xff] }
 0x75b   : > { %v13251_v1 = vpack.c.bf16 %v10138_v55, %v10137_v11  ;;  %v13263_v48 = vpack.c.bf16 %v10144_v25, %v10143_v6  ;;  %v13267_v23 = vpack.c.bf16 %v10146_v50, %v10145_v47  ;;  %v10130_v0 = vld [vmem:[%s17405_s5 + $0x158] sm:$0xff]  ;;  %v10131_v63 = vld [vmem:[%s17405_s5 + $0x160] sm:$0xff]  ;;  %v10149_v12 = vld [vmem:[%s17405_s5 + $0x1f0] sm:$0xff]  ;;  %vm10154_vm5 = vcmask 138240  }
 0x75c   : > { %v14282_v52 = vpack.i.bf16 %v10021_v62, %v10023_v13  ;;  %14278 = vrot.lane.b32.xlu1 %v14277_v53, %s17473_s17  ;;  %v13269_v53 = vpack.c.bf16 %v10130_v0, %v10129_v16  ;;  %v10150_v40 = vld [vmem:[%s17405_s5 + $0x1f8] sm:$0xff]  ;;  %v10133_v55 = vld [vmem:[%s17405_s5 + $0x170] sm:$0xff]  ;;  %v11707_v50 = vld [vmem:[%s17408_s8 + $0x20] sm:$0xff] }
 0x75d   : > { %v13275_v11 = vpack.c.bf16 %v10150_v40, %v10149_v12  ;;  %v11706_v6 = vld [vmem:[%s17408_s8 + $0x18] sm:$0xff]  ;;  %v12292_v40 = vld [vmem:[%s17406_s6 + $0x40] sm:$0xff] }
 0x75e   : > { %14283 = vrot.lane.b32.xlu0 %v14282_v52, %s17473_s17 }
 0x760   : > { %10046 = vrot.lane.b32.xlu1 %v16761_v61, %s17473_s17 }
 0x762   : > { %10054 = vrot.lane.b32.xlu0 %v16766_v57, %s17473_s17 }
 0x764   : > { %10056 = vrot.lane.b32.xlu1 %v16772_v44, %s17473_s17  ;;  %s11886_s17 = scalar_lea.sflag [#allocation3], %s404_s20 }
 0x7c8   : > { %v10039_v4 = vpop.permute.xlu0 %10038 }
 0x7ca   : > { %v16778_v54 = vpop.permute.xlu1 %14273 }
 0x7cb   : > { %v14276_v21 = vunpack.i.h.bf16 %v16778_v54  ;;  %v14275_v27 = vunpack.i.l.bf16 %v16778_v54 }
 0x7cd   : > { %v10059_v34 = vsel %vm2642_vm13, %v10039_v4, %v14275_v27  ;;  %v10060_v59 = vsel %vm2642_vm13, %v14275_v27, %v14276_v21  ;;  %v10132_v27 = vld [vmem:[%s17405_s5 + $0x168] sm:$0xff] }
 0x7ce   : > { %v10077_v58 = vmax.f32 %v10018_v51, %v10059_v34  ;;  %v16798_v43 = vpop.permute.xlu1 %14278  ;;  %v10078_v37 = vmax.f32 %v10019_v2, %v10060_v59  ;;  %v13259_v51 = vpack.c.bf16 %v10142_v32, %v10141_v35  ;;  %v10125_v2 = vld [vmem:[%s17405_s5 + $0x130] sm:$0xff]  ;;  %v13273_v4 = vpack.c.bf16 %v10132_v27, %v10131_v63  ;;  %v10134_v34 = vld [vmem:[%s17405_s5 + $0x178] sm:$0xff]  ;;  %v10151_v59 = vld [vmem:[%s17405_s5 + $0x200] sm:$0xff] }
 0x7cf   : > { %v14281_v29 = vunpack.i.h.bf16 %v16798_v43  ;;  %v14280_v18 = vunpack.i.l.bf16 %v16798_v43  ;;  %v13261_v9 = vpack.c.bf16 %v10126_v3, %v10125_v2  ;;  %v11703_v32 = vld [vmem:[%s17408_s8] sm:$0xff]  ;;  %v11709_v63 = vld [vmem:[%s17408_s8 + $0x30] sm:$0xff]  ;;  %v11710_v27 = vld [vmem:[%s17408_s8 + $0x38] sm:$0xff] }
 0x7d0   : > { %10228 = vmatprep.mubr.f32.mxu1 %v10078_v37  ;;  %v16808_v30 = vpop.permute.xlu0 %14283 }
 0x7d1   : > { %v14286_v5 = vunpack.i.h.bf16 %v16808_v30  ;;  %v14285_v31 = vunpack.i.l.bf16 %v16808_v30  ;;  %10229 = vmatmul.mubr.f32.vlgmr.msra.gmra.mrb[12].mxu1 %v10077_v58  ;;  %v10064_v24 = vsel %vm2642_vm13, %v14280_v18, %v14281_v29  ;;  %v10152_v58 = vld [vmem:[%s17405_s5 + $0x208] sm:$0xff]  ;;  %v10153_v30 = vld [vmem:[%s17405_s5 + $0x210] sm:$0x1] }
 0x7d2   : > { %13250 = vmatpush3.bf16.msra.mxu1 %v13249_v33  ;;  %v16821_v46 = vpop.permute.xlu1 %10046  ;;  %v10083_v42 = vmax.f32 %v10024_v28, %v10064_v24  ;;  %v13265_v28 = vpack.c.bf16 %v10128_v60, %v10127_v39  ;;  %v13277_v33 = vpack.c.bf16 %v10134_v34, %v10133_v55  ;;  %v11711_v55 = vld [vmem:[%s17408_s8 + $0x40] sm:$0xff]  ;;  %v11712_v34 = vld [vmem:[%s17408_s8 + $0x48] sm:$0xff]  ;;  %v11717_v24 = vld [vmem:[%s17408_s8 + $0x70] sm:$0xff] }
 0x7d3   : > { %v10062_v26 = vsel %vm2642_vm13, %v14286_v5, %v16821_v46  ;;  %13252 = vmatprep.subr.bf16.mxu1 %v13251_v1  ;;  %v10063_v17 = vsel %vm2642_vm13, %v14285_v31, %v14280_v18  ;;  %v13279_v18 = vpack.c.bf16 %v10152_v58, %v10151_v59  ;;  %v10061_v1 = vsel %vm2642_vm13, %v14276_v21, %v14286_v5  ;;  %v10391_v21 = vld [vmem:[%s17406_s6 + $0x8] sm:$0xff] }
 0x7d4   : > { %v10080_v14 = vmax.f32 %v10021_v62, %v10062_v26  ;;  %10233 = vmatprep.mubr.f32.mxu1 %v10083_v42  ;;  %v10082_v10 = vmax.f32 %v10023_v13, %v10063_v17  ;;  %v10147_v62 = vld [vmem:[%s17405_s5 + $0x1e0] sm:$0xff]  ;;  %v10148_v13 = vld [vmem:[%s17405_s5 + $0x1e8] sm:$0xff]  ;;  %v10055_v19 = vpop.permute.xlu0 %10054  ;;  %v10079_v8 = vmax.f32 %v16737_v38, %v10061_v1  ;;  %v10081_v38 = vmax.f32 %v16761_v61, %v16821_v46  ;;  %v11713_v1 = vld [vmem:[%s17408_s8 + $0x50] sm:$0xff] }
 0x7d5   : > { %v13271_v52 = vpack.c.bf16 %v10148_v13, %v10147_v62  ;;  %v10065_v22 = vsel %vm2642_vm13, %v14281_v29, %v10055_v19  ;;  %v14406_v61 = vmov 0.0|0.0   ;;  %v10393_v29 = vld [vmem:[%s17406_s6 + $0x18] sm:$0x1]  ;;  %v12288_v13 = vld [vmem:[%s17406_s6 + $0x30] sm:$0xff] }
 0x7d6   : > { %13254 = vmatpush3.bf16.msra.mxu1 %v13253_v45  ;;  %v10057_v37 = vpop.permute.xlu1 %10056  ;;  %v10084_v54 = vmax.f32 %v16748_v15, %v10065_v22  ;;  %v10390_v15 = vld [vmem:[%s17406_s6] sm:$0xff]  ;;  %13395 = vmatprep.subr.bf16.mxu0 %v14406_v61  ;;  %v12299_v22 = vld [vmem:[%s17406_s6 + $0x68] sm:$0xff] }
 0x7d7   : > { %10234 = vmatmul.mubr.f32.gmra.mrb[14].mxu1 %v10082_v10  ;;  %13256 = vmatprep.subr.bf16.mxu1 %v13255_v49  ;;  %v10066_v36 = vsel %vm2642_vm13, %v10055_v19, %v10057_v37  ;;  %v13284_v43 = vpack.c.bf16 %v10391_v21, %v10390_v15  ;;  %vm16938_vm13 = vmpackc.low %vm460_vm0, %vm14407_vm7  ;;  %v11714_v19 = vld [vmem:[%s17408_s8 + $0x58] sm:$0xff]  ;;  %v12304_v21 = vld [vmem:[%s17406_s6 + $0x80] sm:$0xff] }
 0x7d8   : > { %10303 = vmatprep.mubr.f32.mxu1 %v10080_v14  ;;  %v10085_v31 = vmax.f32 %v16766_v57, %v10066_v36  ;;  %v10086_v57 = vmax.f32 %v16772_v44, %v10057_v37  ;;  %v10392_v44 = vld [vmem:[%s17406_s6 + $0x10] sm:$0xff] }
 0x7d9   : > { %v13287_v5 = vpack.c.bf16 %v10393_v29, %v10392_v44  ;;  %v12294_v37 = vld [vmem:[%s17406_s6 + $0x50] sm:$0xff] }
 0x7da   : > { %13258 = vmatpush3.bf16.msra.mxu1 %v13257_v7  ;;  %v11704_v7 = vld [vmem:[%s17408_s8 + $0x8] sm:$0xff] }
 0x7db   : > { %13260 = vmatprep.subr.bf16.mxu1 %v13259_v51  ;;  %v11705_v51 = vld [vmem:[%s17408_s8 + $0x10] sm:$0xff]  ;;  %v13396_v3 = vpack.c.bf16 %v11704_v7, %v11703_v32 }
 0x7dc   : > { %v13399_v39 = vpack.c.bf16 %v11706_v6, %v11705_v51  ;;  %v12318_v51 = vld [vmem:[%s17406_s6 + $0xd0] sm:$0xff]  ;;  %v12322_v6 = vld [vmem:[%s17406_s6 + $0xe0] sm:$0xff] }
 0x7dd   : > { %13397 = vmatpush3.bf16.msra.mxu0 %v13396_v3 }
 0x7de   : > { %13262 = vmatpush3.bf16.msra.mxu1 %v13261_v9  ;;  %v12286_v9 = vld [vmem:[%s17406_s6 + $0x20] sm:$0xff]  ;;  %13398 = vmatprep.subr.bf16.mxu0 %v14406_v61 }
 0x7df   : > { %13264 = vmatprep.subr.bf16.mxu1 %v13263_v48  ;;  %v12287_v48 = vld [vmem:[%s17406_s6 + $0x28] sm:$0xff] }
 0x7e0   : > { %v13291_v16 = vpack.c.bf16 %v12287_v48, %v12286_v9 }
 0x7e1   : > { %13400 = vmatpush3.bf16.msra.mxu0 %v13399_v39  ;;  %v12324_v39 = vld [vmem:[%s17406_s6 + $0xf0] sm:$0xff] }
 0x7e2   : > { %13266 = vmatpush3.bf16.msra.mxu1 %v13265_v28  ;;  %v11708_v28 = vld [vmem:[%s17408_s8 + $0x28] sm:$0xff]  ;;  %13401 = vmatprep.subr.bf16.mxu0 %v14406_v61 }
 0x7e3   : > { %13268 = vmatprep.subr.bf16.mxu1 %v13267_v23 }
 0x7e6   : > { %13270 = vmatpush3.bf16.msra.mxu1 %v13269_v53  ;;  %v12289_v53 = vld [vmem:[%s17406_s6 + $0x38] sm:$0x1] }
 0x7e7   : > { %13272 = vmatprep.subr.bf16.mxu1 %v13271_v52  ;;  %v13402_v52 = vpack.c.bf16 %v11708_v28, %v11707_v50  ;;  %v13294_v12 = vpack.c.bf16 %v12289_v53, %v12288_v13  ;;  %v12328_v50 = vld [vmem:[%s17406_s6 + $0x100] sm:$0xff]  ;;  %v12329_v28 = vld [vmem:[%s17406_s6 + $0x108] sm:$0xff]  ;;  %v12330_v13 = vld [vmem:[%s17406_s6 + $0x110] sm:$0xff] }
 0x7e8   : > { %v12331_v53 = vld [vmem:[%s17406_s6 + $0x118] sm:$0x1] }
 0x7e9   : > { %13403 = vmatpush3.bf16.msra.mxu0 %v13402_v52  ;;  %v13343_v52 = vpack.c.bf16 %v12331_v53, %v12330_v13  ;;  %v11798_v13 = vld [vmem:[%s17410_s10 + $0x20] sm:$0xff]  ;;  %v11799_v53 = vld [vmem:[%s17410_s10 + $0x28] sm:$0xff] }
 0x7ea   : > { %13274 = vmatpush3.bf16.msra.mxu1 %v13273_v4  ;;  %v12293_v4 = vld [vmem:[%s17406_s6 + $0x48] sm:$0xff]  ;;  %13404 = vmatprep.subr.bf16.mxu0 %v14406_v61 }
 0x7eb   : > { %13276 = vmatprep.subr.bf16.mxu1 %v13275_v11  ;;  %v13405_v11 = vpack.c.bf16 %v11710_v27, %v11709_v63  ;;  %v13298_v59 = vpack.c.bf16 %v12293_v4, %v12292_v40  ;;  %v12335_v63 = vld [vmem:[%s17406_s6 + $0x128] sm:$0xff]  ;;  %v12337_v40 = vld [vmem:[%s17406_s6 + $0x138] sm:$0x1] }
 0x7ed   : > { %13406 = vmatpush3.bf16.msra.mxu0 %v13405_v11  ;;  %v12340_v11 = vld [vmem:[%s17406_s6 + $0x140] sm:$0xff] }
 0x7ee   : > { %13278 = vmatpush3.bf16.msra.mxu1 %v13277_v33  ;;  %v12295_v33 = vld [vmem:[%s17406_s6 + $0x58] sm:$0x1]  ;;  %13407 = vmatprep.subr.bf16.mxu0 %v14406_v61 }
 0x7ef   : > { %13280 = vmatprep.subr.bf16.mxu1 %v13279_v18  ;;  %v13301_v36 = vpack.c.bf16 %v12295_v33, %v12294_v37  ;;  %v12343_v37 = vld [vmem:[%s17406_s6 + $0x158] sm:$0x1] }
 0x7f1   : > { %10304 = vmatmul.mubr.f32.vlgmr.msra.gmra.mrb[16].mxu1 %v10079_v8  ;;  %v12298_v8 = vld [vmem:[%s17406_s6 + $0x60] sm:$0xff] }
 0x7f2   : > { %10308 = vmatprep.mubr.f32.mxu1 %v10085_v31  ;;  %13282 = vmatpush3.bf16.msra.mxu1 %v13279_v18  ;;  %v13408_v18 = vpack.c.bf16 %v11712_v34, %v11711_v55  ;;  %v13411_v31 = vpack.c.bf16 %v11714_v19, %v11713_v1  ;;  %v12341_v55 = vld [vmem:[%s17406_s6 + $0x148] sm:$0xff] }
 0x7f3   : > { %12976 = vmatprep.subr.msk.mxu1 %vm460_vm0, %v10153_v30  ;;  %v13354_v34 = vpack.c.bf16 %v12341_v55, %v12340_v11  ;;  %v12347_v1 = vld [vmem:[%s17406_s6 + $0x168] sm:$0xff] }
 0x7f4   : > { %13409 = vmatpush3.bf16.msra.mxu0 %v13408_v18  ;;  %v12346_v18 = vld [vmem:[%s17406_s6 + $0x160] sm:$0xff] }
 0x7f5   : > { %10309 = vmatmul.mubr.f32.gmra.mrb[18].mxu1 %v10084_v54  ;;  %13410 = vmatprep.subr.bf16.mxu0 %v14406_v61  ;;  %v13361_v19 = vpack.c.bf16 %v12347_v1, %v12346_v18 }
 0x7f6   : > { %12978 = vmatprep.mubr.msk.f32.mxu1 %vm10154_vm5, %v10081_v38  ;;  %12977 = vmatpush3.msk.msra.mxu1 %vm460_vm0, %v10153_v30  ;;  %vm10394_vm0 = vcmask 203776   ;;  %v13305_v30 = vpack.c.bf16 %v12299_v22, %v12298_v8  ;;  %v12300_v38 = vld [vmem:[%s17406_s6 + $0x70] sm:$0xff]  ;;  %v12349_v22 = vld [vmem:[%s17406_s6 + $0x178] sm:$0x1] }
 0x7f7   : > { %13283 = vmatprep.subr.bf16.mxu1 %v14406_v61  ;;  %v12348_v8 = vld [vmem:[%s17406_s6 + $0x170] sm:$0xff] }
 0x7f8   : > { %13412 = vmatpush3.bf16.msra.mxu0 %v13411_v31  ;;  %v13364_v31 = vpack.c.bf16 %v12349_v22, %v12348_v8 }
 0x7f9   : > { %12979 = vmatmul.mubr.msk.f32.vlgmr.msra.gmra.mrb[20].mxu1 %vm10154_vm5, %v10086_v57  ;;  %v12301_v57 = vld [vmem:[%s17406_s6 + $0x78] sm:$0x1]  ;;  %13413 = vmatprep.subr.bf16.mxu0 %v14406_v61 }
 0x7fa   : > { %12989 = vmatprep.mubr.msk.f32.mxu1 %vm14383_vm3, %v17461_v41  ;;  %13285 = vmatpush3.bf16.msra.mxu1 %v13284_v43  ;;  %v13308_v15 = vpack.c.bf16 %v12301_v57, %v12300_v38  ;;  %v12305_v43 = vld [vmem:[%s17406_s6 + $0x88] sm:$0xff] }
 0x7fb   : > { %13286 = vmatprep.subr.bf16.mxu1 %v14406_v61  ;;  %v13312_v44 = vpack.c.bf16 %v12305_v43, %v12304_v21  ;;  %v12355_v21 = vld [vmem:[%s17406_s6 + $0x198] sm:$0x1] }
 0x7fe   : > { %13289 = vmatpush3.bf16.msk.msra.mxu1 %vm16938_vm13, %v13287_v5  ;;  %v12306_v5 = vld [vmem:[%s17406_s6 + $0x90] sm:$0xff] }
 0x7ff   : > { %13290 = vmatprep.subr.bf16.mxu1 %v14406_v61 }
 0x8a4   : > { %v12515_v46 = vpop.f32.mrb[12].mxu1 }
 0x8a5   : > { %v12516_v42 = vpop.f32.mrb[13].mxu1 }
 0x8a6   : > { %v12517_v45 = vadd.f32 %v12516_v42, %v12515_v46  ;;  %v12307_v46 = vld [vmem:[%s17406_s6 + $0x98] sm:$0x1] }
 0x8a7   : > { %v13315_v42 = vpack.c.bf16 %v12307_v46, %v12306_v5 }
 0x8aa   : > { %v12518_v26 = vpop.f32.mrb[14].mxu1 }
 0x8ab   : > { %v12519_v17 = vpop.f32.mrb[15].mxu1 }
 0x8ac   : > { %v12520_v49 = vadd.f32 %v12519_v17, %v12518_v26  ;;  %v12311_v26 = vld [vmem:[%s17406_s6 + $0xa8] sm:$0xff] }
 0x8c4   : > { %v12553_v56 = vpop.f32.mrb[16].mxu1 }
 0x8c5   : > { %v12554_v20 = vpop.f32.mrb[17].mxu1 }
 0x8c6   : > { %v12555_v14 = vadd.f32 %v12554_v20, %v12553_v56  ;;  %v12312_v56 = vld [vmem:[%s17406_s6 + $0xb0] sm:$0xff]  ;;  %v12313_v20 = vld [vmem:[%s17406_s6 + $0xb8] sm:$0x1] }
 0x8c8   : > { %v12556_v10 = vpop.f32.mrb[18].mxu1  ;;  %v10306_v35 = vadd.f32 %v12555_v14, %v12517_v45  ;;  %v12310_v45 = vld [vmem:[%s17406_s6 + $0xa0] sm:$0xff]  ;;  %v13322_v14 = vpack.c.bf16 %v12313_v20, %v12312_v56 }
 0x8c9   : > { %v12557_v2 = vpop.f32.mrb[19].mxu1  ;;  %v13319_v17 = vpack.c.bf16 %v12311_v26, %v12310_v45  ;;  %v12361_v45 = vld [vmem:[%s17406_s6 + $0x1b8] sm:$0x1] }
 0x8ca   : > { %v12558_v25 = vadd.f32 %v12557_v2, %v12556_v10  ;;  %v12316_v10 = vld [vmem:[%s17406_s6 + $0xc0] sm:$0xff]  ;;  %v12319_v2 = vld [vmem:[%s17406_s6 + $0xd8] sm:$0x1] }
 0x8cb   : > { %v13329_v3 = vpack.c.bf16 %v12319_v2, %v12318_v51 }
 0x8cc   : > { %v10311_v60 = vadd.f32 %v12558_v25, %v12520_v49  ;;  %v12980_v47 = vpop.f32.mrb[20].mxu1  ;;  %v12323_v25 = vld [vmem:[%s17406_s6 + $0xe8] sm:$0xff] }
 0x8cd   : > { %v10380_v23 = vpop.f32.mrb[21].mxu1  ;;  %v13333_v9 = vpack.c.bf16 %v12323_v25, %v12322_v6  ;;  %v12373_v6 = vld [vmem:[%s17406_s6 + $0x1f8] sm:$0x1] }
 0x8ce   : > { %v16970_v0 = vadd.f32 %v12980_v47, %v10311_v60  ;;  %v16972_v62 = vadd.f32 %v10380_v23, %v10306_v35  ;;  %v12317_v35 = vld [vmem:[%s17406_s6 + $0xc8] sm:$0xff]  ;;  %v12325_v60 = vld [vmem:[%s17406_s6 + $0xf8] sm:$0x1]  ;;  %v13340_v23 = vpack.c.bf16 %v12329_v28, %v12328_v50  ;;  %v11796_v50 = vld [vmem:[%s17410_s10 + $0x10] sm:$0xff] }
 0x8cf   : > { %v13326_v32 = vpack.c.bf16 %v12317_v35, %v12316_v10  ;;  %v13336_v47 = vpack.c.bf16 %v12325_v60, %v12324_v39  ;;  %v12367_v10 = vld [vmem:[%s17406_s6 + $0x1d8] sm:$0x1]  ;;  %v11716_v39 = vld [vmem:[%s17408_s8 + $0x68] sm:$0xff] }
 0x8d0   : > { %12990 = vmatmul.mubr.msk.f32.vlgmr.msra.gmra.mrb[22].mxu1 %vm10394_vm0, %v16972_v62  ;;  %v10477_v58 = vrot.slane %v16972_v62, 1  ;;  %v10559_v54 = vrot.slane %v16972_v62, 2  ;;  %v10641_v29 = vrot.slane %v16972_v62, 3  ;;  %v10723_v49 = vrot.slane %v16972_v62, 4 }
 0x8d1   : > { %13292 = vmatpush3.bf16.msra.mxu1 %v13291_v16  ;;  %13000 = vmatprep.mubr.msk.f32.mxu1 %vm14383_vm3, %v17461_v41  ;;  %v10805_v7 = vrot.slane %v16972_v62, 5  ;;  %v10887_v48 = vrot.slane %v16972_v62, 6  ;;  %v10969_v16 = vrot.slane %v16972_v62, 7  ;;  %v12334_v62 = vld [vmem:[%s17406_s6 + $0x120] sm:$0xff]  ;;  %v11297_v57 = vrot.slane %v16970_v0, 3 }
 0x8d2   : > { %13293 = vmatprep.subr.bf16.mxu1 %v14406_v61  ;;  %v13347_v27 = vpack.c.bf16 %v12335_v63, %v12334_v62  ;;  %v11379_v46 = vrot.slane %v16970_v0, 4  ;;  %v11461_v20 = vrot.slane %v16970_v0, 5  ;;  %v11543_v2 = vrot.slane %v16970_v0, 6  ;;  %v11800_v62 = vld [vmem:[%s17410_s10 + $0x30] sm:$0xff]  ;;  %v11801_v63 = vld [vmem:[%s17410_s10 + $0x38] sm:$0xff] }
 0x8d5   : > { %13296 = vmatpush3.bf16.msk.msra.mxu1 %vm16938_vm13, %v13294_v12  ;;  %v12336_v12 = vld [vmem:[%s17406_s6 + $0x130] sm:$0xff] }
 0x8d6   : > { %13297 = vmatprep.subr.bf16.mxu1 %v14406_v61  ;;  %v13350_v4 = vpack.c.bf16 %v12337_v40, %v12336_v12  ;;  %v10389_v12 = vld [vmem:[%s17407_s7] sm:$0x1] }
 0x8d8   : > { %13001 = vmatmul.mubr.msk.f32.vlgmr.msra.gmra.mrb[22].mxu1 %vm10394_vm0, %v10477_v58  ;;  %v12342_v58 = vld [vmem:[%s17406_s6 + $0x150] sm:$0xff] }
 0x8d9   : > { %13299 = vmatpush3.bf16.msra.mxu1 %v13298_v59  ;;  %13011 = vmatprep.mubr.msk.f32.mxu1 %vm14383_vm3, %v17461_v41  ;;  %v11133_v59 = vrot.slane %v16970_v0, 1  ;;  %v13357_v33 = vpack.c.bf16 %v12343_v37, %v12342_v58  ;;  %v11804_v58 = vld [vmem:[%s17410_s10 + $0x50] sm:$0xf]  ;;  %v11718_v37 = vld [vmem:[%s17409_s9] sm:$0x1] }
 0x8da   : > { %13300 = vmatprep.subr.bf16.mxu1 %v14406_v61 }
 0x8dd   : > { %13303 = vmatpush3.bf16.msk.msra.mxu1 %vm16938_vm13, %v13301_v36  ;;  %v11215_v36 = vrot.slane %v16970_v0, 2 }
 0x8de   : > { %13304 = vmatprep.subr.bf16.mxu1 %v14406_v61 }
 0x8e0   : > { %13012 = vmatmul.mubr.msk.f32.vlgmr.msra.gmra.mrb[22].mxu1 %vm10394_vm0, %v10559_v54  ;;  %v12353_v54 = vld [vmem:[%s17406_s6 + $0x188] sm:$0xff] }
 0x8e1   : > { %13306 = vmatpush3.bf16.msra.mxu1 %v13305_v30  ;;  %13022 = vmatprep.mubr.msk.f32.mxu1 %vm14383_vm3, %v17461_v41  ;;  %v12352_v30 = vld [vmem:[%s17406_s6 + $0x180] sm:$0xff] }
 0x8e2   : > { %13307 = vmatprep.subr.bf16.mxu1 %v14406_v61  ;;  %v13368_v38 = vpack.c.bf16 %v12353_v54, %v12352_v30 }
 0x8e5   : > { %13310 = vmatpush3.bf16.msk.msra.mxu1 %vm16938_vm13, %v13308_v15  ;;  %v12354_v15 = vld [vmem:[%s17406_s6 + $0x190] sm:$0xff] }
 0x8e6   : > { %13311 = vmatprep.subr.bf16.mxu1 %v14406_v61  ;;  %v13371_v43 = vpack.c.bf16 %v12355_v21, %v12354_v15 }
 0x8e8   : > { %13023 = vmatmul.mubr.msk.f32.vlgmr.msra.gmra.mrb[22].mxu1 %vm10394_vm0, %v10641_v29  ;;  %v12359_v29 = vld [vmem:[%s17406_s6 + $0x1a8] sm:$0xff] }
 0x8e9   : > { %13313 = vmatpush3.bf16.msra.mxu1 %v13312_v44  ;;  %13033 = vmatprep.mubr.msk.f32.mxu1 %vm14383_vm3, %v17461_v41  ;;  %v12358_v44 = vld [vmem:[%s17406_s6 + $0x1a0] sm:$0xff] }
 0x8ea   : > { %13314 = vmatprep.subr.bf16.mxu1 %v14406_v61  ;;  %v13375_v5 = vpack.c.bf16 %v12359_v29, %v12358_v44 }
 0x8ed   : > { %13317 = vmatpush3.bf16.msk.msra.mxu1 %vm16938_vm13, %v13315_v42  ;;  %v12360_v42 = vld [vmem:[%s17406_s6 + $0x1b0] sm:$0xff] }
 0x8ee   : > { %13318 = vmatprep.subr.bf16.mxu1 %v14406_v61  ;;  %v13378_v26 = vpack.c.bf16 %v12361_v45, %v12360_v42 }
 0x8f0   : > { %13034 = vmatmul.mubr.msk.f32.vlgmr.msra.gmra.mrb[22].mxu1 %vm10394_vm0, %v10723_v49  ;;  %v12365_v49 = vld [vmem:[%s17406_s6 + $0x1c8] sm:$0xff] }
 0x8f1   : > { %13320 = vmatpush3.bf16.msra.mxu1 %v13319_v17  ;;  %13044 = vmatprep.mubr.msk.f32.mxu1 %vm14383_vm3, %v17461_v41  ;;  %v12364_v17 = vld [vmem:[%s17406_s6 + $0x1c0] sm:$0xff] }
 0x8f2   : > { %13321 = vmatprep.subr.bf16.mxu1 %v14406_v61  ;;  %v13382_v56 = vpack.c.bf16 %v12365_v49, %v12364_v17 }
 0x8f5   : > { %13324 = vmatpush3.bf16.msk.msra.mxu1 %vm16938_vm13, %v13322_v14  ;;  %v12366_v14 = vld [vmem:[%s17406_s6 + $0x1d0] sm:$0xff] }
 0x8f6   : > { %13325 = vmatprep.subr.bf16.mxu1 %v14406_v61  ;;  %v13385_v35 = vpack.c.bf16 %v12367_v10, %v12366_v14 }
 0x8f8   : > { %13045 = vmatmul.mubr.msk.f32.vlgmr.msra.gmra.mrb[22].mxu1 %vm10394_vm0, %v10805_v7  ;;  %v12371_v7 = vld [vmem:[%s17406_s6 + $0x1e8] sm:$0xff] }
 0x8f9   : > { %13327 = vmatpush3.bf16.msra.mxu1 %v13326_v32  ;;  %13055 = vmatprep.mubr.msk.f32.mxu1 %vm14383_vm3, %v17461_v41  ;;  %v12370_v32 = vld [vmem:[%s17406_s6 + $0x1e0] sm:$0xff] }
 0x8fa   : > { %13328 = vmatprep.subr.bf16.mxu1 %v14406_v61  ;;  %v13389_v51 = vpack.c.bf16 %v12371_v7, %v12370_v32 }
 0x8fd   : > { %13331 = vmatpush3.bf16.msk.msra.mxu1 %vm16938_vm13, %v13329_v3  ;;  %v12372_v3 = vld [vmem:[%s17406_s6 + $0x1f0] sm:$0xff] }
 0x8fe   : > { %13332 = vmatprep.subr.bf16.mxu1 %v14406_v61  ;;  %v13392_v25 = vpack.c.bf16 %v12373_v6, %v12372_v3 }
 0x900   : > { %13056 = vmatmul.mubr.msk.f32.vlgmr.msra.gmra.mrb[22].mxu1 %vm10394_vm0, %v10887_v48  ;;  %v11715_v48 = vld [vmem:[%s17408_s8 + $0x60] sm:$0xff] }
 0x901   : > { %13334 = vmatpush3.bf16.msra.mxu1 %v13333_v9  ;;  %13066 = vmatprep.mubr.msk.f32.mxu1 %vm14383_vm3, %v17461_v41  ;;  %v11625_v9 = vrot.slane %v16970_v0, 7  ;;  %v13414_v60 = vpack.c.bf16 %v11716_v39, %v11715_v48 }
 0x902   : > { %13335 = vmatprep.subr.bf16.mxu1 %v14406_v61 }
 0x903   : > { %13415 = vmatpush3.bf16.msra.mxu0 %v13414_v60 }
 0x904   : > { %13185 = vmatprep.subr.mxu0 %v17461_v41 }
 0x905   : > { %13338 = vmatpush3.bf16.msk.msra.mxu1 %vm16938_vm13, %v13336_v47  ;;  %v11795_v47 = vld [vmem:[%s17410_s10 + $0x8] sm:$0xff] }
 0x906   : > { %13339 = vmatprep.subr.bf16.mxu1 %v14406_v61 }
 0x907   : > { %13186 = vmatpush3.msra.mxu0 %v11717_v24 }
 0x908   : > { %13067 = vmatmul.mubr.msk.f32.vlgmr.msra.gmra.mrb[22].mxu1 %vm10394_vm0, %v10969_v16 }
 0x909   : > { %13341 = vmatpush3.bf16.msra.mxu1 %v13340_v23  ;;  %13077 = vmatprep.mubr.msk.f32.mxu1 %vm14383_vm3, %v17461_v41  ;;  %v11797_v23 = vld [vmem:[%s17410_s10 + $0x18] sm:$0xff] }
 0x90a   : > { %13342 = vmatprep.subr.bf16.mxu1 %v14406_v61  ;;  %v13420_v16 = vpack.c.bf16 %v11797_v23, %v11796_v50 }
 0x90d   : > { %13345 = vmatpush3.bf16.msk.msra.mxu1 %vm16938_vm13, %v13343_v52  ;;  %v13423_v52 = vpack.c.bf16 %v11799_v53, %v11798_v13 }
 0x90e   : > { %13346 = vmatprep.subr.bf16.mxu1 %v14406_v61 }
 0x910   : > { %13078 = vmatmul.mubr.msk.f32.vlgmr.msra.gmra.mrb[22].mxu1 %vm10394_vm0, %v16970_v0  ;;  %v11794_v0 = vld [vmem:[%s17410_s10] sm:$0xff] }
 0x911   : > { %13348 = vmatpush3.bf16.msra.mxu1 %v13347_v27  ;;  %13088 = vmatprep.mubr.msk.f32.mxu1 %vm14383_vm3, %v17461_v41  ;;  %v13417_v28 = vpack.c.bf16 %v11795_v47, %v11794_v0  ;;  %v13426_v27 = vpack.c.bf16 %v11801_v63, %v11800_v62 }
 0x912   : > { %13349 = vmatprep.subr.bf16.mxu1 %v14406_v61 }
 0x915   : > { %13352 = vmatpush3.bf16.msk.msra.mxu1 %vm16938_vm13, %v13350_v4 }
 0x916   : > { %13353 = vmatprep.subr.bf16.mxu1 %v14406_v61 }
 0x918   : > { %13089 = vmatmul.mubr.msk.f32.vlgmr.msra.gmra.mrb[22].mxu1 %vm10394_vm0, %v11133_v59  ;;  %v11803_v59 = vld [vmem:[%s17410_s10 + $0x48] sm:$0xff] }
 0x919   : > { %13355 = vmatpush3.bf16.msra.mxu1 %v13354_v34  ;;  %13099 = vmatprep.mubr.msk.f32.mxu1 %vm14383_vm3, %v17461_v41  ;;  %v11802_v34 = vld [vmem:[%s17410_s10 + $0x40] sm:$0xff] }
 0x91a   : > { %13356 = vmatprep.subr.bf16.mxu1 %v14406_v61 }
 0x91d   : > { %13359 = vmatpush3.bf16.msk.msra.mxu1 %vm16938_vm13, %v13357_v33 }
 0x91e   : > { %13360 = vmatprep.subr.bf16.mxu1 %v14406_v61 }
 0x920   : > { %13100 = vmatmul.mubr.msk.f32.vlgmr.msra.gmra.mrb[22].mxu1 %vm10394_vm0, %v11215_v36 }
 0x921   : > { %13362 = vmatpush3.bf16.msra.mxu1 %v13361_v19  ;;  %13110 = vmatprep.mubr.msk.f32.mxu1 %vm14383_vm3, %v17461_v41 }
 0x922   : > { %13363 = vmatprep.subr.bf16.mxu1 %v14406_v61 }
 0x925   : > { %13366 = vmatpush3.bf16.msk.msra.mxu1 %vm16938_vm13, %v13364_v31 }
 0x926   : > { %13367 = vmatprep.subr.bf16.mxu1 %v14406_v61 }
 0x928   : > { %13111 = vmatmul.mubr.msk.f32.vlgmr.msra.gmra.mrb[22].mxu1 %vm10394_vm0, %v11297_v57 }
 0x929   : > { %13369 = vmatpush3.bf16.msra.mxu1 %v13368_v38  ;;  %13121 = vmatprep.mubr.msk.f32.mxu1 %vm14383_vm3, %v17461_v41 }
 0x92a   : > { %13370 = vmatprep.subr.bf16.mxu1 %v14406_v61 }
 0x92d   : > { %13373 = vmatpush3.bf16.msk.msra.mxu1 %vm16938_vm13, %v13371_v43 }
 0x92e   : > { %13374 = vmatprep.subr.bf16.mxu1 %v14406_v61 }
 0x930   : > { %13122 = vmatmul.mubr.msk.f32.vlgmr.msra.gmra.mrb[22].mxu1 %vm10394_vm0, %v11379_v46 }
 0x931   : > { %13376 = vmatpush3.bf16.msra.mxu1 %v13375_v5  ;;  %13132 = vmatprep.mubr.msk.f32.mxu1 %vm14383_vm3, %v17461_v41 }
 0x932   : > { %13377 = vmatprep.subr.bf16.mxu1 %v14406_v61 }
 0x935   : > { %13380 = vmatpush3.bf16.msk.msra.mxu1 %vm16938_vm13, %v13378_v26 }
 0x936   : > { %13381 = vmatprep.subr.bf16.mxu1 %v14406_v61 }
 0x938   : > { %13133 = vmatmul.mubr.msk.f32.vlgmr.msra.gmra.mrb[22].mxu1 %vm10394_vm0, %v11461_v20 }
 0x939   : > { %13383 = vmatpush3.bf16.msra.mxu1 %v13382_v56  ;;  %13143 = vmatprep.mubr.msk.f32.mxu1 %vm14383_vm3, %v17461_v41 }
 0x93a   : > { %13384 = vmatprep.subr.bf16.mxu1 %v14406_v61 }
 0x93d   : > { %13387 = vmatpush3.bf16.msk.msra.mxu1 %vm16938_vm13, %v13385_v35 }
 0x93e   : > { %13388 = vmatprep.subr.bf16.mxu1 %v14406_v61 }
 0x940   : > { %13144 = vmatmul.mubr.msk.f32.vlgmr.msra.gmra.mrb[22].mxu1 %vm10394_vm0, %v11543_v2 }
 0x941   : > { %13390 = vmatpush3.bf16.msra.mxu1 %v13389_v51  ;;  %13154 = vmatprep.mubr.msk.f32.mxu1 %vm14383_vm3, %v17461_v41 }
 0x942   : > { %13391 = vmatprep.subr.bf16.mxu1 %v14406_v61 }
 0x945   : > { %13394 = vmatpush3.bf16.msk.msra.mxu1 %vm16938_vm13, %v13392_v25 }
 0x946   : > { %13416 = vmatprep.subr.bf16.mxu1 %v14406_v61 }
 0x948   : > { %13155 = vmatmul.mubr.msk.f32.vlgmr.msra.gmra.mrb[22].mxu1 %vm10394_vm0, %v11625_v9 }
 0x949   : > { %13212 = vmatprep.mubr.msk.f32.mxu1 %vm14383_vm3, %v17461_v41  ;;  %13418 = vmatpush3.bf16.msra.mxu1 %v13417_v28  ;;  %vm11810_vm3 = vcmask 1043456  }
 0x94a   : > { %13419 = vmatprep.subr.bf16.mxu1 %v14406_v61 }
 0x94d   : > { %13421 = vmatpush3.bf16.msra.mxu1 %v13420_v16 }
 0x94e   : > { %13422 = vmatprep.subr.bf16.mxu1 %v14406_v61 }
 0x951   : > { %13424 = vmatpush3.bf16.msra.mxu1 %v13423_v52 }
 0x952   : > { %13425 = vmatprep.subr.bf16.mxu1 %v14406_v61 }
 0x955   : > { %13427 = vmatpush3.bf16.msra.mxu1 %v13426_v27 }
 0x956   : > { %13428 = vmatprep.subr.bf16.mxu1 %v14406_v61  ;;  %v13429_v61 = vpack.c.bf16 %v11803_v59, %v11802_v34 }
 0x959   : > { %13430 = vmatpush3.bf16.msra.mxu1 %v13429_v61 }
 0x95a   : > { %13210 = vmatprep.subr.mxu1 %v17461_v41  ;;  %v11805_v41 = vld [vmem:[%s17411_s11] sm:$0x1] }
 0x95d   : > { %13211 = vmatpush3.msk.msra.mxu1 %vm11810_vm3, %v11804_v58 }
 0xa1b   : > { %v11697_v40 = vpop.f32.mrb[22].mxu1 }
 0xa1c   : > { %v13448_v4 = vadd.f32 %v11697_v40, %v10389_v12  ;;  %v13156_v11 = vpop.f32.mrb[23].mxu1 }
 0xa1e   : > { %v11702_v55 = vmax.f32 %v13448_v4, 0.0 }
 0xa20   : > { %13188 = vmatmul.mubr.msk.f32.vlgmr.msra.gmra.mrb[16].mxu0 %vm6567_vm8, %v11702_v55 }
 0xaf3   : > { %v11789_v33 = vpop.f32.mrb[16].mxu0 }
 0xaf4   : > { %v11790_v18 = vadd.f32 %v11789_v33, %v11718_v37  ;;  %v13189_v1 = vpop.f32.mrb[17].mxu0 }
 0xaf6   : > { %v11793_v19 = vmax.f32 %v11790_v18, 0.0 }
 0xaf8   : > { %13213 = vmatmul.mubr.msk.f32.vlgmr.msra.gmra.mrb[24].mxu1 %vm11806_vm15, %v11793_v19 }
 0xbcb   : > { %v11880_v36 = vpop.f32.mrb[24].mxu1 }
 0xbcc   : > { %v11881_v8 = vadd.f32 %v11880_v36, %v11805_v41  ;;  %v13214_v22 = vpop.f32.mrb[25].mxu1 }
 0xbce   : > { %11884 = vst [vmem:[%s405_s16] sm:$0x1] %v11881_v8 }
 0xbcf   : > { %14327 = shalt.err (!%p14324_p3)
}
 0xbd0   : > { %s14328_s20 = scalar_lea.hbm %s17358_s18, 16  ;;  %s14332_s15 = scalar_lea.hbm %s17412_s12, 32 }
 0xbd1   : > { %p14329_p4 = scmp.ne.s32.totalorder %s17358_s18, %s14328_s20  ;;  %p14333_p9 = scmp.lt.u32.totalorder %s17358_s18, %s17412_s12 }
 0xbd2   : > { %p14334_p10 = scmp.lt.u32.totalorder %s14332_s15, %s14328_s20  ;;  %p14336_p12 = scmp.lt.u32.totalorder %s14328_s20, %s17358_s18 }
 0xbd3   : > { %p14330_p7 = pnand %p14329_p4, %p14512_p5 }
 0xbd4   : > { %p14335_p11 = por %p14334_p10, %p14333_p9 }
 0xbd5   : > { %p14331_p8 = pneg %p14330_p7 }
 0xbd6   : > { %p14337_p13 = por %p14336_p12, %p14335_p11 }
 0xbd8   : > { %p14338_p0 = pnand %p14337_p13, %p14331_p8 }
 0xbda   : > { %14341 = shalt.err (!%p14338_p0)
}
 0xbdb   : > { %14151 = dma.vmem_to_hbm [thread:$0]  (%p14512_p5), %s17360_s26, 16, %s17358_s18, %s11886_s17  }
 0xbdc PF: > { %p14157_p1 = scmp.ge.s32.totalorder %s14376_s24, 2  ;;  %s11910_s1 = sand.u32 1, %s14364_s21  }
 0xbdd   : > { %s11911_s29 = scalar_lea.sflag [#allocation3], %s11910_s1 }
 0xbde   : > { %p14154_p2 = pnand %p14157_p1, %p14516_p6 }
 0xbe0   : > { %14359 = dma.done.wait (!%p14154_p2), %s11911_s29, 16  }
 0xbe1   : > { %14361 = vsyncadd (!%p14154_p2), %s11911_s29, 4294967280  ;;  %p22_p3 = scmp.ge.s32.totalorder %s14499_s27, 4   ;;  %s17476_s21 = smov %s14368_s22 }
 0xbe2   : > { %s17477_s22 = smov %s14372_s23  ;;  %s17478_s23 = smov %s14510_s30 }
 0xbe3   : > { %s17479_s24 = smov %s14499_s27  ;;  %24 = sbr.rel (!%p22_p3) target bundleno = 6 (0x6), region = 166 }
 0xbea   :  { %11915 = vsyncpa [#allocation3], 1 }
 0xbeb   :  { %11917 = vsyncpa [#allocation3 + $0x1], 1 }

</bundles_post_ra>
